<compile_context>
chip_gen: v5e
topology: v5e:2x2
jax: 0.10.0
libtpu: 0.0.40
codegen_flags: <defaults>
</compile_context>

<pallas_src>
import functools

import jax
import jax.numpy as jnp
from jax.experimental import pallas as pl
from jax.experimental.pallas import tpu as pltpu


# ----------------------------------------------------------------------------
# In-kernel helpers
# ----------------------------------------------------------------------------
def _layer_norm(x, gamma, beta, eps):
    mean = jnp.mean(x, axis=-1, keepdims=True)
    var = jnp.mean((x - mean) ** 2, axis=-1, keepdims=True)
    return (x - mean) * jax.lax.rsqrt(var + eps) * gamma + beta


def _project_heads(xh, w, compute_dtype):
    """xh: (H, T, D) compute_dtype, w: (H, D, dh) -> (H, T, dh) f32 accum."""
    return jnp.einsum('htd,hdk->htk', xh, w.astype(compute_dtype),
                      preferred_element_type=jnp.float32)


def _mha_heads(q, k, v, alibi, scale, compute_dtype):
    """q: (H,N,dh), k/v: (H,M,dh) f32; alibi: (H,N,M) f32 -> (H,N,dh) f32."""
    s = jnp.einsum('hnk,hmk->hnm', q.astype(compute_dtype), k.astype(compute_dtype),
                   preferred_element_type=jnp.float32) * scale
    s = s + alibi
    s = s - jnp.max(s, axis=-1, keepdims=True)
    p = jnp.exp(s)
    p = p * pl.reciprocal(jnp.sum(p, axis=-1, keepdims=True), approx=True)
    return jnp.einsum('hnm,hmk->hnk', p.astype(compute_dtype), v.astype(compute_dtype),
                      preferred_element_type=jnp.float32)


def _merge_heads_out(o, wo, bo, compute_dtype):
    """o: (H,N,dh) f32, wo: (H,dh,D), bo: (1,D) -> (N,D) f32 (output projection)."""
    y = jnp.einsum('hnk,hkd->hnd', o.astype(compute_dtype), wo.astype(compute_dtype),
                   preferred_element_type=jnp.float32)       # (H, N, D)
    H = y.shape[0]
    acc = y[0]                    # reduce over the (major) head axis: cheap VPU adds
    for h in range(1, H):
        acc = acc + y[h]
    return acc + bo


# ----------------------------------------------------------------------------
# Kernels
# ----------------------------------------------------------------------------
def _self_attn_kernel(x_ref, alibi_ref, wqkv_ref, wo_ref, bo_ref, g_ref, b_ref,
                      o_ref, *, num_heads, eps, compute_dtype):
    x = x_ref[0].astype(jnp.float32)                         # (N, D)
    N, D = x.shape
    H = num_heads
    dh = D // H
    scale = dh ** -0.5

    xn = _layer_norm(x, g_ref[...], b_ref[...], eps)
    xh = jnp.broadcast_to(xn.astype(compute_dtype), (H, N, D))   # head-batched view

    q = _project_heads(xh, wqkv_ref[0], compute_dtype)       # (H, N, dh)
    k = _project_heads(xh, wqkv_ref[1], compute_dtype)
    v = _project_heads(xh, wqkv_ref[2], compute_dtype)

    o = _mha_heads(q, k, v, alibi_ref[0].astype(jnp.float32), scale, compute_dtype)
    y = _merge_heads_out(o, wo_ref[...], bo_ref[...], compute_dtype)

    o_ref[0] = (x + y).astype(o_ref.dtype)                   # fused residual


def _cross_attn_kernel(x_ref, c_ref, alibi_ref, wqkv_ref, wo_ref, bo_ref, g_ref,
                       b_ref, o_ref, *, num_heads, eps, compute_dtype):
    x = x_ref[0].astype(jnp.float32)                         # (N, D)
    c = c_ref[0].astype(jnp.float32)                         # (M, D)
    N, D = x.shape
    M = c.shape[0]
    H = num_heads
    dh = D // H
    scale = dh ** -0.5

    g = g_ref[...]
    b = b_ref[...]
    xn = _layer_norm(x, g, b, eps)
    cn = _layer_norm(c, g, b, eps)      # module re-uses the same input_norm for context
    xh = jnp.broadcast_to(xn.astype(compute_dtype), (H, N, D))
    ch = jnp.broadcast_to(cn.astype(compute_dtype), (H, M, D))

    q = _project_heads(xh, wqkv_ref[0], compute_dtype)       # (H, N, dh)
    k = _project_heads(ch, wqkv_ref[1], compute_dtype)       # (H, M, dh)
    v = _project_heads(ch, wqkv_ref[2], compute_dtype)

    o = _mha_heads(q, k, v, alibi_ref[0].astype(jnp.float32), scale, compute_dtype)
    y = _merge_heads_out(o, wo_ref[...], bo_ref[...], compute_dtype)

    o_ref[0] = (x + y).astype(o_ref.dtype)


def _ffn_kernel(x_ref, w1_ref, b1_ref, w2_ref, b2_ref, g_ref, b_ref, o_ref,
                *, eps, compute_dtype):
    x = x_ref[0].astype(jnp.float32)                         # (N, D)
    xn = _layer_norm(x, g_ref[...], b_ref[...], eps)
    h = jnp.dot(xn.astype(compute_dtype), w1_ref[...].astype(compute_dtype),
                preferred_element_type=jnp.float32) + b1_ref[...]
    # TODO(synk): PyTorch nn.GELU() is the exact erf GELU; the tanh approximation is
    # used here (max deviation < 1e-3) to avoid depending on an erf lowering.
    h = jax.nn.gelu(h, approximate=True)
    y = jnp.dot(h.astype(compute_dtype), w2_ref[...].astype(compute_dtype),
                preferred_element_type=jnp.float32) + b2_ref[...]
    o_ref[0] = (x + y).astype(o_ref.dtype)                   # fused residual


def _layernorm_kernel(x_ref, g_ref, b_ref, o_ref, *, eps):
    x = x_ref[0].astype(jnp.float32)
    o_ref[0] = _layer_norm(x, g_ref[...], b_ref[...], eps).astype(o_ref.dtype)


# ----------------------------------------------------------------------------
# pallas_call wrappers
# ----------------------------------------------------------------------------
def _batch_spec(shape):
    n_rest = len(shape) - 1
    return pl.BlockSpec((1,) + tuple(shape[1:]), lambda b: (b,) + (0,) * n_rest)


def _const_spec(shape):
    ndim = len(shape)
    return pl.BlockSpec(tuple(shape), lambda b: (0,) * ndim)


def _cost(flops, transcendentals, in_arrays, out_bytes):
    nbytes = int(sum(int(a.size) * a.dtype.itemsize for a in in_arrays)) + int(out_bytes)
    return pl.CostEstimate(flops=int(flops), transcendentals=int(transcendentals),
                           bytes_accessed=nbytes)


def _call(kernel, args, n_batched, out_shape, cost):
    in_specs = [_batch_spec(a.shape) for a in args[:n_batched]] + \
               [_const_spec(a.shape) for a in args[n_batched:]]
    B = args[0].shape[0]
    return pl.pallas_call(
        kernel,
        out_shape=out_shape,
        grid_spec=pltpu.PrefetchScalarGridSpec(
            num_scalar_prefetch=0,
            grid=(B,),
            in_specs=in_specs,
            out_specs=_batch_spec(out_shape.shape),
        ),
        compiler_params=pltpu.CompilerParams(dimension_semantics=("parallel",)),
        cost_estimate=cost,
    )(*args)


def self_attention_block(x, alibi, p, *, num_heads, eps, compute_dtype):
    B, N, D = x.shape
    kernel = functools.partial(_self_attn_kernel, num_heads=num_heads, eps=eps,
                               compute_dtype=compute_dtype)
    args = (x, alibi, p['wqkv_h'], p['wo_h'], p['bo'], p['ln_g'], p['ln_b'])
    flops = B * (8 * N * D * D + 4 * N * N * D)
    cost = _cost(flops, B * num_heads * N * N, args, x.size * x.dtype.itemsize)
    return _call(kernel, args, 2, jax.ShapeDtypeStruct((B, N, D), x.dtype), cost)


def cross_attention_block(x, context, alibi, p, *, num_heads, eps, compute_dtype):
    B, N, D = x.shape
    M = context.shape[1]
    kernel = functools.partial(_cross_attn_kernel, num_heads=num_heads, eps=eps,
                               compute_dtype=compute_dtype)
    args = (x, context, alibi, p['wqkv_h'], p['wo_h'], p['bo'], p['ln_g'], p['ln_b'])
    flops = B * (4 * N * D * D + 4 * M * D * D + 4 * N * M * D)
    cost = _cost(flops, B * num_heads * N * M, args, x.size * x.dtype.itemsize)
    return _call(kernel, args, 3, jax.ShapeDtypeStruct((B, N, D), x.dtype), cost)


def ffn_block(x, p, *, eps, compute_dtype):
    B, N, D = x.shape
    inner = p['w1'].shape[1]
    kernel = functools.partial(_ffn_kernel, eps=eps, compute_dtype=compute_dtype)
    args = (x, p['w1'], p['b1'], p['w2'], p['b2'], p['ln_g'], p['ln_b'])
    cost = _cost(B * 4 * N * D * inner, B * N * inner, args, x.size * x.dtype.itemsize)
    return _call(kernel, args, 1, jax.ShapeDtypeStruct((B, N, D), x.dtype), cost)


def layernorm_block(x, g, b, *, eps):
    B, N, D = x.shape
    kernel = functools.partial(_layernorm_kernel, eps=eps)
    args = (x, g, b)
    cost = _cost(B * 10 * N * D, B * N, args, x.size * x.dtype.itemsize)
    return _call(kernel, args, 1, jax.ShapeDtypeStruct((B, N, D), x.dtype), cost)


def transformer_forward(x, context, alibi, kparams, *, num_heads, eps=1e-5,
                        compute_dtype=jnp.bfloat16):
    for lp in kparams['layers']:
        x = self_attention_block(x, alibi, lp['self'], num_heads=num_heads, eps=eps,
                                 compute_dtype=compute_dtype)
        x = cross_attention_block(x, context, alibi, lp['cross'], num_heads=num_heads,
                                  eps=eps, compute_dtype=compute_dtype)
        x = ffn_block(x, lp['ffn'], eps=eps, compute_dtype=compute_dtype)
    return layernorm_block(x, kparams['out_ln_g'], kparams['out_ln_b'], eps=eps)


# ----------------------------------------------------------------------------
# Parameter construction (torch layout) + one-time conversion to kernel layout
# ----------------------------------------------------------------------------
def init_params(key, dim, layers, ff_mult):
    inner = dim * ff_mult

    def normal(k, shape, scale=0.05):
        return scale * jax.random.normal(k, shape, jnp.float32)

    layers_p = []
    for _ in range(layers):
        key, *ks = jax.random.split(key, 19)
        layers_p.append({
            'sa_wqkv': normal(ks[0], (3 * dim, dim)),
            'sa_wo':   normal(ks[1], (dim, dim)),
            'sa_bo':   normal(ks[2], (dim,), 0.01),
            'sa_ln_g': 1.0 + normal(ks[3], (dim,), 0.1),
            'sa_ln_b': normal(ks[4], (dim,), 0.1),
            'ca_wq':   normal(ks[5], (dim, dim)),
            'ca_wk':   normal(ks[6], (dim, dim)),
            'ca_wv':   normal(ks[7], (dim, dim)),
            'ca_wo':   normal(ks[8], (dim, dim)),
            'ca_bo':   normal(ks[9], (dim,), 0.01),
            'ca_ln_g': 1.0 + normal(ks[10], (dim,), 0.1),
            'ca_ln_b': normal(ks[11], (dim,), 0.1),
            'ff_w1':   normal(ks[12], (inner, dim)),
            'ff_b1':   normal(ks[13], (inner,), 0.01),
            'ff_w2':   normal(ks[14], (dim, inner)),
            'ff_b2':   normal(ks[15], (dim,), 0.01),
            'ff_ln_g': 1.0 + normal(ks[16], (dim,), 0.1),
            'ff_ln_b': normal(ks[17], (dim,), 0.1),
        })
    key, k1, k2 = jax.random.split(key, 3)
    return {'layers': layers_p,
            'out_ln_g': 1.0 + 0.1 * jax.random.normal(k1, (dim,), jnp.float32),
            'out_ln_b': 0.1 * jax.random.normal(k2, (dim,), jnp.float32)}


def prepare_kernel_params(params, *, heads, compute_dtype):
    """Pre-transpose / head-slice torch (out,in) weights once, cast to bf16."""
    def per_head_in_w(w):                      # (D_out, D_in) -> (H, D_in, dh)
        d_out, d_in = w.shape
        dh = d_out // heads
        return w.reshape(heads, dh, d_in).transpose(0, 2, 1)

    def attn_pack(wq, wk, wv, wo, bo, g, b):
        d_out = wo.shape[0]
        dh = wo.shape[1] // heads
        return {
            'wqkv_h': jnp.stack([per_head_in_w(wq), per_head_in_w(wk),
                                 per_head_in_w(wv)], axis=0).astype(compute_dtype),
            'wo_h': wo.T.reshape(heads, dh, d_out).astype(compute_dtype),
            'bo': bo.reshape(1, -1),
            'ln_g': g.reshape(1, -1),
            'ln_b': b.reshape(1, -1),
        }

    kl = []
    for lp in params['layers']:
        wq, wk, wv = jnp.split(lp['sa_wqkv'], 3, axis=0)
        kl.append({
            'self': attn_pack(wq, wk, wv, lp['sa_wo'], lp['sa_bo'],
                              lp['sa_ln_g'], lp['sa_ln_b']),
            'cross': attn_pack(lp['ca_wq'], lp['ca_wk'], lp['ca_wv'], lp['ca_wo'],
                               lp['ca_bo'], lp['ca_ln_g'], lp['ca_ln_b']),
            'ffn': {
                'w1': lp['ff_w1'].T.astype(compute_dtype),
                'b1': lp['ff_b1'].reshape(1, -1),
                'w2': lp['ff_w2'].T.astype(compute_dtype),
                'b2': lp['ff_b2'].reshape(1, -1),
                'ln_g': lp['ff_ln_g'].reshape(1, -1),
                'ln_b': lp['ff_ln_b'].reshape(1, -1),
            },
        })
    return {'layers': kl,
            'out_ln_g': params['out_ln_g'].reshape(1, -1),
            'out_ln_b': params['out_ln_b'].reshape(1, -1)}


# ----------------------------------------------------------------------------
# Pure-JAX reference (mirrors the PyTorch module, f32, exact GELU)
# ----------------------------------------------------------------------------
def reference_forward(x, context, alibi, params, *, num_heads, eps=1e-5):
    D = x.shape[-1]
    dh = D // num_heads
    scale = dh ** -0.5

    def ln(t, g, b):
        m = jnp.mean(t, axis=-1, keepdims=True)
        v = jnp.mean((t - m) ** 2, axis=-1, keepdims=True)
        return (t - m) / jnp.sqrt(v + eps) * g + b

    def heads(t):
        B, N, _ = t.shape
        return t.reshape(B, N, num_heads, dh).transpose(0, 2, 1, 3)

    def attn_core(q, k, v, al):
        s = jnp.einsum('bhid,bhjd->bhij', q, k) * scale + al
        a = jax.nn.softmax(s, axis=-1)
        o = jnp.einsum('bhij,bhjd->bhid', a, v)
        B, H, N, _ = o.shape
        return o.transpose(0, 2, 1, 3).reshape(B, N, H * dh)

    for lp in params['layers']:
        xn = ln(x, lp['sa_ln_g'], lp['sa_ln_b'])
        qkv = xn @ lp['sa_wqkv'].T
        q, k, v = jnp.split(qkv, 3, axis=-1)
        o = attn_core(heads(q), heads(k), heads(v), alibi)
        x = x + o @ lp['sa_wo'].T + lp['sa_bo']

        xn = ln(x, lp['ca_ln_g'], lp['ca_ln_b'])
        cn = ln(context, lp['ca_ln_g'], lp['ca_ln_b'])
        q = xn @ lp['ca_wq'].T
        k = cn @ lp['ca_wk'].T
        v = cn @ lp['ca_wv'].T
        o = attn_core(heads(q), heads(k), heads(v), alibi)
        x = x + o @ lp['ca_wo'].T + lp['ca_bo']

        xn = ln(x, lp['ff_ln_g'], lp['ff_ln_b'])
        h = xn @ lp['ff_w1'].T + lp['ff_b1']
        h = jax.nn.gelu(h, approximate=False)
        x = x + h @ lp['ff_w2'].T + lp['ff_b2']
    return ln(x, params['out_ln_g'], params['out_ln_b'])


# ----------------------------------------------------------------------------
if __name__ == "__main__":
    B, N, D, H, LAYERS, FF_MULT = 2, 8, 32, 8, 2, 4

    key = jax.random.PRNGKey(0)
    kx, kc, ka, kp = jax.random.split(key, 4)
    x = jax.random.normal(kx, (B, N, D), jnp.float32)
    context = jax.random.normal(kc, (B, N, D), jnp.float32)
    alibi = 0.1 * jax.random.normal(ka, (B, H, N, N), jnp.float32)

    params = init_params(kp, D, LAYERS, FF_MULT)
    kparams = prepare_kernel_params(params, heads=H, compute_dtype=jnp.bfloat16)

    fwd = jax.jit(functools.partial(transformer_forward, num_heads=H,
                                    compute_dtype=jnp.bfloat16))
    out = jax.block_until_ready(fwd(x, context, alibi, kparams))

    ref = reference_forward(x, context, alibi, params, num_heads=H)
    assert out.shape == (B, N, D)
    max_err = float(jnp.max(jnp.abs(out - ref)))
    # bf16 matmul inputs / bf16-stored weights + approx reciprocal + tanh GELU
    # loosen the tolerance vs. a pure-f32 reference.
    assert max_err < 5e-2, f"mismatch vs reference: max abs err {max_err}"
    print("KERNEL_OK")
</pallas_src>

<mosaic_0001>
module attributes {stable_mosaic.version = 11 : i64} {
  func.func @_cross_attn_kernel(%arg0: i32, %arg1: memref<1x8x32xf32, #tpu.memory_space<vmem>>, %arg2: memref<1x8x32xf32, #tpu.memory_space<vmem>>, %arg3: memref<1x8x8x8xf32, #tpu.memory_space<vmem>>, %arg4: memref<3x8x32x4xbf16, #tpu.memory_space<vmem>>, %arg5: memref<8x4x32xbf16, #tpu.memory_space<vmem>>, %arg6: memref<1x32xf32, #tpu.memory_space<vmem>>, %arg7: memref<1x32xf32, #tpu.memory_space<vmem>>, %arg8: memref<1x32xf32, #tpu.memory_space<vmem>>, %arg9: memref<1x8x32xf32, #tpu.memory_space<vmem>>) attributes {dimension_semantics = [#tpu.dimension_semantics<parallel>], iteration_bounds = array<i64: 2>, scalar_prefetch = 0 : i64, scratch_operands = 0 : i64, tpu.core_type = #tpu.core_type<tc>, window_params = [{transform_indices = @transform_0, window_bounds = array<i64: 1, 8, 32>}, {transform_indices = @transform_1, window_bounds = array<i64: 1, 8, 32>}, {transform_indices = @transform_2, window_bounds = array<i64: 1, 8, 8, 8>}, {pipeline_mode = #tpu.pipeline_mode<synchronous>, transform_indices = @transform_3, window_bounds = array<i64: 3, 8, 32, 4>}, {pipeline_mode = #tpu.pipeline_mode<synchronous>, transform_indices = @transform_4, window_bounds = array<i64: 8, 4, 32>}, {pipeline_mode = #tpu.pipeline_mode<synchronous>, transform_indices = @transform_5, window_bounds = array<i64: 1, 32>}, {pipeline_mode = #tpu.pipeline_mode<synchronous>, transform_indices = @transform_6, window_bounds = array<i64: 1, 32>}, {pipeline_mode = #tpu.pipeline_mode<synchronous>, transform_indices = @transform_7, window_bounds = array<i64: 1, 32>}, {transform_indices = @transform_8, window_bounds = array<i64: 1, 8, 32>}]} {
    %c0 = arith.constant 0 : index
    %c0_0 = arith.constant 0 : index
    %c0_1 = arith.constant 0 : index
    %0 = vector.load %arg1[%c0, %c0_0, %c0_1] : memref<1x8x32xf32, #tpu.memory_space<vmem>>, vector<1x8x32xf32>
    %1 = vector.shape_cast %0 : vector<1x8x32xf32> to vector<8x32xf32>
    %c0_2 = arith.constant 0 : index
    %c0_3 = arith.constant 0 : index
    %c0_4 = arith.constant 0 : index
    %2 = vector.load %arg2[%c0_2, %c0_3, %c0_4] : memref<1x8x32xf32, #tpu.memory_space<vmem>>, vector<1x8x32xf32>
    %3 = vector.shape_cast %2 : vector<1x8x32xf32> to vector<8x32xf32>
    %c0_5 = arith.constant 0 : index
    %c0_6 = arith.constant 0 : index
    %4 = vector.load %arg7[%c0_5, %c0_6] : memref<1x32xf32, #tpu.memory_space<vmem>>, vector<1x32xf32>
    %c0_7 = arith.constant 0 : index
    %c0_8 = arith.constant 0 : index
    %5 = vector.load %arg8[%c0_7, %c0_8] : memref<1x32xf32, #tpu.memory_space<vmem>>, vector<1x32xf32>
    %cst = arith.constant dense<0.000000e+00> : vector<8xf32>
    %6 = vector.multi_reduction <add>, %1, %cst [1] : vector<8x32xf32> to vector<8xf32>
    %7 = vector.shape_cast %6 : vector<8xf32> to vector<8x1xf32>
    %cst_9 = arith.constant 3.200000e+01 : f32
    %8 = vector.broadcast %cst_9 : f32 to vector<8x1xf32>
    %9 = arith.divf %7, %8 : vector<8x1xf32>
    %10 = vector.broadcast %9 : vector<8x1xf32> to vector<8x32xf32>
    %11 = arith.subf %1, %10 : vector<8x32xf32>
    %12 = arith.mulf %11, %11 : vector<8x32xf32>
    %cst_10 = arith.constant dense<0.000000e+00> : vector<8xf32>
    %13 = vector.multi_reduction <add>, %12, %cst_10 [1] : vector<8x32xf32> to vector<8xf32>
    %14 = vector.shape_cast %13 : vector<8xf32> to vector<8x1xf32>
    %cst_11 = arith.constant 3.200000e+01 : f32
    %15 = vector.broadcast %cst_11 : f32 to vector<8x1xf32>
    %16 = arith.divf %14, %15 : vector<8x1xf32>
    %17 = vector.broadcast %9 : vector<8x1xf32> to vector<8x32xf32>
    %18 = arith.subf %1, %17 : vector<8x32xf32>
    %cst_12 = arith.constant 9.99999974E-6 : f32
    %19 = vector.broadcast %cst_12 : f32 to vector<8x1xf32>
    %20 = arith.addf %16, %19 : vector<8x1xf32>
    %21 = math.rsqrt %20 : vector<8x1xf32>
    %22 = vector.broadcast %21 : vector<8x1xf32> to vector<8x32xf32>
    %23 = arith.mulf %18, %22 : vector<8x32xf32>
    %24 = vector.broadcast %4 : vector<1x32xf32> to vector<8x32xf32>
    %25 = arith.mulf %23, %24 : vector<8x32xf32>
    %26 = vector.broadcast %5 : vector<1x32xf32> to vector<8x32xf32>
    %27 = arith.addf %25, %26 : vector<8x32xf32>
    %cst_13 = arith.constant dense<0.000000e+00> : vector<8xf32>
    %28 = vector.multi_reduction <add>, %3, %cst_13 [1] : vector<8x32xf32> to vector<8xf32>
    %29 = vector.shape_cast %28 : vector<8xf32> to vector<8x1xf32>
    %cst_14 = arith.constant 3.200000e+01 : f32
    %30 = vector.broadcast %cst_14 : f32 to vector<8x1xf32>
    %31 = arith.divf %29, %30 : vector<8x1xf32>
    %32 = vector.broadcast %31 : vector<8x1xf32> to vector<8x32xf32>
    %33 = arith.subf %3, %32 : vector<8x32xf32>
    %34 = arith.mulf %33, %33 : vector<8x32xf32>
    %cst_15 = arith.constant dense<0.000000e+00> : vector<8xf32>
    %35 = vector.multi_reduction <add>, %34, %cst_15 [1] : vector<8x32xf32> to vector<8xf32>
    %36 = vector.shape_cast %35 : vector<8xf32> to vector<8x1xf32>
    %cst_16 = arith.constant 3.200000e+01 : f32
    %37 = vector.broadcast %cst_16 : f32 to vector<8x1xf32>
    %38 = arith.divf %36, %37 : vector<8x1xf32>
    %39 = vector.broadcast %31 : vector<8x1xf32> to vector<8x32xf32>
    %40 = arith.subf %3, %39 : vector<8x32xf32>
    %cst_17 = arith.constant 9.99999974E-6 : f32
    %41 = vector.broadcast %cst_17 : f32 to vector<8x1xf32>
    %42 = arith.addf %38, %41 : vector<8x1xf32>
    %43 = math.rsqrt %42 : vector<8x1xf32>
    %44 = vector.broadcast %43 : vector<8x1xf32> to vector<8x32xf32>
    %45 = arith.mulf %40, %44 : vector<8x32xf32>
    %46 = vector.broadcast %4 : vector<1x32xf32> to vector<8x32xf32>
    %47 = arith.mulf %45, %46 : vector<8x32xf32>
    %48 = vector.broadcast %5 : vector<1x32xf32> to vector<8x32xf32>
    %49 = arith.addf %47, %48 : vector<8x32xf32>
    %50 = arith.truncf %27 : vector<8x32xf32> to vector<8x32xbf16>
    %51 = vector.shape_cast %50 : vector<8x32xbf16> to vector<1x8x32xbf16>
    %52 = vector.broadcast %51 : vector<1x8x32xbf16> to vector<8x8x32xbf16>
    %53 = arith.truncf %49 : vector<8x32xf32> to vector<8x32xbf16>
    %54 = vector.shape_cast %53 : vector<8x32xbf16> to vector<1x8x32xbf16>
    %55 = vector.broadcast %54 : vector<1x8x32xbf16> to vector<8x8x32xbf16>
    %c0_18 = arith.constant 0 : index
    %c0_19 = arith.constant 0 : index
    %c0_20 = arith.constant 0 : index
    %c0_21 = arith.constant 0 : index
    %56 = vector.load %arg4[%c0_18, %c0_19, %c0_20, %c0_21] : memref<3x8x32x4xbf16, #tpu.memory_space<vmem>>, vector<1x8x32x4xbf16>
    %57 = vector.shape_cast %56 : vector<1x8x32x4xbf16> to vector<8x32x4xbf16>
    "tpu.trace_start"() <{level = 10 : i32, message = "htd,hdk->htk"}> : () -> ()
    %cst_22 = arith.constant dense<0.000000e+00> : vector<8x8x4xf32>
    %58 = tpu.matmul %52, %57, %cst_22 {dimension_numbers = #tpu.dot_dimension_numbers<[2], [1], [1], [2], [0, 0, 0, 1, 1, 2], [0], [0]>} : vector<8x8x32xbf16>, vector<8x32x4xbf16>, vector<8x8x4xf32> -> vector<8x8x4xf32>
    "tpu.trace_stop"() : () -> ()
    %c1 = arith.constant 1 : index
    %c0_23 = arith.constant 0 : index
    %c0_24 = arith.constant 0 : index
    %c0_25 = arith.constant 0 : index
    %59 = vector.load %arg4[%c1, %c0_23, %c0_24, %c0_25] : memref<3x8x32x4xbf16, #tpu.memory_space<vmem>>, vector<1x8x32x4xbf16>
    %60 = vector.shape_cast %59 : vector<1x8x32x4xbf16> to vector<8x32x4xbf16>
    "tpu.trace_start"() <{level = 10 : i32, message = "htd,hdk->htk"}> : () -> ()
    %cst_26 = arith.constant dense<0.000000e+00> : vector<8x8x4xf32>
    %61 = tpu.matmul %55, %60, %cst_26 {dimension_numbers = #tpu.dot_dimension_numbers<[2], [1], [1], [2], [0, 0, 0, 1, 1, 2], [0], [0]>} : vector<8x8x32xbf16>, vector<8x32x4xbf16>, vector<8x8x4xf32> -> vector<8x8x4xf32>
    "tpu.trace_stop"() : () -> ()
    %c2 = arith.constant 2 : index
    %c0_27 = arith.constant 0 : index
    %c0_28 = arith.constant 0 : index
    %c0_29 = arith.constant 0 : index
    %62 = vector.load %arg4[%c2, %c0_27, %c0_28, %c0_29] : memref<3x8x32x4xbf16, #tpu.memory_space<vmem>>, vector<1x8x32x4xbf16>
    %63 = vector.shape_cast %62 : vector<1x8x32x4xbf16> to vector<8x32x4xbf16>
    "tpu.trace_start"() <{level = 10 : i32, message = "htd,hdk->htk"}> : () -> ()
    %cst_30 = arith.constant dense<0.000000e+00> : vector<8x8x4xf32>
    %64 = tpu.matmul %55, %63, %cst_30 {dimension_numbers = #tpu.dot_dimension_numbers<[2], [1], [1], [2], [0, 0, 0, 1, 1, 2], [0], [0]>} : vector<8x8x32xbf16>, vector<8x32x4xbf16>, vector<8x8x4xf32> -> vector<8x8x4xf32>
    "tpu.trace_stop"() : () -> ()
    %c0_31 = arith.constant 0 : index
    %c0_32 = arith.constant 0 : index
    %c0_33 = arith.constant 0 : index
    %c0_34 = arith.constant 0 : index
    %65 = vector.load %arg3[%c0_31, %c0_32, %c0_33, %c0_34] : memref<1x8x8x8xf32, #tpu.memory_space<vmem>>, vector<1x8x8x8xf32>
    %66 = vector.shape_cast %65 : vector<1x8x8x8xf32> to vector<8x8x8xf32>
    %67 = arith.truncf %58 : vector<8x8x4xf32> to vector<8x8x4xbf16>
    %68 = arith.truncf %61 : vector<8x8x4xf32> to vector<8x8x4xbf16>
    "tpu.trace_start"() <{level = 10 : i32, message = "hnk,hmk->hnm"}> : () -> ()
    %cst_35 = arith.constant dense<0.000000e+00> : vector<8x8x8xf32>
    %69 = tpu.matmul %67, %68, %cst_35 {dimension_numbers = #tpu.dot_dimension_numbers<[2], [2], [1], [1], [0, 0, 0, 1, 1, 1], [0], [0]>} : vector<8x8x4xbf16>, vector<8x8x4xbf16>, vector<8x8x8xf32> -> vector<8x8x8xf32>
    "tpu.trace_stop"() : () -> ()
    %cst_36 = arith.constant 5.000000e-01 : f32
    %70 = vector.broadcast %cst_36 : f32 to vector<8x8x8xf32>
    %71 = arith.mulf %69, %70 : vector<8x8x8xf32>
    %72 = arith.addf %71, %66 : vector<8x8x8xf32>
    %cst_37 = arith.constant dense<0xFF800000> : vector<8x8xf32>
    %73 = vector.multi_reduction <maximumf>, %72, %cst_37 [2] : vector<8x8x8xf32> to vector<8x8xf32>
    %74 = vector.shape_cast %73 : vector<8x8xf32> to vector<8x8x1xf32>
    %75 = vector.broadcast %74 : vector<8x8x1xf32> to vector<8x8x8xf32>
    %76 = arith.subf %72, %75 : vector<8x8x8xf32>
    %77 = math.exp %76 : vector<8x8x8xf32>
    %cst_38 = arith.constant dense<0.000000e+00> : vector<8x8xf32>
    %78 = vector.multi_reduction <add>, %77, %cst_38 [2] : vector<8x8x8xf32> to vector<8x8xf32>
    %79 = vector.shape_cast %78 : vector<8x8xf32> to vector<8x8x1xf32>
    %80 = tpu.reciprocal %79 {approx = true} : vector<8x8x1xf32> -> vector<8x8x1xf32>
    %81 = vector.broadcast %80 : vector<8x8x1xf32> to vector<8x8x8xf32>
    %82 = arith.mulf %77, %81 : vector<8x8x8xf32>
    %83 = arith.truncf %82 : vector<8x8x8xf32> to vector<8x8x8xbf16>
    %84 = arith.truncf %64 : vector<8x8x4xf32> to vector<8x8x4xbf16>
    "tpu.trace_start"() <{level = 10 : i32, message = "hnm,hmk->hnk"}> : () -> ()
    %cst_39 = arith.constant dense<0.000000e+00> : vector<8x8x4xf32>
    %85 = tpu.matmul %83, %84, %cst_39 {dimension_numbers = #tpu.dot_dimension_numbers<[2], [1], [1], [2], [0, 0, 0, 1, 1, 2], [0], [0]>} : vector<8x8x8xbf16>, vector<8x8x4xbf16>, vector<8x8x4xf32> -> vector<8x8x4xf32>
    "tpu.trace_stop"() : () -> ()
    %c0_40 = arith.constant 0 : index
    %c0_41 = arith.constant 0 : index
    %c0_42 = arith.constant 0 : index
    %86 = vector.load %arg5[%c0_40, %c0_41, %c0_42] : memref<8x4x32xbf16, #tpu.memory_space<vmem>>, vector<8x4x32xbf16>
    %c0_43 = arith.constant 0 : index
    %c0_44 = arith.constant 0 : index
    %87 = vector.load %arg6[%c0_43, %c0_44] : memref<1x32xf32, #tpu.memory_space<vmem>>, vector<1x32xf32>
    %88 = arith.truncf %85 : vector<8x8x4xf32> to vector<8x8x4xbf16>
    "tpu.trace_start"() <{level = 10 : i32, message = "hnk,hkd->hnd"}> : () -> ()
    %cst_45 = arith.constant dense<0.000000e+00> : vector<8x8x32xf32>
    %89 = tpu.matmul %88, %86, %cst_45 {dimension_numbers = #tpu.dot_dimension_numbers<[2], [1], [1], [2], [0, 0, 0, 1, 1, 2], [0], [0]>} : vector<8x8x4xbf16>, vector<8x4x32xbf16>, vector<8x8x32xf32> -> vector<8x8x32xf32>
    "tpu.trace_stop"() : () -> ()
    %90 = vector.extract_strided_slice %89 {offsets = [0, 0, 0], sizes = [1, 8, 32], strides = [1, 1, 1]} : vector<8x8x32xf32> to vector<1x8x32xf32>
    %91 = vector.shape_cast %90 : vector<1x8x32xf32> to vector<8x32xf32>
    %92 = vector.extract_strided_slice %89 {offsets = [1, 0, 0], sizes = [1, 8, 32], strides = [1, 1, 1]} : vector<8x8x32xf32> to vector<1x8x32xf32>
    %93 = vector.shape_cast %92 : vector<1x8x32xf32> to vector<8x32xf32>
    %94 = arith.addf %91, %93 : vector<8x32xf32>
    %95 = vector.extract_strided_slice %89 {offsets = [2, 0, 0], sizes = [1, 8, 32], strides = [1, 1, 1]} : vector<8x8x32xf32> to vector<1x8x32xf32>
    %96 = vector.shape_cast %95 : vector<1x8x32xf32> to vector<8x32xf32>
    %97 = arith.addf %94, %96 : vector<8x32xf32>
    %98 = vector.extract_strided_slice %89 {offsets = [3, 0, 0], sizes = [1, 8, 32], strides = [1, 1, 1]} : vector<8x8x32xf32> to vector<1x8x32xf32>
    %99 = vector.shape_cast %98 : vector<1x8x32xf32> to vector<8x32xf32>
    %100 = arith.addf %97, %99 : vector<8x32xf32>
    %101 = vector.extract_strided_slice %89 {offsets = [4, 0, 0], sizes = [1, 8, 32], strides = [1, 1, 1]} : vector<8x8x32xf32> to vector<1x8x32xf32>
    %102 = vector.shape_cast %101 : vector<1x8x32xf32> to vector<8x32xf32>
    %103 = arith.addf %100, %102 : vector<8x32xf32>
    %104 = vector.extract_strided_slice %89 {offsets = [5, 0, 0], sizes = [1, 8, 32], strides = [1, 1, 1]} : vector<8x8x32xf32> to vector<1x8x32xf32>
    %105 = vector.shape_cast %104 : vector<1x8x32xf32> to vector<8x32xf32>
    %106 = arith.addf %103, %105 : vector<8x32xf32>
    %107 = vector.extract_strided_slice %89 {offsets = [6, 0, 0], sizes = [1, 8, 32], strides = [1, 1, 1]} : vector<8x8x32xf32> to vector<1x8x32xf32>
    %108 = vector.shape_cast %107 : vector<1x8x32xf32> to vector<8x32xf32>
    %109 = arith.addf %106, %108 : vector<8x32xf32>
    %110 = vector.extract_strided_slice %89 {offsets = [7, 0, 0], sizes = [1, 8, 32], strides = [1, 1, 1]} : vector<8x8x32xf32> to vector<1x8x32xf32>
    %111 = vector.shape_cast %110 : vector<1x8x32xf32> to vector<8x32xf32>
    %112 = arith.addf %109, %111 : vector<8x32xf32>
    %113 = vector.broadcast %87 : vector<1x32xf32> to vector<8x32xf32>
    %114 = arith.addf %112, %113 : vector<8x32xf32>
    %115 = arith.addf %1, %114 : vector<8x32xf32>
    %c0_46 = arith.constant 0 : index
    %c0_47 = arith.constant 0 : index
    %c0_48 = arith.constant 0 : index
    %116 = vector.load %arg9[%c0_46, %c0_47, %c0_48] : memref<1x8x32xf32, #tpu.memory_space<vmem>>, vector<1x8x32xf32>
    %117 = vector.shape_cast %116 : vector<1x8x32xf32> to vector<8x32xf32>
    %118 = vector.shape_cast %115 : vector<8x32xf32> to vector<1x8x32xf32>
    tpu.vector_store %arg9[%c0_46, %c0_47, %c0_48], %118 {strides = array<i32>} : memref<1x8x32xf32, #tpu.memory_space<vmem>>, vector<1x8x32xf32>,
    return
  }
  func.func @transform_0(%arg0: i32) -> (i32, i32, i32) {
    %c0_i32 = arith.constant 0 : i32
    %c0_i32_0 = arith.constant 0 : i32
    %c0_i32_1 = arith.constant 0 : i32
    return %arg0, %c0_i32, %c0_i32_0 : i32, i32, i32
  }
  func.func @transform_1(%arg0: i32) -> (i32, i32, i32) {
    %c0_i32 = arith.constant 0 : i32
    %c0_i32_0 = arith.constant 0 : i32
    %c0_i32_1 = arith.constant 0 : i32
    return %arg0, %c0_i32, %c0_i32_0 : i32, i32, i32
  }
  func.func @transform_2(%arg0: i32) -> (i32, i32, i32, i32) {
    %c0_i32 = arith.constant 0 : i32
    %c0_i32_0 = arith.constant 0 : i32
    %c0_i32_1 = arith.constant 0 : i32
    %c0_i32_2 = arith.constant 0 : i32
    return %arg0, %c0_i32, %c0_i32_0, %c0_i32_1 : i32, i32, i32, i32
  }
  func.func @transform_3(%arg0: i32) -> (i32, i32, i32, i32) {
    %c0_i32 = arith.constant 0 : i32
    %c0_i32_0 = arith.constant 0 : i32
    %c0_i32_1 = arith.constant 0 : i32
    %c0_i32_2 = arith.constant 0 : i32
    %c0_i32_3 = arith.constant 0 : i32
    return %c0_i32, %c0_i32_0, %c0_i32_1, %c0_i32_2 : i32, i32, i32, i32
  }
  func.func @transform_4(%arg0: i32) -> (i32, i32, i32) {
    %c0_i32 = arith.constant 0 : i32
    %c0_i32_0 = arith.constant 0 : i32
    %c0_i32_1 = arith.constant 0 : i32
    %c0_i32_2 = arith.constant 0 : i32
    return %c0_i32, %c0_i32_0, %c0_i32_1 : i32, i32, i32
  }
  func.func @transform_5(%arg0: i32) -> (i32, i32) {
    %c0_i32 = arith.constant 0 : i32
    %c0_i32_0 = arith.constant 0 : i32
    %c0_i32_1 = arith.constant 0 : i32
    return %c0_i32, %c0_i32_0 : i32, i32
  }
  func.func @transform_6(%arg0: i32) -> (i32, i32) {
    %c0_i32 = arith.constant 0 : i32
    %c0_i32_0 = arith.constant 0 : i32
    %c0_i32_1 = arith.constant 0 : i32
    return %c0_i32, %c0_i32_0 : i32, i32
  }
  func.func @transform_7(%arg0: i32) -> (i32, i32) {
    %c0_i32 = arith.constant 0 : i32
    %c0_i32_0 = arith.constant 0 : i32
    %c0_i32_1 = arith.constant 0 : i32
    return %c0_i32, %c0_i32_0 : i32, i32
  }
  func.func @transform_8(%arg0: i32) -> (i32, i32, i32) {
    %c0_i32 = arith.constant 0 : i32
    %c0_i32_0 = arith.constant 0 : i32
    %c0_i32_1 = arith.constant 0 : i32
    return %arg0, %c0_i32, %c0_i32_0 : i32, i32, i32
  }
}

module attributes {stable_mosaic.version = 11 : i64} {
  func.func @_self_attn_kernel(%arg0: i32, %arg1: memref<1x8x32xf32, #tpu.memory_space<vmem>>, %arg2: memref<1x8x8x8xf32, #tpu.memory_space<vmem>>, %arg3: memref<3x8x32x4xbf16, #tpu.memory_space<vmem>>, %arg4: memref<8x4x32xbf16, #tpu.memory_space<vmem>>, %arg5: memref<1x32xf32, #tpu.memory_space<vmem>>, %arg6: memref<1x32xf32, #tpu.memory_space<vmem>>, %arg7: memref<1x32xf32, #tpu.memory_space<vmem>>, %arg8: memref<1x8x32xf32, #tpu.memory_space<vmem>>) attributes {dimension_semantics = [#tpu.dimension_semantics<parallel>], iteration_bounds = array<i64: 2>, scalar_prefetch = 0 : i64, scratch_operands = 0 : i64, tpu.core_type = #tpu.core_type<tc>, window_params = [{transform_indices = @transform_0, window_bounds = array<i64: 1, 8, 32>}, {transform_indices = @transform_1, window_bounds = array<i64: 1, 8, 8, 8>}, {pipeline_mode = #tpu.pipeline_mode<synchronous>, transform_indices = @transform_2, window_bounds = array<i64: 3, 8, 32, 4>}, {pipeline_mode = #tpu.pipeline_mode<synchronous>, transform_indices = @transform_3, window_bounds = array<i64: 8, 4, 32>}, {pipeline_mode = #tpu.pipeline_mode<synchronous>, transform_indices = @transform_4, window_bounds = array<i64: 1, 32>}, {pipeline_mode = #tpu.pipeline_mode<synchronous>, transform_indices = @transform_5, window_bounds = array<i64: 1, 32>}, {pipeline_mode = #tpu.pipeline_mode<synchronous>, transform_indices = @transform_6, window_bounds = array<i64: 1, 32>}, {transform_indices = @transform_7, window_bounds = array<i64: 1, 8, 32>}]} {
    %c0 = arith.constant 0 : index
    %c0_0 = arith.constant 0 : index
    %c0_1 = arith.constant 0 : index
    %0 = vector.load %arg1[%c0, %c0_0, %c0_1] : memref<1x8x32xf32, #tpu.memory_space<vmem>>, vector<1x8x32xf32>
    %1 = vector.shape_cast %0 : vector<1x8x32xf32> to vector<8x32xf32>
    %c0_2 = arith.constant 0 : index
    %c0_3 = arith.constant 0 : index
    %2 = vector.load %arg6[%c0_2, %c0_3] : memref<1x32xf32, #tpu.memory_space<vmem>>, vector<1x32xf32>
    %c0_4 = arith.constant 0 : index
    %c0_5 = arith.constant 0 : index
    %3 = vector.load %arg7[%c0_4, %c0_5] : memref<1x32xf32, #tpu.memory_space<vmem>>, vector<1x32xf32>
    %cst = arith.constant dense<0.000000e+00> : vector<8xf32>
    %4 = vector.multi_reduction <add>, %1, %cst [1] : vector<8x32xf32> to vector<8xf32>
    %5 = vector.shape_cast %4 : vector<8xf32> to vector<8x1xf32>
    %cst_6 = arith.constant 3.200000e+01 : f32
    %6 = vector.broadcast %cst_6 : f32 to vector<8x1xf32>
    %7 = arith.divf %5, %6 : vector<8x1xf32>
    %8 = vector.broadcast %7 : vector<8x1xf32> to vector<8x32xf32>
    %9 = arith.subf %1, %8 : vector<8x32xf32>
    %10 = arith.mulf %9, %9 : vector<8x32xf32>
    %cst_7 = arith.constant dense<0.000000e+00> : vector<8xf32>
    %11 = vector.multi_reduction <add>, %10, %cst_7 [1] : vector<8x32xf32> to vector<8xf32>
    %12 = vector.shape_cast %11 : vector<8xf32> to vector<8x1xf32>
    %cst_8 = arith.constant 3.200000e+01 : f32
    %13 = vector.broadcast %cst_8 : f32 to vector<8x1xf32>
    %14 = arith.divf %12, %13 : vector<8x1xf32>
    %15 = vector.broadcast %7 : vector<8x1xf32> to vector<8x32xf32>
    %16 = arith.subf %1, %15 : vector<8x32xf32>
    %cst_9 = arith.constant 9.99999974E-6 : f32
    %17 = vector.broadcast %cst_9 : f32 to vector<8x1xf32>
    %18 = arith.addf %14, %17 : vector<8x1xf32>
    %19 = math.rsqrt %18 : vector<8x1xf32>
    %20 = vector.broadcast %19 : vector<8x1xf32> to vector<8x32xf32>
    %21 = arith.mulf %16, %20 : vector<8x32xf32>
    %22 = vector.broadcast %2 : vector<1x32xf32> to vector<8x32xf32>
    %23 = arith.mulf %21, %22 : vector<8x32xf32>
    %24 = vector.broadcast %3 : vector<1x32xf32> to vector<8x32xf32>
    %25 = arith.addf %23, %24 : vector<8x32xf32>
    %26 = arith.truncf %25 : vector<8x32xf32> to vector<8x32xbf16>
    %27 = vector.shape_cast %26 : vector<8x32xbf16> to vector<1x8x32xbf16>
    %28 = vector.broadcast %27 : vector<1x8x32xbf16> to vector<8x8x32xbf16>
    %c0_10 = arith.constant 0 : index
    %c0_11 = arith.constant 0 : index
    %c0_12 = arith.constant 0 : index
    %c0_13 = arith.constant 0 : index
    %29 = vector.load %arg3[%c0_10, %c0_11, %c0_12, %c0_13] : memref<3x8x32x4xbf16, #tpu.memory_space<vmem>>, vector<1x8x32x4xbf16>
    %30 = vector.shape_cast %29 : vector<1x8x32x4xbf16> to vector<8x32x4xbf16>
    "tpu.trace_start"() <{level = 10 : i32, message = "htd,hdk->htk"}> : () -> ()
    %cst_14 = arith.constant dense<0.000000e+00> : vector<8x8x4xf32>
    %31 = tpu.matmul %28, %30, %cst_14 {dimension_numbers = #tpu.dot_dimension_numbers<[2], [1], [1], [2], [0, 0, 0, 1, 1, 2], [0], [0]>} : vector<8x8x32xbf16>, vector<8x32x4xbf16>, vector<8x8x4xf32> -> vector<8x8x4xf32>
    "tpu.trace_stop"() : () -> ()
    %c1 = arith.constant 1 : index
    %c0_15 = arith.constant 0 : index
    %c0_16 = arith.constant 0 : index
    %c0_17 = arith.constant 0 : index
    %32 = vector.load %arg3[%c1, %c0_15, %c0_16, %c0_17] : memref<3x8x32x4xbf16, #tpu.memory_space<vmem>>, vector<1x8x32x4xbf16>
    %33 = vector.shape_cast %32 : vector<1x8x32x4xbf16> to vector<8x32x4xbf16>
    "tpu.trace_start"() <{level = 10 : i32, message = "htd,hdk->htk"}> : () -> ()
    %cst_18 = arith.constant dense<0.000000e+00> : vector<8x8x4xf32>
    %34 = tpu.matmul %28, %33, %cst_18 {dimension_numbers = #tpu.dot_dimension_numbers<[2], [1], [1], [2], [0, 0, 0, 1, 1, 2], [0], [0]>} : vector<8x8x32xbf16>, vector<8x32x4xbf16>, vector<8x8x4xf32> -> vector<8x8x4xf32>
    "tpu.trace_stop"() : () -> ()
    %c2 = arith.constant 2 : index
    %c0_19 = arith.constant 0 : index
    %c0_20 = arith.constant 0 : index
    %c0_21 = arith.constant 0 : index
    %35 = vector.load %arg3[%c2, %c0_19, %c0_20, %c0_21] : memref<3x8x32x4xbf16, #tpu.memory_space<vmem>>, vector<1x8x32x4xbf16>
    %36 = vector.shape_cast %35 : vector<1x8x32x4xbf16> to vector<8x32x4xbf16>
    "tpu.trace_start"() <{level = 10 : i32, message = "htd,hdk->htk"}> : () -> ()
    %cst_22 = arith.constant dense<0.000000e+00> : vector<8x8x4xf32>
    %37 = tpu.matmul %28, %36, %cst_22 {dimension_numbers = #tpu.dot_dimension_numbers<[2], [1], [1], [2], [0, 0, 0, 1, 1, 2], [0], [0]>} : vector<8x8x32xbf16>, vector<8x32x4xbf16>, vector<8x8x4xf32> -> vector<8x8x4xf32>
    "tpu.trace_stop"() : () -> ()
    %c0_23 = arith.constant 0 : index
    %c0_24 = arith.constant 0 : index
    %c0_25 = arith.constant 0 : index
    %c0_26 = arith.constant 0 : index
    %38 = vector.load %arg2[%c0_23, %c0_24, %c0_25, %c0_26] : memref<1x8x8x8xf32, #tpu.memory_space<vmem>>, vector<1x8x8x8xf32>
    %39 = vector.shape_cast %38 : vector<1x8x8x8xf32> to vector<8x8x8xf32>
    %40 = arith.truncf %31 : vector<8x8x4xf32> to vector<8x8x4xbf16>
    %41 = arith.truncf %34 : vector<8x8x4xf32> to vector<8x8x4xbf16>
    "tpu.trace_start"() <{level = 10 : i32, message = "hnk,hmk->hnm"}> : () -> ()
    %cst_27 = arith.constant dense<0.000000e+00> : vector<8x8x8xf32>
    %42 = tpu.matmul %40, %41, %cst_27 {dimension_numbers = #tpu.dot_dimension_numbers<[2], [2], [1], [1], [0, 0, 0, 1, 1, 1], [0], [0]>} : vector<8x8x4xbf16>, vector<8x8x4xbf16>, vector<8x8x8xf32> -> vector<8x8x8xf32>
    "tpu.trace_stop"() : () -> ()
    %cst_28 = arith.constant 5.000000e-01 : f32
    %43 = vector.broadcast %cst_28 : f32 to vector<8x8x8xf32>
    %44 = arith.mulf %42, %43 : vector<8x8x8xf32>
    %45 = arith.addf %44, %39 : vector<8x8x8xf32>
    %cst_29 = arith.constant dense<0xFF800000> : vector<8x8xf32>
    %46 = vector.multi_reduction <maximumf>, %45, %cst_29 [2] : vector<8x8x8xf32> to vector<8x8xf32>
    %47 = vector.shape_cast %46 : vector<8x8xf32> to vector<8x8x1xf32>
    %48 = vector.broadcast %47 : vector<8x8x1xf32> to vector<8x8x8xf32>
    %49 = arith.subf %45, %48 : vector<8x8x8xf32>
    %50 = math.exp %49 : vector<8x8x8xf32>
    %cst_30 = arith.constant dense<0.000000e+00> : vector<8x8xf32>
    %51 = vector.multi_reduction <add>, %50, %cst_30 [2] : vector<8x8x8xf32> to vector<8x8xf32>
    %52 = vector.shape_cast %51 : vector<8x8xf32> to vector<8x8x1xf32>
    %53 = tpu.reciprocal %52 {approx = true} : vector<8x8x1xf32> -> vector<8x8x1xf32>
    %54 = vector.broadcast %53 : vector<8x8x1xf32> to vector<8x8x8xf32>
    %55 = arith.mulf %50, %54 : vector<8x8x8xf32>
    %56 = arith.truncf %55 : vector<8x8x8xf32> to vector<8x8x8xbf16>
    %57 = arith.truncf %37 : vector<8x8x4xf32> to vector<8x8x4xbf16>
    "tpu.trace_start"() <{level = 10 : i32, message = "hnm,hmk->hnk"}> : () -> ()
    %cst_31 = arith.constant dense<0.000000e+00> : vector<8x8x4xf32>
    %58 = tpu.matmul %56, %57, %cst_31 {dimension_numbers = #tpu.dot_dimension_numbers<[2], [1], [1], [2], [0, 0, 0, 1, 1, 2], [0], [0]>} : vector<8x8x8xbf16>, vector<8x8x4xbf16>, vector<8x8x4xf32> -> vector<8x8x4xf32>
    "tpu.trace_stop"() : () -> ()
    %c0_32 = arith.constant 0 : index
    %c0_33 = arith.constant 0 : index
    %c0_34 = arith.constant 0 : index
    %59 = vector.load %arg4[%c0_32, %c0_33, %c0_34] : memref<8x4x32xbf16, #tpu.memory_space<vmem>>, vector<8x4x32xbf16>
    %c0_35 = arith.constant 0 : index
    %c0_36 = arith.constant 0 : index
    %60 = vector.load %arg5[%c0_35, %c0_36] : memref<1x32xf32, #tpu.memory_space<vmem>>, vector<1x32xf32>
    %61 = arith.truncf %58 : vector<8x8x4xf32> to vector<8x8x4xbf16>
    "tpu.trace_start"() <{level = 10 : i32, message = "hnk,hkd->hnd"}> : () -> ()
    %cst_37 = arith.constant dense<0.000000e+00> : vector<8x8x32xf32>
    %62 = tpu.matmul %61, %59, %cst_37 {dimension_numbers = #tpu.dot_dimension_numbers<[2], [1], [1], [2], [0, 0, 0, 1, 1, 2], [0], [0]>} : vector<8x8x4xbf16>, vector<8x4x32xbf16>, vector<8x8x32xf32> -> vector<8x8x32xf32>
    "tpu.trace_stop"() : () -> ()
    %63 = vector.extract_strided_slice %62 {offsets = [0, 0, 0], sizes = [1, 8, 32], strides = [1, 1, 1]} : vector<8x8x32xf32> to vector<1x8x32xf32>
    %64 = vector.shape_cast %63 : vector<1x8x32xf32> to vector<8x32xf32>
    %65 = vector.extract_strided_slice %62 {offsets = [1, 0, 0], sizes = [1, 8, 32], strides = [1, 1, 1]} : vector<8x8x32xf32> to vector<1x8x32xf32>
    %66 = vector.shape_cast %65 : vector<1x8x32xf32> to vector<8x32xf32>
    %67 = arith.addf %64, %66 : vector<8x32xf32>
    %68 = vector.extract_strided_slice %62 {offsets = [2, 0, 0], sizes = [1, 8, 32], strides = [1, 1, 1]} : vector<8x8x32xf32> to vector<1x8x32xf32>
    %69 = vector.shape_cast %68 : vector<1x8x32xf32> to vector<8x32xf32>
    %70 = arith.addf %67, %69 : vector<8x32xf32>
    %71 = vector.extract_strided_slice %62 {offsets = [3, 0, 0], sizes = [1, 8, 32], strides = [1, 1, 1]} : vector<8x8x32xf32> to vector<1x8x32xf32>
    %72 = vector.shape_cast %71 : vector<1x8x32xf32> to vector<8x32xf32>
    %73 = arith.addf %70, %72 : vector<8x32xf32>
    %74 = vector.extract_strided_slice %62 {offsets = [4, 0, 0], sizes = [1, 8, 32], strides = [1, 1, 1]} : vector<8x8x32xf32> to vector<1x8x32xf32>
    %75 = vector.shape_cast %74 : vector<1x8x32xf32> to vector<8x32xf32>
    %76 = arith.addf %73, %75 : vector<8x32xf32>
    %77 = vector.extract_strided_slice %62 {offsets = [5, 0, 0], sizes = [1, 8, 32], strides = [1, 1, 1]} : vector<8x8x32xf32> to vector<1x8x32xf32>
    %78 = vector.shape_cast %77 : vector<1x8x32xf32> to vector<8x32xf32>
    %79 = arith.addf %76, %78 : vector<8x32xf32>
    %80 = vector.extract_strided_slice %62 {offsets = [6, 0, 0], sizes = [1, 8, 32], strides = [1, 1, 1]} : vector<8x8x32xf32> to vector<1x8x32xf32>
    %81 = vector.shape_cast %80 : vector<1x8x32xf32> to vector<8x32xf32>
    %82 = arith.addf %79, %81 : vector<8x32xf32>
    %83 = vector.extract_strided_slice %62 {offsets = [7, 0, 0], sizes = [1, 8, 32], strides = [1, 1, 1]} : vector<8x8x32xf32> to vector<1x8x32xf32>
    %84 = vector.shape_cast %83 : vector<1x8x32xf32> to vector<8x32xf32>
    %85 = arith.addf %82, %84 : vector<8x32xf32>
    %86 = vector.broadcast %60 : vector<1x32xf32> to vector<8x32xf32>
    %87 = arith.addf %85, %86 : vector<8x32xf32>
    %88 = arith.addf %1, %87 : vector<8x32xf32>
    %c0_38 = arith.constant 0 : index
    %c0_39 = arith.constant 0 : index
    %c0_40 = arith.constant 0 : index
    %89 = vector.load %arg8[%c0_38, %c0_39, %c0_40] : memref<1x8x32xf32, #tpu.memory_space<vmem>>, vector<1x8x32xf32>
    %90 = vector.shape_cast %89 : vector<1x8x32xf32> to vector<8x32xf32>
    %91 = vector.shape_cast %88 : vector<8x32xf32> to vector<1x8x32xf32>
    tpu.vector_store %arg8[%c0_38, %c0_39, %c0_40], %91 {strides = array<i32>} : memref<1x8x32xf32, #tpu.memory_space<vmem>>, vector<1x8x32xf32>,
    return
  }
  func.func @transform_0(%arg0: i32) -> (i32, i32, i32) {
    %c0_i32 = arith.constant 0 : i32
    %c0_i32_0 = arith.constant 0 : i32
    %c0_i32_1 = arith.constant 0 : i32
    return %arg0, %c0_i32, %c0_i32_0 : i32, i32, i32
  }
  func.func @transform_1(%arg0: i32) -> (i32, i32, i32, i32) {
    %c0_i32 = arith.constant 0 : i32
    %c0_i32_0 = arith.constant 0 : i32
    %c0_i32_1 = arith.constant 0 : i32
    %c0_i32_2 = arith.constant 0 : i32
    return %arg0, %c0_i32, %c0_i32_0, %c0_i32_1 : i32, i32, i32, i32
  }
  func.func @transform_2(%arg0: i32) -> (i32, i32, i32, i32) {
    %c0_i32 = arith.constant 0 : i32
    %c0_i32_0 = arith.constant 0 : i32
    %c0_i32_1 = arith.constant 0 : i32
    %c0_i32_2 = arith.constant 0 : i32
    %c0_i32_3 = arith.constant 0 : i32
    return %c0_i32, %c0_i32_0, %c0_i32_1, %c0_i32_2 : i32, i32, i32, i32
  }
  func.func @transform_3(%arg0: i32) -> (i32, i32, i32) {
    %c0_i32 = arith.constant 0 : i32
    %c0_i32_0 = arith.constant 0 : i32
    %c0_i32_1 = arith.constant 0 : i32
    %c0_i32_2 = arith.constant 0 : i32
    return %c0_i32, %c0_i32_0, %c0_i32_1 : i32, i32, i32
  }
  func.func @transform_4(%arg0: i32) -> (i32, i32) {
    %c0_i32 = arith.constant 0 : i32
    %c0_i32_0 = arith.constant 0 : i32
    %c0_i32_1 = arith.constant 0 : i32
    return %c0_i32, %c0_i32_0 : i32, i32
  }
  func.func @transform_5(%arg0: i32) -> (i32, i32) {
    %c0_i32 = arith.constant 0 : i32
    %c0_i32_0 = arith.constant 0 : i32
    %c0_i32_1 = arith.constant 0 : i32
    return %c0_i32, %c0_i32_0 : i32, i32
  }
  func.func @transform_6(%arg0: i32) -> (i32, i32) {
    %c0_i32 = arith.constant 0 : i32
    %c0_i32_0 = arith.constant 0 : i32
    %c0_i32_1 = arith.constant 0 : i32
    return %c0_i32, %c0_i32_0 : i32, i32
  }
  func.func @transform_7(%arg0: i32) -> (i32, i32, i32) {
    %c0_i32 = arith.constant 0 : i32
    %c0_i32_0 = arith.constant 0 : i32
    %c0_i32_1 = arith.constant 0 : i32
    return %arg0, %c0_i32, %c0_i32_0 : i32, i32, i32
  }
}

module attributes {stable_mosaic.version = 11 : i64} {
  func.func @_ffn_kernel(%arg0: i32, %arg1: memref<1x8x32xf32, #tpu.memory_space<vmem>>, %arg2: memref<32x128xbf16, #tpu.memory_space<vmem>>, %arg3: memref<1x128xf32, #tpu.memory_space<vmem>>, %arg4: memref<128x32xbf16, #tpu.memory_space<vmem>>, %arg5: memref<1x32xf32, #tpu.memory_space<vmem>>, %arg6: memref<1x32xf32, #tpu.memory_space<vmem>>, %arg7: memref<1x32xf32, #tpu.memory_space<vmem>>, %arg8: memref<1x8x32xf32, #tpu.memory_space<vmem>>) attributes {dimension_semantics = [#tpu.dimension_semantics<parallel>], iteration_bounds = array<i64: 2>, scalar_prefetch = 0 : i64, scratch_operands = 0 : i64, tpu.core_type = #tpu.core_type<tc>, window_params = [{transform_indices = @transform_0, window_bounds = array<i64: 1, 8, 32>}, {pipeline_mode = #tpu.pipeline_mode<synchronous>, transform_indices = @transform_1, window_bounds = array<i64: 32, 128>}, {pipeline_mode = #tpu.pipeline_mode<synchronous>, transform_indices = @transform_2, window_bounds = array<i64: 1, 128>}, {pipeline_mode = #tpu.pipeline_mode<synchronous>, transform_indices = @transform_3, window_bounds = array<i64: 128, 32>}, {pipeline_mode = #tpu.pipeline_mode<synchronous>, transform_indices = @transform_4, window_bounds = array<i64: 1, 32>}, {pipeline_mode = #tpu.pipeline_mode<synchronous>, transform_indices = @transform_5, window_bounds = array<i64: 1, 32>}, {pipeline_mode = #tpu.pipeline_mode<synchronous>, transform_indices = @transform_6, window_bounds = array<i64: 1, 32>}, {transform_indices = @transform_7, window_bounds = array<i64: 1, 8, 32>}]} {
    %c0 = arith.constant 0 : index
    %c0_0 = arith.constant 0 : index
    %c0_1 = arith.constant 0 : index
    %0 = vector.load %arg1[%c0, %c0_0, %c0_1] : memref<1x8x32xf32, #tpu.memory_space<vmem>>, vector<1x8x32xf32>
    %1 = vector.shape_cast %0 : vector<1x8x32xf32> to vector<8x32xf32>
    %c0_2 = arith.constant 0 : index
    %c0_3 = arith.constant 0 : index
    %2 = vector.load %arg6[%c0_2, %c0_3] : memref<1x32xf32, #tpu.memory_space<vmem>>, vector<1x32xf32>
    %c0_4 = arith.constant 0 : index
    %c0_5 = arith.constant 0 : index
    %3 = vector.load %arg7[%c0_4, %c0_5] : memref<1x32xf32, #tpu.memory_space<vmem>>, vector<1x32xf32>
    %cst = arith.constant dense<0.000000e+00> : vector<8xf32>
    %4 = vector.multi_reduction <add>, %1, %cst [1] : vector<8x32xf32> to vector<8xf32>
    %5 = vector.shape_cast %4 : vector<8xf32> to vector<8x1xf32>
    %cst_6 = arith.constant 3.200000e+01 : f32
    %6 = vector.broadcast %cst_6 : f32 to vector<8x1xf32>
    %7 = arith.divf %5, %6 : vector<8x1xf32>
    %8 = vector.broadcast %7 : vector<8x1xf32> to vector<8x32xf32>
    %9 = arith.subf %1, %8 : vector<8x32xf32>
    %10 = arith.mulf %9, %9 : vector<8x32xf32>
    %cst_7 = arith.constant dense<0.000000e+00> : vector<8xf32>
    %11 = vector.multi_reduction <add>, %10, %cst_7 [1] : vector<8x32xf32> to vector<8xf32>
    %12 = vector.shape_cast %11 : vector<8xf32> to vector<8x1xf32>
    %cst_8 = arith.constant 3.200000e+01 : f32
    %13 = vector.broadcast %cst_8 : f32 to vector<8x1xf32>
    %14 = arith.divf %12, %13 : vector<8x1xf32>
    %15 = vector.broadcast %7 : vector<8x1xf32> to vector<8x32xf32>
    %16 = arith.subf %1, %15 : vector<8x32xf32>
    %cst_9 = arith.constant 9.99999974E-6 : f32
    %17 = vector.broadcast %cst_9 : f32 to vector<8x1xf32>
    %18 = arith.addf %14, %17 : vector<8x1xf32>
    %19 = math.rsqrt %18 : vector<8x1xf32>
    %20 = vector.broadcast %19 : vector<8x1xf32> to vector<8x32xf32>
    %21 = arith.mulf %16, %20 : vector<8x32xf32>
    %22 = vector.broadcast %2 : vector<1x32xf32> to vector<8x32xf32>
    %23 = arith.mulf %21, %22 : vector<8x32xf32>
    %24 = vector.broadcast %3 : vector<1x32xf32> to vector<8x32xf32>
    %25 = arith.addf %23, %24 : vector<8x32xf32>
    %26 = arith.truncf %25 : vector<8x32xf32> to vector<8x32xbf16>
    %c0_10 = arith.constant 0 : index
    %c0_11 = arith.constant 0 : index
    %27 = vector.load %arg2[%c0_10, %c0_11] : memref<32x128xbf16, #tpu.memory_space<vmem>>, vector<32x128xbf16>
    %cst_12 = arith.constant dense<0.000000e+00> : vector<8x128xf32>
    %28 = tpu.matmul %26, %27, %cst_12 {dimension_numbers = #tpu.dot_dimension_numbers<[1], [0], [0], [1], [0, 0, 1, 1], [], []>} : vector<8x32xbf16>, vector<32x128xbf16>, vector<8x128xf32> -> vector<8x128xf32>
    %c0_13 = arith.constant 0 : index
    %c0_14 = arith.constant 0 : index
    %29 = vector.load %arg3[%c0_13, %c0_14] : memref<1x128xf32, #tpu.memory_space<vmem>>, vector<1x128xf32>
    %30 = vector.broadcast %29 : vector<1x128xf32> to vector<8x128xf32>
    %31 = arith.addf %28, %30 : vector<8x128xf32>
    %32 = arith.mulf %31, %31 : vector<8x128xf32>
    %33 = arith.mulf %31, %32 : vector<8x128xf32>
    %cst_15 = arith.constant 4.471500e-02 : f32
    %34 = vector.broadcast %cst_15 : f32 to vector<8x128xf32>
    %35 = arith.mulf %34, %33 : vector<8x128xf32>
    %36 = arith.addf %31, %35 : vector<8x128xf32>
    %cst_16 = arith.constant 0.797884583 : f32
    %37 = vector.broadcast %cst_16 : f32 to vector<8x128xf32>
    %38 = arith.mulf %37, %36 : vector<8x128xf32>
    %39 = math.tanh %38 : vector<8x128xf32>
    %cst_17 = arith.constant 1.000000e+00 : f32
    %40 = vector.broadcast %cst_17 : f32 to vector<8x128xf32>
    %41 = arith.addf %40, %39 : vector<8x128xf32>
    %cst_18 = arith.constant 5.000000e-01 : f32
    %42 = vector.broadcast %cst_18 : f32 to vector<8x128xf32>
    %43 = arith.mulf %42, %41 : vector<8x128xf32>
    %44 = arith.mulf %31, %43 : vector<8x128xf32>
    %45 = arith.truncf %44 : vector<8x128xf32> to vector<8x128xbf16>
    %c0_19 = arith.constant 0 : index
    %c0_20 = arith.constant 0 : index
    %46 = vector.load %arg4[%c0_19, %c0_20] : memref<128x32xbf16, #tpu.memory_space<vmem>>, vector<128x32xbf16>
    %cst_21 = arith.constant dense<0.000000e+00> : vector<8x32xf32>
    %47 = tpu.matmul %45, %46, %cst_21 {dimension_numbers = #tpu.dot_dimension_numbers<[1], [0], [0], [1], [0, 0, 1, 1], [], []>} : vector<8x128xbf16>, vector<128x32xbf16>, vector<8x32xf32> -> vector<8x32xf32>
    %c0_22 = arith.constant 0 : index
    %c0_23 = arith.constant 0 : index
    %48 = vector.load %arg5[%c0_22, %c0_23] : memref<1x32xf32, #tpu.memory_space<vmem>>, vector<1x32xf32>
    %49 = vector.broadcast %48 : vector<1x32xf32> to vector<8x32xf32>
    %50 = arith.addf %47, %49 : vector<8x32xf32>
    %51 = arith.addf %1, %50 : vector<8x32xf32>
    %c0_24 = arith.constant 0 : index
    %c0_25 = arith.constant 0 : index
    %c0_26 = arith.constant 0 : index
    %52 = vector.load %arg8[%c0_24, %c0_25, %c0_26] : memref<1x8x32xf32, #tpu.memory_space<vmem>>, vector<1x8x32xf32>
    %53 = vector.shape_cast %52 : vector<1x8x32xf32> to vector<8x32xf32>
    %54 = vector.shape_cast %51 : vector<8x32xf32> to vector<1x8x32xf32>
    tpu.vector_store %arg8[%c0_24, %c0_25, %c0_26], %54 {strides = array<i32>} : memref<1x8x32xf32, #tpu.memory_space<vmem>>, vector<1x8x32xf32>,
    return
  }
  func.func @transform_0(%arg0: i32) -> (i32, i32, i32) {
    %c0_i32 = arith.constant 0 : i32
    %c0_i32_0 = arith.constant 0 : i32
    %c0_i32_1 = arith.constant 0 : i32
    return %arg0, %c0_i32, %c0_i32_0 : i32, i32, i32
  }
  func.func @transform_1(%arg0: i32) -> (i32, i32) {
    %c0_i32 = arith.constant 0 : i32
    %c0_i32_0 = arith.constant 0 : i32
    %c0_i32_1 = arith.constant 0 : i32
    return %c0_i32, %c0_i32_0 : i32, i32
  }
  func.func @transform_2(%arg0: i32) -> (i32, i32) {
    %c0_i32 = arith.constant 0 : i32
    %c0_i32_0 = arith.constant 0 : i32
    %c0_i32_1 = arith.constant 0 : i32
    return %c0_i32, %c0_i32_0 : i32, i32
  }
  func.func @transform_3(%arg0: i32) -> (i32, i32) {
    %c0_i32 = arith.constant 0 : i32
    %c0_i32_0 = arith.constant 0 : i32
    %c0_i32_1 = arith.constant 0 : i32
    return %c0_i32, %c0_i32_0 : i32, i32
  }
  func.func @transform_4(%arg0: i32) -> (i32, i32) {
    %c0_i32 = arith.constant 0 : i32
    %c0_i32_0 = arith.constant 0 : i32
    %c0_i32_1 = arith.constant 0 : i32
    return %c0_i32, %c0_i32_0 : i32, i32
  }
  func.func @transform_5(%arg0: i32) -> (i32, i32) {
    %c0_i32 = arith.constant 0 : i32
    %c0_i32_0 = arith.constant 0 : i32
    %c0_i32_1 = arith.constant 0 : i32
    return %c0_i32, %c0_i32_0 : i32, i32
  }
  func.func @transform_6(%arg0: i32) -> (i32, i32) {
    %c0_i32 = arith.constant 0 : i32
    %c0_i32_0 = arith.constant 0 : i32
    %c0_i32_1 = arith.constant 0 : i32
    return %c0_i32, %c0_i32_0 : i32, i32
  }
  func.func @transform_7(%arg0: i32) -> (i32, i32, i32) {
    %c0_i32 = arith.constant 0 : i32
    %c0_i32_0 = arith.constant 0 : i32
    %c0_i32_1 = arith.constant 0 : i32
    return %arg0, %c0_i32, %c0_i32_0 : i32, i32, i32
  }
}

module attributes {stable_mosaic.version = 11 : i64} {
  func.func @_layernorm_kernel(%arg0: i32, %arg1: memref<1x8x32xf32, #tpu.memory_space<vmem>>, %arg2: memref<1x32xf32, #tpu.memory_space<vmem>>, %arg3: memref<1x32xf32, #tpu.memory_space<vmem>>, %arg4: memref<1x8x32xf32, #tpu.memory_space<vmem>>) attributes {dimension_semantics = [#tpu.dimension_semantics<parallel>], iteration_bounds = array<i64: 2>, scalar_prefetch = 0 : i64, scratch_operands = 0 : i64, tpu.core_type = #tpu.core_type<tc>, window_params = [{transform_indices = @transform_0, window_bounds = array<i64: 1, 8, 32>}, {pipeline_mode = #tpu.pipeline_mode<synchronous>, transform_indices = @transform_1, window_bounds = array<i64: 1, 32>}, {pipeline_mode = #tpu.pipeline_mode<synchronous>, transform_indices = @transform_2, window_bounds = array<i64: 1, 32>}, {transform_indices = @transform_3, window_bounds = array<i64: 1, 8, 32>}]} {
    %c0 = arith.constant 0 : index
    %c0_0 = arith.constant 0 : index
    %c0_1 = arith.constant 0 : index
    %0 = vector.load %arg1[%c0, %c0_0, %c0_1] : memref<1x8x32xf32, #tpu.memory_space<vmem>>, vector<1x8x32xf32>
    %1 = vector.shape_cast %0 : vector<1x8x32xf32> to vector<8x32xf32>
    %c0_2 = arith.constant 0 : index
    %c0_3 = arith.constant 0 : index
    %2 = vector.load %arg2[%c0_2, %c0_3] : memref<1x32xf32, #tpu.memory_space<vmem>>, vector<1x32xf32>
    %c0_4 = arith.constant 0 : index
    %c0_5 = arith.constant 0 : index
    %3 = vector.load %arg3[%c0_4, %c0_5] : memref<1x32xf32, #tpu.memory_space<vmem>>, vector<1x32xf32>
    %cst = arith.constant dense<0.000000e+00> : vector<8xf32>
    %4 = vector.multi_reduction <add>, %1, %cst [1] : vector<8x32xf32> to vector<8xf32>
    %5 = vector.shape_cast %4 : vector<8xf32> to vector<8x1xf32>
    %cst_6 = arith.constant 3.200000e+01 : f32
    %6 = vector.broadcast %cst_6 : f32 to vector<8x1xf32>
    %7 = arith.divf %5, %6 : vector<8x1xf32>
    %8 = vector.broadcast %7 : vector<8x1xf32> to vector<8x32xf32>
    %9 = arith.subf %1, %8 : vector<8x32xf32>
    %10 = arith.mulf %9, %9 : vector<8x32xf32>
    %cst_7 = arith.constant dense<0.000000e+00> : vector<8xf32>
    %11 = vector.multi_reduction <add>, %10, %cst_7 [1] : vector<8x32xf32> to vector<8xf32>
    %12 = vector.shape_cast %11 : vector<8xf32> to vector<8x1xf32>
    %cst_8 = arith.constant 3.200000e+01 : f32
    %13 = vector.broadcast %cst_8 : f32 to vector<8x1xf32>
    %14 = arith.divf %12, %13 : vector<8x1xf32>
    %15 = vector.broadcast %7 : vector<8x1xf32> to vector<8x32xf32>
    %16 = arith.subf %1, %15 : vector<8x32xf32>
    %cst_9 = arith.constant 9.99999974E-6 : f32
    %17 = vector.broadcast %cst_9 : f32 to vector<8x1xf32>
    %18 = arith.addf %14, %17 : vector<8x1xf32>
    %19 = math.rsqrt %18 : vector<8x1xf32>
    %20 = vector.broadcast %19 : vector<8x1xf32> to vector<8x32xf32>
    %21 = arith.mulf %16, %20 : vector<8x32xf32>
    %22 = vector.broadcast %2 : vector<1x32xf32> to vector<8x32xf32>
    %23 = arith.mulf %21, %22 : vector<8x32xf32>
    %24 = vector.broadcast %3 : vector<1x32xf32> to vector<8x32xf32>
    %25 = arith.addf %23, %24 : vector<8x32xf32>
    %c0_10 = arith.constant 0 : index
    %c0_11 = arith.constant 0 : index
    %c0_12 = arith.constant 0 : index
    %26 = vector.load %arg4[%c0_10, %c0_11, %c0_12] : memref<1x8x32xf32, #tpu.memory_space<vmem>>, vector<1x8x32xf32>
    %27 = vector.shape_cast %26 : vector<1x8x32xf32> to vector<8x32xf32>
    %28 = vector.shape_cast %25 : vector<8x32xf32> to vector<1x8x32xf32>
    tpu.vector_store %arg4[%c0_10, %c0_11, %c0_12], %28 {strides = array<i32>} : memref<1x8x32xf32, #tpu.memory_space<vmem>>, vector<1x8x32xf32>,
    return
  }
  func.func @transform_0(%arg0: i32) -> (i32, i32, i32) {
    %c0_i32 = arith.constant 0 : i32
    %c0_i32_0 = arith.constant 0 : i32
    %c0_i32_1 = arith.constant 0 : i32
    return %arg0, %c0_i32, %c0_i32_0 : i32, i32, i32
  }
  func.func @transform_1(%arg0: i32) -> (i32, i32) {
    %c0_i32 = arith.constant 0 : i32
    %c0_i32_0 = arith.constant 0 : i32
    %c0_i32_1 = arith.constant 0 : i32
    return %c0_i32, %c0_i32_0 : i32, i32
  }
  func.func @transform_2(%arg0: i32) -> (i32, i32) {
    %c0_i32 = arith.constant 0 : i32
    %c0_i32_0 = arith.constant 0 : i32
    %c0_i32_1 = arith.constant 0 : i32
    return %c0_i32, %c0_i32_0 : i32, i32
  }
  func.func @transform_3(%arg0: i32) -> (i32, i32, i32) {
    %c0_i32 = arith.constant 0 : i32
    %c0_i32_0 = arith.constant 0 : i32
    %c0_i32_1 = arith.constant 0 : i32
    return %arg0, %c0_i32, %c0_i32_0 : i32, i32, i32
  }
}

</mosaic_0001>

<bundles_post_ra>
// kernel: transformer_forward.13
= control target key start
LH: loop header
LB: loop body
LE: loop exit
PB: predicated region body
PF: predicated region fallthrough
CT: control target
= control target key end

     0   :  { %8 = vsyncpa [#allocation3], 0  ;;  %s518_s0 = inlined_call_operand.vmem [shape: f32[2,8,32], index: 0, kind: input, shape index: {}]   ;;  %s519_s1 = inlined_call_operand.vmem [shape: f32[1,32], index: 1, kind: input, shape index: {}]   ;;  %s520_s2 = inlined_call_operand.vmem [shape: f32[1,32], index: 2, kind: input, shape index: {}]   ;;  %s521_s3 = inlined_call_operand.hbm [shape: f32[2,8,32], index: 3, kind: output, shape index: {}]  }
   0x1   :  { %10 = vsyncpa [#allocation3 + $0x1], 0  ;;  %s424_s12 = smov 0   ;;  %s426_s13 = smov 0  }
   0x2   :  { %s428_s14 = smov 0   ;;  %s430_s15 = smov 0  }
   0x3 LB: > { %s445_s16 = sadd.s32 4294967295, %s401_s15   ;;  %s283_s17 = sadd.s32 4294967294, %s401_s15   ;;  %s401_s15 = sphi %s430_s15, %s527_s15   ;;  %s397_s14 = sphi %s428_s14, %s526_s14   ;;  %s393_s13 = sphi %s426_s13, %s525_s13   ;;  %s389_s12 = sphi %s424_s12, %s524_s12  }
   0x4   : > { %s449_s18 = sadd.s32 1, %s401_s15   ;;  %s91_s19 = sadd.s32 1, %s397_s14 }
   0x5   : > { %s88_s20 = ssub.s32 %s401_s15, %s449_s18  ;;  %p101_p0 = scmp.ne.s32.totalorder %s397_s14, %s393_s13 }
   0x6   : > { %p89_p1 = scmp.eq.s32.totalorder %s88_s20, 0  ;;  %p102_p2 = scmp.eq.s32.totalorder %s445_s16, 1 }
   0x7   : > { %p107_p3 = scmp.ne.s32.totalorder %s393_s13, %s389_s12  ;;  %p108_p4 = scmp.eq.s32.totalorder %s283_s17, 1 }
   0x8   : > { %s460_s21 = scalar_select %p89_p1, %s397_s14, %s91_s19  }
   0x9   : > { %p462_p5 = por %p102_p2, %p101_p0  ;;  %p466_p6 = por %p108_p4, %p107_p3 }
   0xa   : > { %p286_p7 = scmp.ge.s32.totalorder %s401_s15, 1  ;;  %p139_p8 = scmp.lt.s32.totalorder %s401_s15, 3 }
   0xc   : > { %p140_p9 = pnand %p286_p7, %p139_p8 }
   0xd   : > { %p162_p10 = scmp.lt.s32.totalorder (!%p140_p9), %s445_s16, 1  ;;  %s159_s29 = sand.u32 (!%p140_p9), 1, %s393_s13  }
   0xe   : > { %143 = sbr.rel (%p140_p9) target bundleno = 295 (0x127), region = 32  ;;  %s287_s30 = sshll.u32 (!%p140_p9), %s159_s29, 3 }
   0xf   : > { %s290_s4 = sshll.u32 (!%p140_p9), %s445_s16, 3  ;;  %s161_s17 = scalar_lea.vmem (!%p140_p9), [#allocation2], %s287_s30 }
  0x10   : > { %s219_s9 = scalar_lea.hbm (!%p140_p9), %s521_s3, %s290_s4  ;;  %s209_s20 = scalar_lea.sflag (!%p140_p9), [#allocation3], %s159_s29 }
  0x11   : > { %s223_s19 = sshll.u32 (!%p140_p9), %s219_s9, 4  ;;  %s224_s19 = int_to_ptr.hbm [resolvable:$true] %s223_s19 }
  0x13   : > { %s163_s24 = scalar_select %p162_p10, %s445_s16, 1  ;;  %vm169_vm0 = vcmask 261120   ;;  %v403_v2 = vmov 32.0   ;;  %v333_v23 = vld [vmem:[%s519_s1] ss:$0 sm:$0xff] }
  0x14   : > { %335 = vrcp.f32 %v403_v2  ;;  %v334_v26 = vld [vmem:[%s520_s2] ss:$0 sm:$0xff]  ;;  %s221_s16 = sshll.u32 %s161_s17, 4  ;;  %s222_s16 = int_to_ptr.vmem [resolvable:$true] %s221_s16 }
  0x15   : > { %s288_s25 = sshll.u32 %s163_s24, 3  ;;  %s353_s24 = sshra.s32 %s224_s19, 4  ;;  %s354_s24 = int_to_ptr.hbm [resolvable:$true] %s353_s24 }
  0x16   : > { %s165_s28 = scalar_lea.vmem %s518_s0, %s288_s25  ;;  %s355_s25 = scalar_lea.hbm %s354_s24, 8 }
  0x17   : > { %v166_v0 = vld [vmem:[%s165_s28] sm:$0xff]  ;;  %p356_p11 = scmp.ne.s32.totalorder %s354_s24, %s355_s25  ;;  %s359_s28 = scalar_lea.hbm %s521_s3, 16 }
  0x18   : > { %v170_v1 = vsel %vm169_vm0, %v166_v0, 0.0  ;;  %p360_p0 = scmp.lt.s32.totalorder %s354_s24, %s521_s3  ;;  %p361_p1 = scmp.lt.s32.totalorder %s359_s28, %s355_s25 }
  0x19   : > { %171 = vadd.xlane.f32.xlu0 %v170_v1  ;;  %p357_p12 = pnand %p356_p11, %p462_p5 }
  0x1a   : > { %v336_v3 = vpop.eup %335  ;;  %p362_p2 = por %p361_p1, %p360_p0 }
  0x1b   : > { %v174_v4 = vmul.f32 32.0, %v336_v3  ;;  %vm178_vm1 = vweird.f32 %v336_v3  ;;  %p358_p13 = pneg %p357_p12 }
  0x1d   : > { %v175_v5 = vsub.f32 1.0, %v174_v4  ;;  %p363_p3 = pnand %p362_p2, %p358_p13 }
  0x1f   : > { %v176_v6 = vmul.f32 %v336_v3, %v175_v5 }
  0x21   : > { %v177_v7 = vadd.f32 %v336_v3, %v176_v6 }
  0x23   : > { %v179_v8 = vsel %vm178_vm1, %v336_v3, %v177_v7 }
  0x8c   : > { %v172_v9 = vpop.xlane.xlu0 %171 }
  0x8d   : > { %v180_v10 = vmul.f32 %v179_v8, %v172_v9 }
  0x8f   : > { %v181_v11 = vsub.f32 %v166_v0, %v180_v10 }
  0x91   : > { %v182_v12 = vmul.f32 %v181_v11, %v181_v11 }
  0x93   : > { %v183_v13 = vsel %vm169_vm0, %v182_v12, 0.0 }
  0x94   : > { %184 = vadd.xlane.f32.xlu0 %v183_v13 }
 0x107   : > { %v185_v14 = vpop.xlane.xlu0 %184 }
 0x108   : > { %v186_v15 = vmul.f32 %v185_v14, %v179_v8 }
 0x10a   : > { %v187_v16 = vadd.f32 1e-05, %v186_v15 }
 0x10c   : > { %337 = vrsqrt.f32 %v187_v16  ;;  %vm194_vm3 = vweird.f32 %v187_v16 }
 0x112   : > { %v338_v17 = vpop.eup %337 }
 0x113   : > { %v189_v18 = vmul.f32 %v338_v17, %v187_v16  ;;  %vm195_vm2 = vweird.f32 %v338_v17 }
 0x114   : > { %vm196_vm4 = vmor %vm194_vm3, %vm195_vm2 }
 0x115   : > { %v190_v19 = vmul.f32 %v338_v17, %v189_v18 }
 0x117   : > { %v191_v20 = vmul.f32 0.5, %v190_v19 }
 0x119   : > { %v192_v21 = vsub.f32 1.5, %v191_v20 }
 0x11b   : > { %v193_v22 = vmul.f32 %v338_v17, %v192_v21 }
 0x11d   : > { %v197_v24 = vsel %vm196_vm4, %v338_v17, %v193_v22 }
 0x11e   : > { %v198_v25 = vmul.f32 %v197_v24, %v181_v11 }
 0x120   : > { %v202_v27 = vmul.f32 %v333_v23, %v198_v25 }
 0x122   : > { %v206_v28 = vadd.f32 %v334_v26, %v202_v27 }
 0x124   : > { %207 = vst.msk [vmem:[%s161_s17] sm:$0xff] %vm169_vm0, %v206_v28 }
 0x125   : > { %366 = shalt.err (!%p363_p3)
}
 0x126   : > { %293 = dma.vmem_to_hbm [thread:$0]  (%p462_p5), %s222_s16, 128, %s224_s19, %s209_s20  }
 0x127 PF: > { %p299_p4 = scmp.ge.s32.totalorder %s401_s15, 2  ;;  %s235_s29 = sand.u32 1, %s389_s12  }
 0x128   : > { %s236_s5 = scalar_lea.sflag [#allocation3], %s235_s29 }
 0x129   : > { %p296_p7 = pnand %p299_p4, %p466_p6 }
 0x12b   : > { %p297_p8 = pneg %p296_p7 }
 0x12d   : > { %384 = dma.done.wait (%p297_p8), %s236_s5, 128  }
 0x12e   : > { %386 = vsyncadd (%p297_p8), %s236_s5, 4294967168  ;;  %p13_p9 = scmp.ge.s32.totalorder %s449_s18, 4   ;;  %s524_s12 = smov %s393_s13 }
 0x12f   : > { %s525_s13 = smov %s397_s14  ;;  %s526_s14 = smov %s460_s21 }
 0x130   : > { %s527_s15 = smov %s449_s18  ;;  %15 = sbr.rel (!%p13_p9) target bundleno = 3 (0x3), region = 67 }
 0x135   :  { %242 = vsyncpa [#allocation3], 1 }
 0x136   :  { %244 = vsyncpa [#allocation3 + $0x1], 1 }

// kernel: transformer_forward.9
= control target key start
LH: loop header
LB: loop body
LE: loop exit
PB: predicated region body
PF: predicated region fallthrough
CT: control target
= control target key end

     0   :  { %s627_s24 = smov 0   ;;  %s702_s0 = inlined_call_operand.vmem [shape: f32[2,8,32], index: 0, kind: input, shape index: {}]   ;;  %s703_s1 = inlined_call_operand.vmem [shape: bf16[32,128], index: 1, kind: input, shape index: {}]   ;;  %s704_s2 = inlined_call_operand.vmem [shape: f32[1,128], index: 2, kind: input, shape index: {}]   ;;  %s705_s3 = inlined_call_operand.vmem [shape: bf16[128,32], index: 3, kind: input, shape index: {}]   ;;  %s706_s4 = inlined_call_operand.vmem [shape: f32[1,32], index: 4, kind: input, shape index: {}]   ;;  %s707_s5 = inlined_call_operand.vmem [shape: f32[1,32], index: 5, kind: input, shape index: {}]   ;;  %s708_s6 = inlined_call_operand.vmem [shape: f32[1,32], index: 6, kind: input, shape index: {}]   ;;  %s709_s7 = inlined_call_operand.vmem [shape: f32[2,8,32], index: 7, kind: output, shape index: {}]  }
   0x1 LB: > { %s499_s25 = sadd.s32 4294967295, %s584_s24   ;;  %p503_p0 = scmp.ge.s32.totalorder %s584_s24, 1  ;;  %s584_s24 = sphi %s627_s24, %s17_s24  }
   0x2   : > { %p236_p1 = scmp.lt.s32.totalorder %s584_s24, 3 }
   0x4   : > { %p237_p2 = pnand %p503_p0, %p236_p1 }
   0x5   : > { %p266_p3 = scmp.lt.s32.totalorder (!%p237_p2), %s499_s25, 1 }
   0x6   : > { %240 = sbr.rel (%p237_p2) target bundleno = 572 (0x23c), region = 48 }
   0xb   : > { %s711_s25 = smov (!%p266_p3, %s499_s25), 1  ;;  %vm278_vm0 = vcmask 261120   ;;  %v586_v2 = vmov 32.0   ;;  %v550_v14 = vld [vmem:[%s703_s1 + $0x8] sm:$0xff]  ;;  %v549_v15 = vld [vmem:[%s703_s1] sm:$0xff]  ;;  %v558_v16 = vld [vmem:[%s705_s3 + $0x38] sm:$0xff] }
   0xc   : > { %s504_s26 = sshll.u32 %s711_s25, 3  ;;  %572 = vrcp.f32 %v586_v2  ;;  %346 = vmatpush.bf16.msra.mxu0 %v550_v14  ;;  %431 = vmatpush.bf16.msra.mxu1 %v558_v16  ;;  %v568_v26 = vld [vmem:[%s707_s5] ss:$0 sm:$0xff]  ;;  %v557_v33 = vld [vmem:[%s705_s3 + $0x30] sm:$0xff]  ;;  %v556_v34 = vld [vmem:[%s705_s3 + $0x28] sm:$0xff] }
   0xd   : > { %s269_s29 = scalar_lea.vmem %s702_s0, %s504_s26  ;;  %v569_v29 = vld [vmem:[%s708_s6] ss:$0 sm:$0xff]  ;;  %v554_v36 = vld [vmem:[%s705_s3 + $0x18] sm:$0xff]  ;;  %v553_v37 = vld [vmem:[%s705_s3 + $0x10] sm:$0xff]  ;;  %s273_s17 = scalar_lea.vmem %s709_s7, %s504_s26 }
   0xe   : > { %v643_v0 = vld [vmem:[%s269_s29] sm:$0xff]  ;;  %v552_v38 = vld [vmem:[%s705_s3 + $0x8] sm:$0xff] }
   0xf   : > { %v279_v1 = vsel %vm278_vm0, %v643_v0, 0.0  ;;  %v555_v35 = vld [vmem:[%s705_s3 + $0x20] sm:$0xff] }
  0x10   : > { %280 = vadd.xlane.f32.xlu0 %v279_v1  ;;  %347 = vmatpush.bf16.msra.mxu0 %v549_v15  ;;  %v551_v39 = vld [vmem:[%s705_s3] sm:$0xff] }
  0x11   : > { %432 = vmatpush.bf16.msra.mxu1 %v557_v33  ;;  %v570_v40 = vld [vmem:[%s704_s2] ss:$0 sm:$0xff] }
  0x12   : > { %v573_v3 = vpop.eup %572  ;;  %v571_v54 = vld [vmem:[%s706_s4] ss:$0 sm:$0xff] }
  0x13   : > { %v283_v4 = vmul.f32 32.0, %v573_v3  ;;  %vm287_vm1 = vweird.f32 %v573_v3 }
  0x15   : > { %v284_v5 = vsub.f32 1.0, %v283_v4  ;;  %433 = vmatpush.bf16.msra.mxu1 %v556_v34 }
  0x17   : > { %v285_v6 = vmul.f32 %v573_v3, %v284_v5 }
  0x19   : > { %v286_v7 = vadd.f32 %v573_v3, %v285_v6  ;;  %434 = vmatpush.bf16.msra.mxu1 %v555_v35 }
  0x1b   : > { %v288_v8 = vsel %vm287_vm1, %v573_v3, %v286_v7 }
  0x1d   : > { %435 = vmatpush.bf16.msra.mxu1 %v554_v36 }
  0x21   : > { %436 = vmatpush.bf16.msra.mxu1 %v553_v37 }
  0x25   : > { %437 = vmatpush.bf16.msra.mxu1 %v552_v38 }
  0x29   : > { %438 = vmatpush.bf16.msra.mxu1 %v551_v39 }
  0x83   : > { %v281_v9 = vpop.xlane.xlu0 %280 }
  0x84   : > { %v289_v10 = vmul.f32 %v288_v8, %v281_v9 }
  0x86   : > { %v290_v11 = vsub.f32 %v643_v0, %v289_v10 }
  0x88   : > { %v291_v12 = vmul.f32 %v290_v11, %v290_v11 }
  0x8a   : > { %v292_v13 = vsel %vm278_vm0, %v291_v12, 0.0 }
  0x8b   : > { %293 = vadd.xlane.f32.xlu0 %v292_v13 }
  0xfe   : > { %v294_v17 = vpop.xlane.xlu0 %293 }
  0xff   : > { %v295_v18 = vmul.f32 %v294_v17, %v288_v8 }
 0x101   : > { %v296_v19 = vadd.f32 1e-05, %v295_v18 }
 0x103   : > { %574 = vrsqrt.f32 %v296_v19  ;;  %vm303_vm3 = vweird.f32 %v296_v19 }
 0x109   : > { %v575_v20 = vpop.eup %574 }
 0x10a   : > { %v298_v21 = vmul.f32 %v575_v20, %v296_v19  ;;  %vm304_vm2 = vweird.f32 %v575_v20 }
 0x10b   : > { %vm305_vm4 = vmor %vm303_vm3, %vm304_vm2 }
 0x10c   : > { %v299_v22 = vmul.f32 %v575_v20, %v298_v21 }
 0x10e   : > { %v300_v23 = vmul.f32 0.5, %v299_v22 }
 0x110   : > { %v301_v24 = vsub.f32 1.5, %v300_v23 }
 0x112   : > { %v302_v25 = vmul.f32 %v575_v20, %v301_v24 }
 0x114   : > { %v306_v27 = vsel %vm305_vm4, %v575_v20, %v302_v25 }
 0x115   : > { %v307_v28 = vmul.f32 %v306_v27, %v290_v11 }
 0x117   : > { %v311_v30 = vmul.f32 %v568_v26, %v307_v28 }
 0x119   : > { %v315_v31 = vadd.f32 %v569_v29, %v311_v30 }
 0x11b   : > { %v316_v32 = vpack.c.bf16 %v315_v31, %v315_v31 }
 0x11d   : > { %514 = vmatmul.msk.bf16.vlgmr.msra.gmra.mxu0 %vm278_vm0, %v316_v32 }
 0x19a   : > { %v349_v41 = vpop.f32.mrf.mxu0 }
 0x19b   : > { %v350_v42 = vadd.f32 %v570_v40, %v349_v41 }
 0x19d   : > { %v353_v43 = vmul.f32 %v350_v42, %v350_v42 }
 0x19f   : > { %v354_v44 = vmul.f32 %v353_v43, %v350_v42 }
 0x1a1   : > { %v355_v45 = vmul.f32 0.044715, %v354_v44 }
 0x1a2   : > { %v351_v46 = vpop.f32.mrf.mxu0 }
 0x1a3   : > { %v356_v47 = vadd.f32 %v355_v45, %v350_v42 }
 0x1a5   : > { %v357_v48 = vmul.f32 0.7978846, %v356_v47 }
 0x1a7   : > { %576 = vtanh.f32 %v357_v48 }
 0x1ad   : > { %v577_v49 = vpop.eup %576 }
 0x1ae   : > { %v359_v50 = vadd.f32 1.0, %v577_v49 }
 0x1b0   : > { %v360_v51 = vmul.f32 0.5, %v359_v50 }
 0x1b2   : > { %v361_v52 = vmul.f32 %v360_v51, %v350_v42 }
 0x1b4   : > { %v362_v53 = vpack.c.bf16 %v361_v52, %v361_v52 }
 0x1b6   : > { %439 = vmatmul.bf16.vlgmr.msra.gmra.mxu1 %v362_v53 }
 0x233   : > { %v440_v55 = vpop.f32.mrf.mxu1 }
 0x234   : > { %v441_v56 = vadd.f32 %v571_v54, %v440_v55 }
 0x236   : > { %v444_v57 = vadd.f32 %v441_v56, %v643_v0 }
 0x238   : > { %445 = vst.msk [vmem:[%s273_s17] sm:$0xff] %vm278_vm0, %v444_v57 }
 0x23b   : > { %v442_v58 = vpop.f32.mrf.mxu1 }
 0x23c PF: > { %s17_s24 = sadd.s32 1, %s584_s24  }
 0x23d   : > { %p14_p4 = scmp.ge.s32.totalorder %s17_s24, 4  }
 0x23f   :  { %16 = sbr.rel (!%p14_p4) target bundleno = 1 (0x1), region = 78 }

// kernel: transformer_forward.7
= control target key start
LH: loop header
LB: loop body
LE: loop exit
PB: predicated region body
PF: predicated region fallthrough
CT: control target
= control target key end

     0   :  { %s2199_s24 = smov 0   ;;  %s2543_s0 = inlined_call_operand.vmem [shape: f32[2,8,32], index: 0, kind: input, shape index: {}]   ;;  %s2544_s1 = inlined_call_operand.vmem [shape: f32[2,8,8,8], index: 1, kind: input, shape index: {}]   ;;  %s2545_s2 = inlined_call_operand.vmem [shape: bf16[3,8,32,4], index: 2, kind: input, shape index: {}]   ;;  %s2546_s3 = inlined_call_operand.vmem [shape: bf16[8,4,32], index: 3, kind: input, shape index: {}]   ;;  %s2547_s4 = inlined_call_operand.vmem [shape: f32[1,32], index: 4, kind: input, shape index: {}]   ;;  %s2548_s5 = inlined_call_operand.vmem [shape: f32[1,32], index: 5, kind: input, shape index: {}]   ;;  %s2549_s6 = inlined_call_operand.vmem [shape: f32[1,32], index: 6, kind: input, shape index: {}]   ;;  %s2550_s7 = inlined_call_operand.vmem [shape: f32[2,8,32], index: 7, kind: output, shape index: {}]  }
   0x1 LB: > { %s1737_s25 = sadd.s32 4294967295, %s2156_s24   ;;  %p1741_p0 = scmp.ge.s32.totalorder %s2156_s24, 1  ;;  %s2156_s24 = sphi %s2199_s24, %s17_s24  }
   0x2   : > { %p246_p1 = scmp.lt.s32.totalorder %s2156_s24, 3 }
   0x4   : > { %p247_p2 = pnand %p1741_p0, %p246_p1 }
   0x5   : > { %p281_p3 = scmp.lt.s32.totalorder (!%p247_p2), %s1737_s25, 1 }
   0x6   : > { %250 = sbr.rel (%p247_p2) target bundleno = 1151 (0x47f), region = 48 }
   0xb   : > { %s2552_s25 = smov (!%p281_p3, %s1737_s25), 1  ;;  %vm298_vm0 = vcmask 261120   ;;  %v2158_v2 = vmov 32.0   ;;  %v2054_v14 = vld [vmem:[%s2545_s2 + $0x8] sm:$0xff]  ;;  %v2056_v15 = vld [vmem:[%s2545_s2 + $0x18] sm:$0xff]  ;;  %v2053_v18 = vld [vmem:[%s2545_s2] sm:$0xff] }
   0xc   : > { %s1742_s26 = sshll.u32 %s2552_s25, 3  ;;  %2113 = vrcp.f32 %v2158_v2  ;;  %v2058_v16 = vld [vmem:[%s2545_s2 + $0x28] sm:$0xff]  ;;  %v2060_v17 = vld [vmem:[%s2545_s2 + $0x38] sm:$0xff]  ;;  %390 = vmatpush.bf16.msra.mxu0 %v2054_v14  ;;  %415 = vmatpush.bf16.msra.mxu1 %v2056_v15  ;;  %v2055_v19 = vld [vmem:[%s2545_s2 + $0x10] sm:$0xff]  ;;  %vm1062_vm5 = vcmask 31744   ;;  %vm1339_vm6 = vcmask 1043456  }
   0xd   : > { %s2215_s29 = scalar_lea.vmem %s2543_s0, %s1742_s26  ;;  %440 = vmatpush.bf16.msra.mxu2 %v2058_v16  ;;  %465 = vmatpush.bf16.msra.mxu3 %v2060_v17  ;;  %v2057_v20 = vld [vmem:[%s2545_s2 + $0x20] sm:$0xff]  ;;  %v2059_v21 = vld [vmem:[%s2545_s2 + $0x30] sm:$0xff]  ;;  %v2062_v23 = vld [vmem:[%s2545_s2 + $0x48] sm:$0xff]  ;;  %s2052_s12 = sshll.u32 %s2552_s25, 6  ;;  %vm1231_vm7 = vcmask 64512   ;;  %vm1509_vm8 = vcmask 1041408  }
   0xe   : > { %v295_v0 = vld [vmem:[%s2215_s29] sm:$0xff]  ;;  %v2064_v24 = vld [vmem:[%s2545_s2 + $0x58] sm:$0xff]  ;;  %v2066_v25 = vld [vmem:[%s2545_s2 + $0x68] sm:$0xff]  ;;  %s2456_s15 = scalar_lea.vmem %s2544_s1, %s2052_s12  ;;  %s293_s17 = scalar_lea.vmem %s2550_s7, %s1742_s26 }
   0xf   : > { %v299_v1 = vsel %vm298_vm0, %v295_v0, 0.0  ;;  %v2068_v27 = vld [vmem:[%s2545_s2 + $0x78] sm:$0xff]  ;;  %v2061_v28 = vld [vmem:[%s2545_s2 + $0x40] sm:$0xff]  ;;  %v2063_v29 = vld [vmem:[%s2545_s2 + $0x50] sm:$0xff] }
  0x10   : > { %300 = vadd.xlane.f32.xlu0 %v299_v1  ;;  %391 = vmatpush.bf16.msra.mxu0 %v2053_v18  ;;  %v2065_v31 = vld [vmem:[%s2545_s2 + $0x60] sm:$0xff]  ;;  %v2067_v32 = vld [vmem:[%s2545_s2 + $0x70] sm:$0xff]  ;;  %v2070_v46 = vld [vmem:[%s2545_s2 + $0x88] sm:$0xff] }
  0x11   : > { %416 = vmatpush.bf16.msra.mxu1 %v2055_v19  ;;  %441 = vmatpush.bf16.msra.mxu2 %v2057_v20  ;;  %v2110_v39 = vld [vmem:[%s2548_s5] ss:$0 sm:$0xff]  ;;  %v2072_v47 = vld [vmem:[%s2545_s2 + $0x98] sm:$0xff]  ;;  %v2074_v48 = vld [vmem:[%s2545_s2 + $0xa8] sm:$0xff] }
  0x12   : > { %v2114_v3 = vpop.eup %2113  ;;  %466 = vmatpush.bf16.msra.mxu3 %v2059_v21  ;;  %v2111_v41 = vld [vmem:[%s2549_s6] ss:$0 sm:$0xff]  ;;  %v2076_v49 = vld [vmem:[%s2545_s2 + $0xb8] sm:$0xff]  ;;  %v2071_v51 = vld [vmem:[%s2545_s2 + $0x90] sm:$0xff] }
  0x13   : > { %v303_v4 = vmul.f32 32.0, %v2114_v3  ;;  %vm307_vm1 = vweird.f32 %v2114_v3  ;;  %v2069_v50 = vld [vmem:[%s2545_s2 + $0x80] sm:$0xff]  ;;  %v2075_v53 = vld [vmem:[%s2545_s2 + $0xb0] sm:$0xff]  ;;  %v2078_v54 = vld [vmem:[%s2545_s2 + $0xc8] sm:$0xff] }
  0x14   : > { %490 = vmatpush.bf16.msrb.mxu0 %v2062_v23  ;;  %v2073_v52 = vld [vmem:[%s2545_s2 + $0xa0] sm:$0xff]  ;;  %v2080_v55 = vld [vmem:[%s2545_s2 + $0xd8] sm:$0xff]  ;;  %v2082_v56 = vld [vmem:[%s2545_s2 + $0xe8] sm:$0xff] }
  0x15   : > { %v304_v5 = vsub.f32 1.0, %v303_v4  ;;  %515 = vmatpush.bf16.msrb.mxu1 %v2064_v24  ;;  %540 = vmatpush.bf16.msrb.mxu2 %v2066_v25  ;;  %v2084_v57 = vld [vmem:[%s2545_s2 + $0xf8] sm:$0xff]  ;;  %v2077_v58 = vld [vmem:[%s2545_s2 + $0xc0] sm:$0xff]  ;;  %v2079_v59 = vld [vmem:[%s2545_s2 + $0xd0] sm:$0xff] }
  0x16   : > { %565 = vmatpush.bf16.msrb.mxu3 %v2068_v27  ;;  %v2081_v60 = vld [vmem:[%s2545_s2 + $0xe0] sm:$0xff]  ;;  %v2083_v61 = vld [vmem:[%s2545_s2 + $0xf0] sm:$0xff]  ;;  %v2086_v62 = vld [vmem:[%s2545_s2 + $0x108] sm:$0xff] }
  0x17   : > { %v305_v6 = vmul.f32 %v2114_v3, %v304_v5  ;;  %v2088_v63 = vld [vmem:[%s2545_s2 + $0x118] sm:$0xff]  ;;  %v2085_v2 = vld [vmem:[%s2545_s2 + $0x100] sm:$0xff]  ;;  %v2091_v5 = vld [vmem:[%s2545_s2 + $0x130] sm:$0xff] }
  0x18   : > { %491 = vmatpush.bf16.msrb.mxu0 %v2061_v28  ;;  %v2092_v1 = vld [vmem:[%s2545_s2 + $0x138] sm:$0xff]  ;;  %v2089_v4 = vld [vmem:[%s2545_s2 + $0x120] sm:$0xff] }
  0x19   : > { %v306_v7 = vadd.f32 %v2114_v3, %v305_v6  ;;  %516 = vmatpush.bf16.msrb.mxu1 %v2063_v29  ;;  %541 = vmatpush.bf16.msrb.mxu2 %v2065_v31  ;;  %v2094_v6 = vld [vmem:[%s2545_s2 + $0x148] sm:$0xff] }
  0x1a   : > { %566 = vmatpush.bf16.msrb.mxu3 %v2067_v32 }
  0x1b   : > { %v308_v8 = vsel %vm307_vm1, %v2114_v3, %v306_v7  ;;  %v2087_v3 = vld [vmem:[%s2545_s2 + $0x110] sm:$0xff]  ;;  %v2096_v7 = vld [vmem:[%s2545_s2 + $0x158] sm:$0xff] }
  0x83   : > { %v301_v9 = vpop.xlane.xlu0 %300 }
  0x84   : > { %v309_v10 = vmul.f32 %v308_v8, %v301_v9  ;;  %v2100_v9 = vld [vmem:[%s2545_s2 + $0x178] sm:$0xff] }
  0x86   : > { %v310_v11 = vsub.f32 %v295_v0, %v309_v10  ;;  %v2090_v0 = vld [vmem:[%s2545_s2 + $0x128] sm:$0xff]  ;;  %v2093_v10 = vld [vmem:[%s2545_s2 + $0x140] sm:$0xff] }
  0x88   : > { %v311_v12 = vmul.f32 %v310_v11, %v310_v11 }
  0x8a   : > { %v312_v13 = vsel %vm298_vm0, %v311_v12, 0.0  ;;  %v2097_v12 = vld [vmem:[%s2545_s2 + $0x160] sm:$0xff] }
  0x8b   : > { %313 = vadd.xlane.f32.xlu0 %v312_v13  ;;  %v2099_v13 = vld [vmem:[%s2545_s2 + $0x170] sm:$0xff] }
  0xfe   : > { %v314_v22 = vpop.xlane.xlu0 %313 }
  0xff   : > { %v315_v26 = vmul.f32 %v314_v22, %v308_v8  ;;  %v2098_v8 = vld [vmem:[%s2545_s2 + $0x168] sm:$0xff] }
 0x101   : > { %v316_v30 = vadd.f32 1e-05, %v315_v26 }
 0x103   : > { %2115 = vrsqrt.f32 %v316_v30  ;;  %vm323_vm3 = vweird.f32 %v316_v30 }
 0x109   : > { %v2116_v33 = vpop.eup %2115 }
 0x10a   : > { %v318_v34 = vmul.f32 %v2116_v33, %v316_v30  ;;  %vm324_vm2 = vweird.f32 %v2116_v33 }
 0x10b   : > { %vm325_vm4 = vmor %vm323_vm3, %vm324_vm2 }
 0x10c   : > { %v319_v35 = vmul.f32 %v2116_v33, %v318_v34 }
 0x10e   : > { %v320_v36 = vmul.f32 0.5, %v319_v35 }
 0x110   : > { %v321_v37 = vsub.f32 1.5, %v320_v36 }
 0x112   : > { %v322_v38 = vmul.f32 %v2116_v33, %v321_v37 }
 0x114   : > { %v326_v40 = vsel %vm325_vm4, %v2116_v33, %v322_v38 }
 0x115   : > { %v327_v42 = vmul.f32 %v326_v40, %v310_v11  ;;  %v2095_v11 = vld [vmem:[%s2545_s2 + $0x150] sm:$0xff] }
 0x117   : > { %v331_v43 = vmul.f32 %v2110_v39, %v327_v42 }
 0x119   : > { %v335_v44 = vadd.f32 %v2111_v41, %v331_v43 }
 0x11b   : > { %v2274_v45 = vpack.c.bf16 %v335_v44, %v335_v44 }
 0x11d   : > { %1754 = vmatmul.msk.bf16.vlgmr.msra.gmra.mxu0 %vm298_vm0, %v2274_v45  ;;  %1763 = vmatmul.msk.bf16.vlgmr.msra.gmra.mxu1 %vm298_vm0, %v2274_v45 }
 0x11e   : > { %1772 = vmatmul.msk.bf16.vlgmr.msra.gmra.mxu2 %vm298_vm0, %v2274_v45  ;;  %1781 = vmatmul.msk.bf16.vlgmr.msra.gmra.mxu3 %vm298_vm0, %v2274_v45 }
 0x11f   : > { %623 = vmatpush.bf16.msra.mxu0 %v2070_v46  ;;  %648 = vmatpush.bf16.msra.mxu1 %v2072_v47 }
 0x120   : > { %673 = vmatpush.bf16.msra.mxu2 %v2074_v48  ;;  %698 = vmatpush.bf16.msra.mxu3 %v2076_v49 }
 0x123   : > { %624 = vmatpush.bf16.msra.mxu0 %v2069_v50  ;;  %649 = vmatpush.bf16.msra.mxu1 %v2071_v51 }
 0x124   : > { %674 = vmatpush.bf16.msra.mxu2 %v2073_v52  ;;  %699 = vmatpush.bf16.msra.mxu3 %v2075_v53 }
 0x12d   : > { %1790 = vmatmul.msk.bf16.vlgmr.msrb.gmra.mxu0 %vm298_vm0, %v2274_v45  ;;  %1799 = vmatmul.msk.bf16.vlgmr.msrb.gmra.mxu1 %vm298_vm0, %v2274_v45 }
 0x12e   : > { %1808 = vmatmul.msk.bf16.vlgmr.msrb.gmra.mxu2 %vm298_vm0, %v2274_v45  ;;  %1817 = vmatmul.msk.bf16.vlgmr.msrb.gmra.mxu3 %vm298_vm0, %v2274_v45 }
 0x12f   : > { %723 = vmatpush.bf16.msrb.mxu0 %v2078_v54  ;;  %748 = vmatpush.bf16.msrb.mxu1 %v2080_v55 }
 0x130   : > { %773 = vmatpush.bf16.msrb.mxu2 %v2082_v56  ;;  %798 = vmatpush.bf16.msrb.mxu3 %v2084_v57 }
 0x133   : > { %724 = vmatpush.bf16.msrb.mxu0 %v2077_v58  ;;  %749 = vmatpush.bf16.msrb.mxu1 %v2079_v59 }
 0x134   : > { %774 = vmatpush.bf16.msrb.mxu2 %v2081_v60  ;;  %799 = vmatpush.bf16.msrb.mxu3 %v2083_v61 }
 0x13d   : > { %1858 = vmatmul.msk.bf16.vlgmr.msra.gmra.mxu0 %vm298_vm0, %v2274_v45  ;;  %1867 = vmatmul.msk.bf16.vlgmr.msra.gmra.mxu1 %vm298_vm0, %v2274_v45 }
 0x13e   : > { %1876 = vmatmul.msk.bf16.vlgmr.msra.gmra.mxu2 %vm298_vm0, %v2274_v45  ;;  %1885 = vmatmul.msk.bf16.vlgmr.msra.gmra.mxu3 %vm298_vm0, %v2274_v45 }
 0x13f   : > { %856 = vmatpush.bf16.msra.mxu0 %v2086_v62  ;;  %881 = vmatpush.bf16.msra.mxu1 %v2088_v63 }
 0x140   : > { %906 = vmatpush.bf16.msra.mxu2 %v2090_v0  ;;  %931 = vmatpush.bf16.msra.mxu3 %v2092_v1 }
 0x143   : > { %857 = vmatpush.bf16.msra.mxu0 %v2085_v2  ;;  %882 = vmatpush.bf16.msra.mxu1 %v2087_v3 }
 0x144   : > { %907 = vmatpush.bf16.msra.mxu2 %v2089_v4  ;;  %932 = vmatpush.bf16.msra.mxu3 %v2091_v5 }
 0x14d   : > { %1894 = vmatmul.msk.bf16.vlgmr.msrb.gmra.mxu0 %vm298_vm0, %v2274_v45  ;;  %1903 = vmatmul.msk.bf16.vlgmr.msrb.gmra.mxu1 %vm298_vm0, %v2274_v45 }
 0x14e   : > { %1912 = vmatmul.msk.bf16.vlgmr.msrb.gmra.mxu2 %vm298_vm0, %v2274_v45  ;;  %1921 = vmatmul.msk.bf16.vlgmr.msrb.gmra.mxu3 %vm298_vm0, %v2274_v45 }
 0x14f   : > { %956 = vmatpush.bf16.msrb.mxu0 %v2094_v6  ;;  %981 = vmatpush.bf16.msrb.mxu1 %v2096_v7 }
 0x150   : > { %1006 = vmatpush.bf16.msrb.mxu2 %v2098_v8  ;;  %1031 = vmatpush.bf16.msrb.mxu3 %v2100_v9 }
 0x153   : > { %957 = vmatpush.bf16.msrb.mxu0 %v2093_v10  ;;  %982 = vmatpush.bf16.msrb.mxu1 %v2095_v11 }
 0x154   : > { %1007 = vmatpush.bf16.msrb.mxu2 %v2097_v12  ;;  %1032 = vmatpush.bf16.msrb.mxu3 %v2099_v13 }
 0x15d   : > { %1962 = vmatmul.msk.bf16.vlgmr.msra.gmra.mxu0 %vm298_vm0, %v2274_v45  ;;  %1971 = vmatmul.msk.bf16.vlgmr.msra.gmra.mxu1 %vm298_vm0, %v2274_v45 }
 0x15e   : > { %1980 = vmatmul.msk.bf16.vlgmr.msra.gmra.mxu2 %vm298_vm0, %v2274_v45  ;;  %1989 = vmatmul.msk.bf16.vlgmr.msra.gmra.mxu3 %vm298_vm0, %v2274_v45 }
 0x16d   : > { %1998 = vmatmul.msk.bf16.vlgmr.msrb.gmra.mxu0 %vm298_vm0, %v2274_v45  ;;  %2007 = vmatmul.msk.bf16.vlgmr.msrb.gmra.mxu1 %vm298_vm0, %v2274_v45 }
 0x16e   : > { %2016 = vmatmul.msk.bf16.vlgmr.msrb.gmra.mxu2 %vm298_vm0, %v2274_v45  ;;  %2025 = vmatmul.msk.bf16.vlgmr.msrb.gmra.mxu3 %vm298_vm0, %v2274_v45 }
 0x19a   : > { %v393_v14 = vpop.f32.mrf.mxu0  ;;  %v418_v15 = vpop.f32.mrf.mxu1 }
 0x19b   : > { %v1046_v42 = vpack.c.bf16 %v393_v14, %v393_v14  ;;  %v1047_v43 = vpack.c.bf16 %v418_v15, %v418_v15 }
 0x1a1   : > { %v443_v16 = vpop.f32.mrf.mxu2  ;;  %v468_v17 = vpop.f32.mrf.mxu3 }
 0x1a2   : > { %v395_v18 = vpop.f32.mrf.mxu0  ;;  %v420_v19 = vpop.f32.mrf.mxu1  ;;  %v1048_v48 = vpack.c.bf16 %v443_v16, %v443_v16  ;;  %v1049_v49 = vpack.c.bf16 %v468_v17, %v468_v17 }
 0x1a9   : > { %v445_v20 = vpop.f32.mrf.mxu2  ;;  %v470_v21 = vpop.f32.mrf.mxu3 }
 0x1aa   : > { %v493_v22 = vpop.f32.mrf.mxu0  ;;  %v518_v23 = vpop.f32.mrf.mxu1 }
 0x1ab   : > { %v1050_v62 = vpack.c.bf16 %v493_v22, %v493_v22  ;;  %v1051_v63 = vpack.c.bf16 %v518_v23, %v518_v23 }
 0x1b1   : > { %v2420_v24 = vpop.f32.mrf.mxu2  ;;  %v2422_v25 = vpop.f32.mrf.mxu3 }
 0x1b2   : > { %v495_v26 = vpop.f32.mrf.mxu0  ;;  %v520_v27 = vpop.f32.mrf.mxu1  ;;  %v1052_v4 = vpack.c.bf16 %v2420_v24, %v2420_v24  ;;  %v1053_v5 = vpack.c.bf16 %v2422_v25, %v2422_v25 }
 0x1b9   : > { %v545_v28 = vpop.f32.mrf.mxu2  ;;  %v570_v29 = vpop.f32.mrf.mxu3 }
 0x1ba   : > { %v626_v30 = vpop.f32.mrf.mxu0  ;;  %v651_v31 = vpop.f32.mrf.mxu1 }
 0x1bb   : > { %v1054_v32 = vpack.c.bf16 %v626_v30, %v626_v30  ;;  %v1055_v33 = vpack.c.bf16 %v651_v31, %v651_v31 }
 0x1bd   : > { %v1067_v34 = vsel %vm1062_vm5, %v1054_v32, 0  ;;  %v1086_v35 = vsel %vm1062_vm5, %v1055_v33, 0 }
 0x1be   : > { %1076 = vmatpush.bf16.xpose.msra.mxu0 %v1067_v34  ;;  %1095 = vmatpush.bf16.xpose.msra.mxu1 %v1086_v35 }
 0x1c1   : > { %v676_v36 = vpop.f32.mrf.mxu2  ;;  %v701_v37 = vpop.f32.mrf.mxu3 }
 0x1c2   : > { %v1056_v38 = vpack.c.bf16 %v676_v36, %v676_v36  ;;  %v1057_v39 = vpack.c.bf16 %v701_v37, %v701_v37  ;;  %v628_v40 = vpop.f32.mrf.mxu0  ;;  %v653_v41 = vpop.f32.mrf.mxu1 }
 0x1c3   : > { %v1038_v40 = vld [vmem:[%s2456_s15] sm:$0xff] }
 0x1c4   : > { %v1105_v44 = vsel %vm1062_vm5, %v1056_v38, 0  ;;  %v1124_v45 = vsel %vm1062_vm5, %v1057_v39, 0 }
 0x1c5   : > { %1114 = vmatpush.bf16.xpose.msra.mxu2 %v1105_v44  ;;  %1133 = vmatpush.bf16.xpose.msra.mxu3 %v1124_v45  ;;  %v1039_v45 = vld [vmem:[%s2456_s15 + $0x8] sm:$0xff] }
 0x1c6   : > { %2026 = vmatmul.msk.bf16.vlgmr.msra.gmra.mxu0 %vm1062_vm5, %v1046_v42  ;;  %2027 = vmatmul.msk.bf16.vlgmr.msra.gmra.mxu1 %vm1062_vm5, %v1047_v43 }
 0x1c9   : > { %v678_v46 = vpop.f32.mrf.mxu2  ;;  %v703_v47 = vpop.f32.mrf.mxu3 }
 0x1ca   : > { %v726_v50 = vpop.f32.mrf.mxu0  ;;  %v751_v51 = vpop.f32.mrf.mxu1 }
 0x1cb   : > { %v1058_v52 = vpack.c.bf16 %v726_v50, %v726_v50  ;;  %v1059_v53 = vpack.c.bf16 %v751_v51, %v751_v51  ;;  %v1040_v51 = vld [vmem:[%s2456_s15 + $0x10] sm:$0xff] }
 0x1cc   : > { %2028 = vmatmul.msk.bf16.vlgmr.msra.gmra.mxu2 %vm1062_vm5, %v1048_v48  ;;  %2029 = vmatmul.msk.bf16.vlgmr.msra.gmra.mxu3 %vm1062_vm5, %v1049_v49 }
 0x1cd   : > { %v1143_v54 = vsel %vm1062_vm5, %v1058_v52, 0  ;;  %v1162_v55 = vsel %vm1062_vm5, %v1059_v53, 0 }
 0x1ce   : > { %1152 = vmatpush.bf16.xpose.msrb.mxu0 %v1143_v54  ;;  %1171 = vmatpush.bf16.xpose.msrb.mxu1 %v1162_v55 }
 0x1d1   : > { %v776_v56 = vpop.f32.mrf.mxu2  ;;  %v801_v57 = vpop.f32.mrf.mxu3 }
 0x1d2   : > { %v1060_v58 = vpack.c.bf16 %v776_v56, %v776_v56  ;;  %v1061_v59 = vpack.c.bf16 %v801_v57, %v801_v57  ;;  %v728_v60 = vpop.f32.mrf.mxu0  ;;  %v753_v61 = vpop.f32.mrf.mxu1  ;;  %v1042_v57 = vld [vmem:[%s2456_s15 + $0x20] sm:$0xff] }
 0x1d3   : > { %v1041_v61 = vld [vmem:[%s2456_s15 + $0x18] sm:$0xff] }
 0x1d4   : > { %v1181_v0 = vsel %vm1062_vm5, %v1060_v58, 0  ;;  %v1200_v1 = vsel %vm1062_vm5, %v1061_v59, 0 }
 0x1d5   : > { %1190 = vmatpush.bf16.xpose.msrb.mxu2 %v1181_v0  ;;  %1209 = vmatpush.bf16.xpose.msrb.mxu3 %v1200_v1 }
 0x1d6   : > { %2030 = vmatmul.msk.bf16.vlgmr.msrb.gmra.mxu0 %vm1062_vm5, %v1050_v62  ;;  %2031 = vmatmul.msk.bf16.vlgmr.msrb.gmra.mxu1 %vm1062_vm5, %v1051_v63 }
 0x1d9   : > { %v778_v2 = vpop.f32.mrf.mxu2  ;;  %v803_v3 = vpop.f32.mrf.mxu3 }
 0x1da   : > { %v859_v6 = vpop.f32.mrf.mxu0  ;;  %v884_v7 = vpop.f32.mrf.mxu1 }
 0x1db   : > { %v1328_v8 = vpack.c.bf16 %v859_v6, %v859_v6  ;;  %v1329_v9 = vpack.c.bf16 %v884_v7, %v884_v7 }
 0x1dc   : > { %2032 = vmatmul.msk.bf16.vlgmr.msrb.gmra.mxu2 %vm1062_vm5, %v1052_v4  ;;  %2033 = vmatmul.msk.bf16.vlgmr.msrb.gmra.mxu3 %vm1062_vm5, %v1053_v5 }
 0x1dd   : > { %v1341_v10 = vsel %vm1339_vm6, %v1328_v8, 0  ;;  %v1360_v11 = vsel %vm1339_vm6, %v1329_v9, 0  ;;  %v1045_v8 = vld [vmem:[%s2456_s15 + $0x38] sm:$0xff]  ;;  %v1044_v9 = vld [vmem:[%s2456_s15 + $0x30] sm:$0xff] }
 0x1de   : > { %1350 = vmatpush.bf16.msra.mxu0 %v1341_v10  ;;  %1369 = vmatpush.bf16.msra.mxu1 %v1360_v11 }
 0x1e1   : > { %v909_v12 = vpop.f32.mrf.mxu2  ;;  %v934_v13 = vpop.f32.mrf.mxu3 }
 0x1e2   : > { %v1330_v14 = vpack.c.bf16 %v909_v12, %v909_v12  ;;  %v1331_v15 = vpack.c.bf16 %v934_v13, %v934_v13  ;;  %v861_v16 = vpop.f32.mrf.mxu0  ;;  %v886_v17 = vpop.f32.mrf.mxu1 }
 0x1e3   : > { %v1043_v17 = vld [vmem:[%s2456_s15 + $0x28] sm:$0xff] }
 0x1e4   : > { %v1379_v18 = vsel %vm1339_vm6, %v1330_v14, 0  ;;  %v1398_v19 = vsel %vm1339_vm6, %v1331_v15, 0 }
 0x1e5   : > { %1388 = vmatpush.bf16.msra.mxu2 %v1379_v18  ;;  %1407 = vmatpush.bf16.msra.mxu3 %v1398_v19 }
 0x1e9   : > { %v911_v20 = vpop.f32.mrf.mxu2  ;;  %v936_v21 = vpop.f32.mrf.mxu3 }
 0x1ea   : > { %v959_v22 = vpop.f32.mrf.mxu0  ;;  %v984_v23 = vpop.f32.mrf.mxu1 }
 0x1eb   : > { %v1332_v24 = vpack.c.bf16 %v959_v22, %v959_v22  ;;  %v1333_v25 = vpack.c.bf16 %v984_v23, %v984_v23 }
 0x1ed   : > { %v1417_v26 = vsel %vm1339_vm6, %v1332_v24, 0  ;;  %v1436_v27 = vsel %vm1339_vm6, %v1333_v25, 0 }
 0x1ee   : > { %1426 = vmatpush.bf16.msrb.mxu0 %v1417_v26  ;;  %1445 = vmatpush.bf16.msrb.mxu1 %v1436_v27 }
 0x1f1   : > { %v1009_v28 = vpop.f32.mrf.mxu2  ;;  %v1034_v29 = vpop.f32.mrf.mxu3 }
 0x1f2   : > { %v1334_v30 = vpack.c.bf16 %v1009_v28, %v1009_v28  ;;  %v1335_v31 = vpack.c.bf16 %v1034_v29, %v1034_v29  ;;  %v961_v32 = vpop.f32.mrf.mxu0  ;;  %v986_v33 = vpop.f32.mrf.mxu1 }
 0x1f4   : > { %v1455_v34 = vsel %vm1339_vm6, %v1334_v30, 0  ;;  %v1474_v35 = vsel %vm1339_vm6, %v1335_v31, 0 }
 0x1f5   : > { %1464 = vmatpush.bf16.msrb.mxu2 %v1455_v34  ;;  %1483 = vmatpush.bf16.msrb.mxu3 %v1474_v35 }
 0x1f9   : > { %v1011_v36 = vpop.f32.mrf.mxu2  ;;  %v1036_v37 = vpop.f32.mrf.mxu3 }
 0x243   : > { %v1078_v38 = vpop.f32.mrf.mxu0  ;;  %v1097_v39 = vpop.f32.mrf.mxu1 }
 0x244   : > { %v1215_v41 = vmul.f32 0.5, %v1078_v38  ;;  %v1216_v43 = vmul.f32 0.5, %v1097_v39 }
 0x246   : > { %v1223_v42 = vadd.f32 %v1215_v41, %v1038_v40  ;;  %v1224_v48 = vadd.f32 %v1216_v43, %v1039_v45 }
 0x248   : > { %v1232_v44 = vsel %vm1231_vm7, %v1223_v42, -inf  ;;  %v1235_v53 = vsel %vm1231_vm7, %v1224_v48, -inf }
 0x249   : > { %1233 = vmax.xlane.f32.xlu2 %v1232_v44 }
 0x24b   : > { %v1080_v46 = vpop.f32.mrf.mxu0  ;;  %v1099_v47 = vpop.f32.mrf.mxu1 }
 0x24f   : > { %v1116_v49 = vpop.f32.mrf.mxu2  ;;  %v1135_v50 = vpop.f32.mrf.mxu3 }
 0x250   : > { %v1217_v52 = vmul.f32 0.5, %v1116_v49  ;;  %v1218_v58 = vmul.f32 0.5, %v1135_v50 }
 0x251   : > { %1236 = vmax.xlane.f32.xlu2 %v1235_v53 }
 0x252   : > { %v1225_v54 = vadd.f32 %v1217_v52, %v1040_v51  ;;  %v1226_v2 = vadd.f32 %v1218_v58, %v1041_v61 }
 0x253   : > { %v1154_v55 = vpop.f32.mrf.mxu0  ;;  %v1173_v56 = vpop.f32.mrf.mxu1 }
 0x254   : > { %v1219_v59 = vmul.f32 0.5, %v1154_v55  ;;  %v1238_v60 = vsel %vm1231_vm7, %v1225_v54, -inf  ;;  %v1241_v5 = vsel %vm1231_vm7, %v1226_v2, -inf  ;;  %v1220_v14 = vmul.f32 0.5, %v1173_v56 }
 0x255   : > { %1239 = vmax.xlane.f32.xlu1 %v1238_v60 }
 0x256   : > { %v1227_v62 = vadd.f32 %v1219_v59, %v1042_v57  ;;  %v1228_v20 = vadd.f32 %v1220_v14, %v1043_v17 }
 0x257   : > { %v1118_v63 = vpop.f32.mrf.mxu2  ;;  %v1137_v0 = vpop.f32.mrf.mxu3 }
 0x258   : > { %v1244_v1 = vsel %vm1231_vm7, %v1227_v62, -inf  ;;  %v1247_v21 = vsel %vm1231_vm7, %v1228_v20, -inf }
 0x259   : > { %1245 = vmax.xlane.f32.xlu2 %v1244_v1 }
 0x25b   : > { %v1156_v3 = vpop.f32.mrf.mxu0  ;;  %v1175_v4 = vpop.f32.mrf.mxu1 }
 0x25d   : > { %1242 = vmax.xlane.f32.xlu1 %v1241_v5 }
 0x25f   : > { %v1192_v6 = vpop.f32.mrf.mxu2  ;;  %v1211_v7 = vpop.f32.mrf.mxu3 }
 0x260   : > { %v1221_v10 = vmul.f32 0.5, %v1192_v6  ;;  %v1222_v11 = vmul.f32 0.5, %v1211_v7 }
 0x262   : > { %v1230_v12 = vadd.f32 %v1222_v11, %v1045_v8  ;;  %v1229_v13 = vadd.f32 %v1221_v10, %v1044_v9 }
 0x264   : > { %v1253_v15 = vsel %vm1231_vm7, %v1230_v12, -inf  ;;  %v1250_v16 = vsel %vm1231_vm7, %v1229_v13, -inf }
 0x265   : > { %1254 = vmax.xlane.f32.xlu1 %v1253_v15  ;;  %1251 = vmax.xlane.f32.xlu0 %v1250_v16 }
 0x267   : > { %v1194_v18 = vpop.f32.mrf.mxu2  ;;  %v1213_v19 = vpop.f32.mrf.mxu3 }
 0x26d   : > { %1248 = vmax.xlane.f32.xlu0 %v1247_v21 }
 0x2bc   : > { %v1234_v22 = vpop.xlane.xlu2 %1233 }
 0x2bd   : > { %v1256_v23 = vsub.f32 %v1223_v42, %v1234_v22 }
 0x2bf   : > { %v1264_v24 = vmul.f32 1.442695, %v1256_v23 }
 0x2c1   : > { %2117 = vpow2.f32 %v1264_v24 }
 0x2c4   : > { %v1237_v25 = vpop.xlane.xlu2 %1236 }
 0x2c5   : > { %v1257_v30 = vsub.f32 %v1224_v48, %v1237_v25 }
 0x2c7   : > { %v2118_v26 = vpop.eup %2117  ;;  %v1266_v32 = vmul.f32 1.442695, %v1257_v30  ;;  %v1489_v30 = vld [vmem:[%s2546_s3] sm:$0x3] }
 0x2c8   : > { %v1240_v27 = vpop.xlane.xlu1 %1239  ;;  %v1280_v28 = vsel %vm1231_vm7, %v2118_v26, 0.0 }
 0x2c9   : > { %v1258_v29 = vsub.f32 %v1225_v54, %v1240_v27  ;;  %1281 = vadd.xlane.f32.xlu0 %v1280_v28 }
 0x2cb   : > { %v1268_v31 = vmul.f32 1.442695, %v1258_v29 }
 0x2cc   : > { %v1246_v33 = vpop.xlane.xlu2 %1245 }
 0x2cd   : > { %2119 = vpow2.f32 %v1268_v31  ;;  %v1260_v37 = vsub.f32 %v1227_v62, %v1246_v33  ;;  %v1511_v31 = vsel %vm1509_vm8, %v1489_v30, 0  ;;  %v2149_v30 = vld [vmem:[%s2215_s29] sm:$0xff] }
 0x2ce   : > { %2121 = vpow2.f32 %v1266_v32  ;;  %v1491_v32 = vld [vmem:[%s2546_s3 + $0x4] sm:$0x3] }
 0x2cf   : > { %v1272_v40 = vmul.f32 1.442695, %v1260_v37  ;;  %v1549_v33 = vsel %vm1509_vm8, %v1491_v32, 0 }
 0x2d0   : > { %v1243_v34 = vpop.xlane.xlu1 %1242 }
 0x2d1   : > { %v1259_v35 = vsub.f32 %v1226_v2, %v1243_v34  ;;  %v1490_v34 = vld [vmem:[%s2546_s3 + $0x2] sm:$0x3] }
 0x2d3   : > { %v2120_v36 = vpop.eup %2119  ;;  %v1270_v38 = vmul.f32 1.442695, %v1259_v35  ;;  %v1530_v35 = vsel %vm1509_vm8, %v1490_v34, 0 }
 0x2d4   : > { %v1286_v39 = vsel %vm1231_vm7, %v2120_v36, 0.0  ;;  %v2122_v43 = vpop.eup %2121 }
 0x2d5   : > { %2123 = vpow2.f32 %v1270_v38  ;;  %1287 = vadd.xlane.f32.xlu1 %v1286_v39  ;;  %v1283_v49 = vsel %vm1231_vm7, %v2122_v43, 0.0  ;;  %v1493_v38 = vld [vmem:[%s2546_s3 + $0x8] sm:$0x3] }
 0x2d6   : > { %2125 = vpow2.f32 %v1272_v40  ;;  %v1587_v39 = vsel %vm1509_vm8, %v1493_v38, 0 }
 0x2d8   : > { %v1255_v41 = vpop.xlane.xlu1 %1254  ;;  %v1252_v42 = vpop.xlane.xlu0 %1251 }
 0x2d9   : > { %v1263_v44 = vsub.f32 %v1230_v12, %v1255_v41  ;;  %v1262_v45 = vsub.f32 %v1229_v13, %v1252_v42  ;;  %v1495_v42 = vld [vmem:[%s2546_s3 + $0xc] sm:$0x3] }
 0x2db   : > { %v2124_v46 = vpop.eup %2123  ;;  %v1278_v47 = vmul.f32 1.442695, %v1263_v44  ;;  %v1276_v48 = vmul.f32 1.442695, %v1262_v45  ;;  %v1494_v44 = vld [vmem:[%s2546_s3 + $0xa] sm:$0x3] }
 0x2dc   : > { %v1289_v50 = vsel %vm1231_vm7, %v2124_v46, 0.0  ;;  %v2126_v52 = vpop.eup %2125  ;;  %v1606_v45 = vsel %vm1509_vm8, %v1494_v44, 0 }
 0x2dd   : > { %2127 = vpow2.f32 %v1278_v47  ;;  %1284 = vadd.xlane.f32.xlu1 %v1283_v49  ;;  %1290 = vadd.xlane.f32.xlu2 %v1289_v50  ;;  %v1292_v58 = vsel %vm1231_vm7, %v2126_v52, 0.0 }
 0x2de   : > { %2129 = vpow2.f32 %v1276_v48 }
 0x2e0   : > { %v1249_v51 = vpop.xlane.xlu0 %1248 }
 0x2e1   : > { %v1261_v53 = vsub.f32 %v1228_v20, %v1249_v51 }
 0x2e3   : > { %v2128_v54 = vpop.eup %2127  ;;  %v1274_v55 = vmul.f32 1.442695, %v1261_v53 }
 0x2e4   : > { %v2130_v56 = vpop.eup %2129  ;;  %v1301_v57 = vsel %vm1231_vm7, %v2128_v54, 0.0 }
 0x2e5   : > { %2131 = vpow2.f32 %v1274_v55  ;;  %1302 = vadd.xlane.f32.xlu0 %v1301_v57  ;;  %v1298_v59 = vsel %vm1231_vm7, %v2130_v56, 0.0  ;;  %1293 = vadd.xlane.f32.xlu1 %v1292_v58 }
 0x2e6   : > { %1299 = vadd.xlane.f32.xlu2 %v1298_v59 }
 0x2eb   : > { %v2132_v60 = vpop.eup %2131 }
 0x2ec   : > { %v1295_v61 = vsel %vm1231_vm7, %v2132_v60, 0.0 }
 0x2ee   : > { %1296 = vadd.xlane.f32.xlu2 %v1295_v61 }
 0x33c   : > { %v1282_v62 = vpop.xlane.xlu0 %1281 }
 0x33d   : > { %2133 = vrcp.f32 %v1282_v62 }
 0x343   : > { %v2134_v63 = vpop.eup %2133 }
 0x344   : > { %v1312_v0 = vmul.f32 %v2134_v63, %v2118_v26 }
 0x346   : > { %v1320_v1 = vpack.c.bf16 %v1312_v0, %v1312_v0 }
 0x348   : > { %v1288_v2 = vpop.xlane.xlu1 %1287  ;;  %2034 = vmatmul.msk.bf16.vlgmr.msra.gmra.mxu0 %vm1231_vm7, %v1320_v1 }
 0x349   : > { %2135 = vrcp.f32 %v1288_v2  ;;  %1520 = vmatpush.bf16.msra.mxu0 %v1511_v31 }
 0x34f   : > { %v2136_v3 = vpop.eup %2135 }
 0x350   : > { %v1314_v4 = vmul.f32 %v2136_v3, %v2120_v36  ;;  %v1285_v5 = vpop.xlane.xlu1 %1284  ;;  %v1291_v6 = vpop.xlane.xlu2 %1290  ;;  %v1492_v36 = vld [vmem:[%s2546_s3 + $0x6] sm:$0x3] }
 0x351   : > { %2137 = vrcp.f32 %v1285_v5  ;;  %v1568_v37 = vsel %vm1509_vm8, %v1492_v36, 0 }
 0x352   : > { %v1322_v7 = vpack.c.bf16 %v1314_v4, %v1314_v4  ;;  %2139 = vrcp.f32 %v1291_v6 }
 0x354   : > { %2036 = vmatmul.msk.bf16.vlgmr.msra.gmra.mxu2 %vm1231_vm7, %v1322_v7 }
 0x355   : > { %1558 = vmatpush.bf16.msra.mxu2 %v1549_v33 }
 0x357   : > { %v2138_v8 = vpop.eup %2137 }
 0x358   : > { %v2140_v9 = vpop.eup %2139  ;;  %v1313_v10 = vmul.f32 %v2138_v8, %v2122_v43  ;;  %v1294_v11 = vpop.xlane.xlu1 %1293  ;;  %v1625_v43 = vsel %vm1509_vm8, %v1495_v42, 0 }
 0x359   : > { %v1315_v12 = vmul.f32 %v2140_v9, %v2124_v46  ;;  %v1300_v13 = vpop.xlane.xlu2 %1299  ;;  %2141 = vrcp.f32 %v1294_v11  ;;  %v1303_v16 = vpop.xlane.xlu0 %1302  ;;  %v1496_v46 = vld [vmem:[%s2546_s3 + $0xe] sm:$0x3] }
 0x35a   : > { %v1321_v14 = vpack.c.bf16 %v1313_v10, %v1313_v10  ;;  %2143 = vrcp.f32 %v1300_v13  ;;  %v1644_v48 = vsel %vm1509_vm8, %v1496_v46, 0 }
 0x35b   : > { %v1323_v15 = vpack.c.bf16 %v1315_v12, %v1315_v12  ;;  %2145 = vrcp.f32 %v1303_v16 }
 0x35c   : > { %2035 = vmatmul.msk.bf16.vlgmr.msra.gmra.mxu1 %vm1231_vm7, %v1321_v14 }
 0x35d   : > { %2037 = vmatmul.msk.bf16.vlgmr.msra.gmra.mxu3 %vm1231_vm7, %v1323_v15  ;;  %1539 = vmatpush.bf16.msra.mxu1 %v1530_v35 }
 0x35e   : > { %1577 = vmatpush.bf16.msra.mxu3 %v1568_v37 }
 0x35f   : > { %v2142_v17 = vpop.eup %2141 }
 0x360   : > { %v2144_v18 = vpop.eup %2143  ;;  %v1316_v19 = vmul.f32 %v2142_v17, %v2126_v52 }
 0x361   : > { %v1297_v20 = vpop.xlane.xlu2 %1296  ;;  %v1318_v21 = vmul.f32 %v2144_v18, %v2130_v56  ;;  %v2146_v23 = vpop.eup %2145 }
 0x362   : > { %2147 = vrcp.f32 %v1297_v20  ;;  %v1324_v22 = vpack.c.bf16 %v1316_v19, %v1316_v19  ;;  %v1319_v25 = vmul.f32 %v2146_v23, %v2128_v54 }
 0x363   : > { %v1326_v24 = vpack.c.bf16 %v1318_v21, %v1318_v21 }
 0x364   : > { %2038 = vmatmul.msk.bf16.vlgmr.msrb.gmra.mxu0 %vm1231_vm7, %v1324_v22  ;;  %v1327_v28 = vpack.c.bf16 %v1319_v25, %v1319_v25  ;;  %v2112_v25 = vld [vmem:[%s2547_s4] ss:$0 sm:$0xff] }
 0x365   : > { %2040 = vmatmul.msk.bf16.vlgmr.msrb.gmra.mxu2 %vm1231_vm7, %v1326_v24  ;;  %1596 = vmatpush.bf16.msrb.mxu0 %v1587_v39 }
 0x366   : > { %1634 = vmatpush.bf16.msrb.mxu2 %v1625_v43 }
 0x368   : > { %v2148_v26 = vpop.eup %2147 }
 0x369   : > { %v1317_v27 = vmul.f32 %v2148_v26, %v2132_v60 }
 0x36b   : > { %v1325_v29 = vpack.c.bf16 %v1317_v27, %v1317_v27 }
 0x36d   : > { %2039 = vmatmul.msk.bf16.vlgmr.msrb.gmra.mxu1 %vm1231_vm7, %v1325_v29  ;;  %2041 = vmatmul.msk.bf16.vlgmr.msrb.gmra.mxu3 %vm1231_vm7, %v1327_v28 }
 0x36e   : > { %1615 = vmatpush.bf16.msrb.mxu1 %v1606_v45  ;;  %1653 = vmatpush.bf16.msrb.mxu3 %v1644_v48 }
 0x3c5   : > { %v1352_v40 = vpop.f32.mrf.mxu0 }
 0x3c6   : > { %v1498_v41 = vpack.c.bf16 %v1352_v40, %v1352_v40 }
 0x3c8   : > { %2042 = vmatmul.msk.bf16.vlgmr.msra.gmra.mxu0 %vm1062_vm5, %v1498_v41 }
 0x3cd   : > { %v1354_v47 = vpop.f32.mrf.mxu0 }
 0x3d7   : > { %v1390_v49 = vpop.f32.mrf.mxu2 }
 0x3d8   : > { %v1500_v50 = vpack.c.bf16 %v1390_v49, %v1390_v49 }
 0x3d9   : > { %v1371_v51 = vpop.f32.mrf.mxu1 }
 0x3da   : > { %v1499_v52 = vpack.c.bf16 %v1371_v51, %v1371_v51  ;;  %2044 = vmatmul.msk.bf16.vlgmr.msra.gmra.mxu2 %vm1062_vm5, %v1500_v50 }
 0x3dc   : > { %2043 = vmatmul.msk.bf16.vlgmr.msra.gmra.mxu1 %vm1062_vm5, %v1499_v52 }
 0x3df   : > { %v1392_v53 = vpop.f32.mrf.mxu2 }
 0x3e0   : > { %v1409_v54 = vpop.f32.mrf.mxu3 }
 0x3e1   : > { %v1501_v55 = vpack.c.bf16 %v1409_v54, %v1409_v54  ;;  %v1373_v56 = vpop.f32.mrf.mxu1  ;;  %v1428_v57 = vpop.f32.mrf.mxu0 }
 0x3e2   : > { %v1502_v58 = vpack.c.bf16 %v1428_v57, %v1428_v57 }
 0x3e3   : > { %2045 = vmatmul.msk.bf16.vlgmr.msra.gmra.mxu3 %vm1062_vm5, %v1501_v55 }
 0x3e4   : > { %2046 = vmatmul.msk.bf16.vlgmr.msrb.gmra.mxu0 %vm1062_vm5, %v1502_v58 }
 0x3e8   : > { %v1411_v59 = vpop.f32.mrf.mxu3  ;;  %v1466_v60 = vpop.f32.mrf.mxu2 }
 0x3e9   : > { %v1504_v61 = vpack.c.bf16 %v1466_v60, %v1466_v60  ;;  %v1430_v62 = vpop.f32.mrf.mxu0 }
 0x3ea   : > { %v1447_v63 = vpop.f32.mrf.mxu1 }
 0x3eb   : > { %v1503_v0 = vpack.c.bf16 %v1447_v63, %v1447_v63  ;;  %2048 = vmatmul.msk.bf16.vlgmr.msrb.gmra.mxu2 %vm1062_vm5, %v1504_v61 }
 0x3ed   : > { %2047 = vmatmul.msk.bf16.vlgmr.msrb.gmra.mxu1 %vm1062_vm5, %v1503_v0 }
 0x3f0   : > { %v1485_v1 = vpop.f32.mrf.mxu3  ;;  %v1468_v2 = vpop.f32.mrf.mxu2 }
 0x3f1   : > { %v1505_v3 = vpack.c.bf16 %v1485_v1, %v1485_v1 }
 0x3f2   : > { %v1449_v4 = vpop.f32.mrf.mxu1 }
 0x3f3   : > { %2049 = vmatmul.msk.bf16.vlgmr.msrb.gmra.mxu3 %vm1062_vm5, %v1505_v3 }
 0x3f8   : > { %v1487_v5 = vpop.f32.mrf.mxu3 }
 0x445   : > { %v1522_v6 = vpop.f32.mrf.mxu0 }
 0x44d   : > { %v1524_v7 = vpop.f32.mrf.mxu0 }
 0x459   : > { %v1541_v8 = vpop.f32.mrf.mxu1 }
 0x45a   : > { %v1659_v14 = vadd.f32 %v1541_v8, %v1522_v6 }
 0x45d   : > { %v1560_v9 = vpop.f32.mrf.mxu2 }
 0x45e   : > { %v1660_v15 = vadd.f32 %v1659_v14, %v1560_v9 }
 0x461   : > { %v1543_v10 = vpop.f32.mrf.mxu1  ;;  %v1598_v11 = vpop.f32.mrf.mxu0 }
 0x465   : > { %v1562_v12 = vpop.f32.mrf.mxu2 }
 0x466   : > { %v1579_v13 = vpop.f32.mrf.mxu3 }
 0x467   : > { %v1661_v18 = vadd.f32 %v1660_v15, %v1579_v13 }
 0x469   : > { %v1600_v16 = vpop.f32.mrf.mxu0  ;;  %v1662_v20 = vadd.f32 %v1661_v18, %v1598_v11 }
 0x46a   : > { %v1617_v17 = vpop.f32.mrf.mxu1 }
 0x46b   : > { %v1663_v23 = vadd.f32 %v1662_v20, %v1617_v17 }
 0x46e   : > { %v1581_v19 = vpop.f32.mrf.mxu3  ;;  %v1636_v21 = vpop.f32.mrf.mxu2 }
 0x46f   : > { %v1664_v24 = vadd.f32 %v1663_v23, %v1636_v21 }
 0x472   : > { %v1619_v22 = vpop.f32.mrf.mxu1 }
 0x476   : > { %v1655_v26 = vpop.f32.mrf.mxu3  ;;  %v1638_v27 = vpop.f32.mrf.mxu2 }
 0x477   : > { %v1665_v28 = vadd.f32 %v1664_v24, %v1655_v26 }
 0x479   : > { %v1669_v29 = vadd.f32 %v2112_v25, %v1665_v28 }
 0x47b   : > { %v1670_v31 = vadd.f32 %v2149_v30, %v1669_v29 }
 0x47d   : > { %1671 = vst.msk [vmem:[%s293_s17] sm:$0xff] %vm298_vm0, %v1670_v31 }
 0x47e   : > { %v1657_v32 = vpop.f32.mrf.mxu3 }
 0x47f PF: > { %s17_s24 = sadd.s32 1, %s2156_s24  }
 0x480   : > { %p14_p4 = scmp.ge.s32.totalorder %s17_s24, 4  }
 0x482   :  { %16 = sbr.rel (!%p14_p4) target bundleno = 1 (0x1), region = 83 }

// kernel: transformer_forward.8
= control target key start
LH: loop header
LB: loop body
LE: loop exit
PB: predicated region body
PF: predicated region fallthrough
CT: control target
= control target key end

     0   :  { %s2292_s27 = smov 0   ;;  %s2630_s0 = inlined_call_operand.vmem [shape: f32[2,8,32], index: 0, kind: input, shape index: {}]   ;;  %s2631_s1 = inlined_call_operand.vmem [shape: f32[2,8,32], index: 1, kind: input, shape index: {}]   ;;  %s2632_s2 = inlined_call_operand.vmem [shape: f32[2,8,8,8], index: 2, kind: input, shape index: {}]   ;;  %s2633_s3 = inlined_call_operand.vmem [shape: bf16[3,8,32,4], index: 3, kind: input, shape index: {}]   ;;  %s2634_s4 = inlined_call_operand.vmem [shape: bf16[8,4,32], index: 4, kind: input, shape index: {}]   ;;  %s2635_s5 = inlined_call_operand.vmem [shape: f32[1,32], index: 5, kind: input, shape index: {}]   ;;  %s2636_s6 = inlined_call_operand.vmem [shape: f32[1,32], index: 6, kind: input, shape index: {}]   ;;  %s2637_s7 = inlined_call_operand.vmem [shape: f32[1,32], index: 7, kind: input, shape index: {}]   ;;  %s2638_s8 = inlined_call_operand.vmem [shape: f32[2,8,32], index: 8, kind: output, shape index: {}]  }
   0x1 LB: > { %s1822_s28 = sadd.s32 4294967295, %s2244_s27   ;;  %p1826_p0 = scmp.ge.s32.totalorder %s2244_s27, 1  ;;  %s2244_s27 = sphi %s2292_s27, %s18_s27  }
   0x2   : > { %p280_p1 = scmp.lt.s32.totalorder %s2244_s27, 3 }
   0x4   : > { %p281_p2 = pnand %p1826_p0, %p280_p1 }
   0x5   : > { %p321_p3 = scmp.lt.s32.totalorder (!%p281_p2), %s1822_s28, 1 }
   0x6   : > { %284 = sbr.rel (%p281_p2) target bundleno = 1151 (0x47f), region = 52 }
   0xb   : > { %s2640_s28 = smov (!%p321_p3, %s1822_s28), 1  ;;  %vm343_vm0 = vcmask 261120   ;;  %v2246_v4 = vmov 32.0   ;;  %v2140_v21 = vld [vmem:[%s2633_s3 + $0x8] sm:$0xff]  ;;  %v2142_v22 = vld [vmem:[%s2633_s3 + $0x18] sm:$0xff]  ;;  %v2139_v25 = vld [vmem:[%s2633_s3] sm:$0xff] }
   0xc   : > { %s2303_s29 = sshll.u32 %s2640_s28, 3  ;;  %2199 = vrcp.f32 %v2246_v4  ;;  %v2144_v23 = vld [vmem:[%s2633_s3 + $0x28] sm:$0xff]  ;;  %v2146_v24 = vld [vmem:[%s2633_s3 + $0x38] sm:$0xff]  ;;  %460 = vmatpush.bf16.msra.mxu0 %v2140_v21  ;;  %485 = vmatpush.bf16.msra.mxu1 %v2142_v22  ;;  %v2141_v26 = vld [vmem:[%s2633_s3 + $0x10] sm:$0xff]  ;;  %vm1135_vm8 = vcmask 31744   ;;  %vm1412_vm9 = vcmask 1043456  }
   0xd   : > { %s2309_s10 = scalar_lea.vmem %s2630_s0, %s2303_s29  ;;  %s328_s13 = scalar_lea.vmem %s2631_s1, %s2303_s29  ;;  %510 = vmatpush.bf16.msra.mxu2 %v2144_v23  ;;  %535 = vmatpush.bf16.msra.mxu3 %v2146_v24  ;;  %v2143_v27 = vld [vmem:[%s2633_s3 + $0x20] sm:$0xff]  ;;  %v2145_v28 = vld [vmem:[%s2633_s3 + $0x30] sm:$0xff]  ;;  %v2148_v32 = vld [vmem:[%s2633_s3 + $0x48] sm:$0xff]  ;;  %vm1304_vm10 = vcmask 64512   ;;  %vm1582_vm11 = vcmask 1041408  }
   0xe   : > { %v339_v0 = vld [vmem:[%s2309_s10] sm:$0xff]  ;;  %v2150_v33 = vld [vmem:[%s2633_s3 + $0x58] sm:$0xff]  ;;  %v2152_v34 = vld [vmem:[%s2633_s3 + $0x68] sm:$0xff]  ;;  %s2138_s24 = sshll.u32 %s2640_s28, 6  ;;  %s337_s9 = scalar_lea.vmem %s2638_s8, %s2303_s29 }
   0xf   : > { %v344_v1 = vsel %vm343_vm0, %v339_v0, 0.0  ;;  %v340_v2 = vld [vmem:[%s328_s13] sm:$0xff]  ;;  %v2154_v35 = vld [vmem:[%s2633_s3 + $0x78] sm:$0xff]  ;;  %v2149_v37 = vld [vmem:[%s2633_s3 + $0x50] sm:$0xff]  ;;  %s2540_s30 = scalar_lea.vmem %s2632_s2, %s2138_s24 }
  0x10   : > { %345 = vadd.xlane.f32.xlu0 %v344_v1  ;;  %v381_v3 = vsel %vm343_vm0, %v340_v2, 0.0  ;;  %461 = vmatpush.bf16.msra.mxu0 %v2139_v25  ;;  %v2147_v36 = vld [vmem:[%s2633_s3 + $0x40] sm:$0xff]  ;;  %v2153_v40 = vld [vmem:[%s2633_s3 + $0x70] sm:$0xff]  ;;  %v2156_v58 = vld [vmem:[%s2633_s3 + $0x88] sm:$0xff] }
  0x11   : > { %486 = vmatpush.bf16.msra.mxu1 %v2141_v26  ;;  %511 = vmatpush.bf16.msra.mxu2 %v2143_v27  ;;  %v2151_v39 = vld [vmem:[%s2633_s3 + $0x60] sm:$0xff]  ;;  %v2158_v59 = vld [vmem:[%s2633_s3 + $0x98] sm:$0xff]  ;;  %v2160_v61 = vld [vmem:[%s2633_s3 + $0xa8] sm:$0xff] }
  0x12   : > { %v2200_v5 = vpop.eup %2199  ;;  %536 = vmatpush.bf16.msra.mxu3 %v2145_v28  ;;  %v2196_v49 = vld [vmem:[%s2636_s6] ss:$0 sm:$0xff]  ;;  %v2162_v62 = vld [vmem:[%s2633_s3 + $0xb8] sm:$0xff]  ;;  %v2176_v21 = vld [vmem:[%s2633_s3 + $0x128] sm:$0xff] }
  0x13   : > { %v348_v6 = vmul.f32 32.0, %v2200_v5  ;;  %vm352_vm1 = vweird.f32 %v2200_v5  ;;  %v2197_v52 = vld [vmem:[%s2637_s7] ss:$0 sm:$0xff]  ;;  %v2178_v22 = vld [vmem:[%s2633_s3 + $0x138] sm:$0xff]  ;;  %v2173_v24 = vld [vmem:[%s2633_s3 + $0x110] sm:$0xff] }
  0x14   : > { %560 = vmatpush.bf16.msrb.mxu0 %v2148_v32  ;;  %v2155_v63 = vld [vmem:[%s2633_s3 + $0x80] sm:$0xff]  ;;  %v2177_v26 = vld [vmem:[%s2633_s3 + $0x130] sm:$0xff]  ;;  %v2180_v27 = vld [vmem:[%s2633_s3 + $0x148] sm:$0xff] }
  0x15   : > { %v349_v7 = vsub.f32 1.0, %v348_v6  ;;  %585 = vmatpush.bf16.msrb.mxu1 %v2150_v33  ;;  %610 = vmatpush.bf16.msrb.mxu2 %v2152_v34  ;;  %v2164_v6 = vld [vmem:[%s2633_s3 + $0xc8] sm:$0xff]  ;;  %v2171_v23 = vld [vmem:[%s2633_s3 + $0x100] sm:$0xff]  ;;  %v2182_v28 = vld [vmem:[%s2633_s3 + $0x158] sm:$0xff] }
  0x16   : > { %635 = vmatpush.bf16.msrb.mxu3 %v2154_v35  ;;  %v2175_v25 = vld [vmem:[%s2633_s3 + $0x120] sm:$0xff]  ;;  %v2181_v32 = vld [vmem:[%s2633_s3 + $0x150] sm:$0xff] }
  0x17   : > { %v350_v8 = vmul.f32 %v2200_v5, %v349_v7  ;;  %v2166_v7 = vld [vmem:[%s2633_s3 + $0xd8] sm:$0xff]  ;;  %v2183_v33 = vld [vmem:[%s2633_s3 + $0x160] sm:$0xff]  ;;  %v2185_v34 = vld [vmem:[%s2633_s3 + $0x170] sm:$0xff] }
  0x18   : > { %382 = vadd.xlane.f32.xlu0 %v381_v3  ;;  %561 = vmatpush.bf16.msrb.mxu0 %v2147_v36  ;;  %v2161_v3 = vld [vmem:[%s2633_s3 + $0xb0] sm:$0xff] }
  0x19   : > { %v351_v9 = vadd.f32 %v2200_v5, %v350_v8  ;;  %586 = vmatpush.bf16.msrb.mxu1 %v2149_v37  ;;  %611 = vmatpush.bf16.msrb.mxu2 %v2151_v39 }
  0x1a   : > { %636 = vmatpush.bf16.msrb.mxu3 %v2153_v40 }
  0x1b   : > { %v353_v10 = vsel %vm352_vm1, %v2200_v5, %v351_v9  ;;  %v2168_v9 = vld [vmem:[%s2633_s3 + $0xe8] sm:$0xff] }
  0x83   : > { %v346_v11 = vpop.xlane.xlu0 %345 }
  0x84   : > { %v354_v12 = vmul.f32 %v353_v10, %v346_v11 }
  0x86   : > { %v2318_v13 = vsub.f32 %v339_v0, %v354_v12  ;;  %v2157_v0 = vld [vmem:[%s2633_s3 + $0x90] sm:$0xff]  ;;  %v2163_v12 = vld [vmem:[%s2633_s3 + $0xc0] sm:$0xff] }
  0x88   : > { %v356_v14 = vmul.f32 %v2318_v13, %v2318_v13 }
  0x8a   : > { %v357_v15 = vsel %vm343_vm0, %v356_v14, 0.0  ;;  %v2167_v14 = vld [vmem:[%s2633_s3 + $0xe0] sm:$0xff] }
  0x8b   : > { %358 = vadd.xlane.f32.xlu1 %v357_v15  ;;  %v383_v16 = vpop.xlane.xlu0 %382  ;;  %v2169_v15 = vld [vmem:[%s2633_s3 + $0xf0] sm:$0xff] }
  0x8c   : > { %v384_v17 = vmul.f32 %v383_v16, %v353_v10 }
  0x8e   : > { %v2323_v18 = vsub.f32 %v340_v2, %v384_v17  ;;  %v2159_v2 = vld [vmem:[%s2633_s3 + $0xa0] sm:$0xff] }
  0x90   : > { %v386_v19 = vmul.f32 %v2323_v18, %v2323_v18 }
  0x92   : > { %v387_v20 = vsel %vm343_vm0, %v386_v19, 0.0  ;;  %v2172_v19 = vld [vmem:[%s2633_s3 + $0x108] sm:$0xff] }
  0x93   : > { %388 = vadd.xlane.f32.xlu1 %v387_v20  ;;  %v2174_v20 = vld [vmem:[%s2633_s3 + $0x118] sm:$0xff] }
  0xfe   : > { %v359_v29 = vpop.xlane.xlu1 %358 }
  0xff   : > { %v360_v30 = vmul.f32 %v359_v29, %v353_v10  ;;  %v2184_v29 = vld [vmem:[%s2633_s3 + $0x168] sm:$0xff] }
 0x101   : > { %v361_v31 = vadd.f32 1e-05, %v360_v30  ;;  %v2186_v30 = vld [vmem:[%s2633_s3 + $0x178] sm:$0xff] }
 0x103   : > { %2201 = vrsqrt.f32 %v361_v31  ;;  %vm368_vm3 = vweird.f32 %v361_v31 }
 0x106   : > { %v389_v38 = vpop.xlane.xlu1 %388 }
 0x107   : > { %v390_v41 = vmul.f32 %v389_v38, %v353_v10  ;;  %v2170_v10 = vld [vmem:[%s2633_s3 + $0xf8] sm:$0xff] }
 0x109   : > { %v2202_v42 = vpop.eup %2201  ;;  %v391_v44 = vadd.f32 1e-05, %v390_v41 }
 0x10a   : > { %v363_v43 = vmul.f32 %v2202_v42, %v361_v31  ;;  %vm369_vm2 = vweird.f32 %v2202_v42  ;;  %v2179_v31 = vld [vmem:[%s2633_s3 + $0x140] sm:$0xff] }
 0x10b   : > { %2203 = vrsqrt.f32 %v391_v44  ;;  %vm370_vm4 = vmor %vm368_vm3, %vm369_vm2  ;;  %vm398_vm5 = vweird.f32 %v391_v44 }
 0x10c   : > { %v364_v45 = vmul.f32 %v2202_v42, %v363_v43 }
 0x10e   : > { %v365_v46 = vmul.f32 0.5, %v364_v45 }
 0x110   : > { %v366_v47 = vsub.f32 1.5, %v365_v46 }
 0x111   : > { %v2204_v51 = vpop.eup %2203 }
 0x112   : > { %v367_v48 = vmul.f32 %v2202_v42, %v366_v47  ;;  %v393_v55 = vmul.f32 %v2204_v51, %v391_v44  ;;  %vm399_vm6 = vweird.f32 %v2204_v51 }
 0x113   : > { %vm400_vm7 = vmor %vm398_vm5, %vm399_vm6 }
 0x114   : > { %v371_v50 = vsel %vm370_vm4, %v2202_v42, %v367_v48  ;;  %v394_v60 = vmul.f32 %v2204_v51, %v393_v55 }
 0x115   : > { %v372_v53 = vmul.f32 %v371_v50, %v2318_v13  ;;  %v2165_v13 = vld [vmem:[%s2633_s3 + $0xd0] sm:$0xff] }
 0x116   : > { %v395_v1 = vmul.f32 0.5, %v394_v60 }
 0x117   : > { %v376_v54 = vmul.f32 %v2196_v49, %v372_v53 }
 0x118   : > { %v396_v4 = vsub.f32 1.5, %v395_v1 }
 0x119   : > { %v380_v56 = vadd.f32 %v2197_v52, %v376_v54 }
 0x11a   : > { %v397_v5 = vmul.f32 %v2204_v51, %v396_v4 }
 0x11b   : > { %v405_v57 = vpack.c.bf16 %v380_v56, %v380_v56 }
 0x11c   : > { %v401_v8 = vsel %vm400_vm7, %v2204_v51, %v397_v5 }
 0x11d   : > { %1840 = vmatmul.msk.bf16.vlgmr.msra.gmra.mxu0 %vm343_vm0, %v405_v57  ;;  %1849 = vmatmul.msk.bf16.vlgmr.msra.gmra.mxu1 %vm343_vm0, %v405_v57  ;;  %v402_v11 = vmul.f32 %v401_v8, %v2323_v18 }
 0x11e   : > { %1858 = vmatmul.msk.bf16.vlgmr.msra.gmra.mxu2 %vm343_vm0, %v405_v57  ;;  %1867 = vmatmul.msk.bf16.vlgmr.msra.gmra.mxu3 %vm343_vm0, %v405_v57 }
 0x11f   : > { %696 = vmatpush.bf16.msra.mxu0 %v2156_v58  ;;  %721 = vmatpush.bf16.msra.mxu1 %v2158_v59  ;;  %v403_v16 = vmul.f32 %v2196_v49, %v402_v11 }
 0x120   : > { %746 = vmatpush.bf16.msra.mxu2 %v2160_v61  ;;  %771 = vmatpush.bf16.msra.mxu3 %v2162_v62 }
 0x121   : > { %v404_v17 = vadd.f32 %v2197_v52, %v403_v16 }
 0x123   : > { %697 = vmatpush.bf16.msra.mxu0 %v2155_v63  ;;  %722 = vmatpush.bf16.msra.mxu1 %v2157_v0  ;;  %v406_v18 = vpack.c.bf16 %v404_v17, %v404_v17 }
 0x124   : > { %747 = vmatpush.bf16.msra.mxu2 %v2159_v2  ;;  %772 = vmatpush.bf16.msra.mxu3 %v2161_v3 }
 0x12d   : > { %1876 = vmatmul.msk.bf16.vlgmr.msrb.gmra.mxu0 %vm343_vm0, %v405_v57  ;;  %1885 = vmatmul.msk.bf16.vlgmr.msrb.gmra.mxu1 %vm343_vm0, %v405_v57 }
 0x12e   : > { %1894 = vmatmul.msk.bf16.vlgmr.msrb.gmra.mxu2 %vm343_vm0, %v405_v57  ;;  %1903 = vmatmul.msk.bf16.vlgmr.msrb.gmra.mxu3 %vm343_vm0, %v405_v57 }
 0x12f   : > { %796 = vmatpush.bf16.msrb.mxu0 %v2164_v6  ;;  %821 = vmatpush.bf16.msrb.mxu1 %v2166_v7 }
 0x130   : > { %846 = vmatpush.bf16.msrb.mxu2 %v2168_v9  ;;  %871 = vmatpush.bf16.msrb.mxu3 %v2170_v10 }
 0x133   : > { %797 = vmatpush.bf16.msrb.mxu0 %v2163_v12  ;;  %822 = vmatpush.bf16.msrb.mxu1 %v2165_v13 }
 0x134   : > { %847 = vmatpush.bf16.msrb.mxu2 %v2167_v14  ;;  %872 = vmatpush.bf16.msrb.mxu3 %v2169_v15 }
 0x13d   : > { %1944 = vmatmul.msk.bf16.vlgmr.msra.gmra.mxu0 %vm343_vm0, %v406_v18  ;;  %1953 = vmatmul.msk.bf16.vlgmr.msra.gmra.mxu1 %vm343_vm0, %v406_v18 }
 0x13e   : > { %1962 = vmatmul.msk.bf16.vlgmr.msra.gmra.mxu2 %vm343_vm0, %v406_v18  ;;  %1971 = vmatmul.msk.bf16.vlgmr.msra.gmra.mxu3 %vm343_vm0, %v406_v18 }
 0x13f   : > { %929 = vmatpush.bf16.msra.mxu0 %v2172_v19  ;;  %954 = vmatpush.bf16.msra.mxu1 %v2174_v20 }
 0x140   : > { %979 = vmatpush.bf16.msra.mxu2 %v2176_v21  ;;  %1004 = vmatpush.bf16.msra.mxu3 %v2178_v22 }
 0x143   : > { %930 = vmatpush.bf16.msra.mxu0 %v2171_v23  ;;  %955 = vmatpush.bf16.msra.mxu1 %v2173_v24 }
 0x144   : > { %980 = vmatpush.bf16.msra.mxu2 %v2175_v25  ;;  %1005 = vmatpush.bf16.msra.mxu3 %v2177_v26 }
 0x14d   : > { %1980 = vmatmul.msk.bf16.vlgmr.msrb.gmra.mxu0 %vm343_vm0, %v406_v18  ;;  %1989 = vmatmul.msk.bf16.vlgmr.msrb.gmra.mxu1 %vm343_vm0, %v406_v18 }
 0x14e   : > { %1998 = vmatmul.msk.bf16.vlgmr.msrb.gmra.mxu2 %vm343_vm0, %v406_v18  ;;  %2007 = vmatmul.msk.bf16.vlgmr.msrb.gmra.mxu3 %vm343_vm0, %v406_v18 }
 0x14f   : > { %1029 = vmatpush.bf16.msrb.mxu0 %v2180_v27  ;;  %1054 = vmatpush.bf16.msrb.mxu1 %v2182_v28 }
 0x150   : > { %1079 = vmatpush.bf16.msrb.mxu2 %v2184_v29  ;;  %1104 = vmatpush.bf16.msrb.mxu3 %v2186_v30 }
 0x153   : > { %1030 = vmatpush.bf16.msrb.mxu0 %v2179_v31  ;;  %1055 = vmatpush.bf16.msrb.mxu1 %v2181_v32 }
 0x154   : > { %1080 = vmatpush.bf16.msrb.mxu2 %v2183_v33  ;;  %1105 = vmatpush.bf16.msrb.mxu3 %v2185_v34 }
 0x15d   : > { %2048 = vmatmul.msk.bf16.vlgmr.msra.gmra.mxu0 %vm343_vm0, %v406_v18  ;;  %2057 = vmatmul.msk.bf16.vlgmr.msra.gmra.mxu1 %vm343_vm0, %v406_v18 }
 0x15e   : > { %2066 = vmatmul.msk.bf16.vlgmr.msra.gmra.mxu2 %vm343_vm0, %v406_v18  ;;  %2075 = vmatmul.msk.bf16.vlgmr.msra.gmra.mxu3 %vm343_vm0, %v406_v18 }
 0x16d   : > { %2084 = vmatmul.msk.bf16.vlgmr.msrb.gmra.mxu0 %vm343_vm0, %v406_v18  ;;  %2093 = vmatmul.msk.bf16.vlgmr.msrb.gmra.mxu1 %vm343_vm0, %v406_v18 }
 0x16e   : > { %2102 = vmatmul.msk.bf16.vlgmr.msrb.gmra.mxu2 %vm343_vm0, %v406_v18  ;;  %2111 = vmatmul.msk.bf16.vlgmr.msrb.gmra.mxu3 %vm343_vm0, %v406_v18 }
 0x19a   : > { %v463_v35 = vpop.f32.mrf.mxu0  ;;  %v488_v36 = vpop.f32.mrf.mxu1 }
 0x19b   : > { %v1119_v63 = vpack.c.bf16 %v463_v35, %v463_v35  ;;  %v1120_v0 = vpack.c.bf16 %v488_v36, %v488_v36 }
 0x1a1   : > { %v513_v37 = vpop.f32.mrf.mxu2  ;;  %v538_v38 = vpop.f32.mrf.mxu3 }
 0x1a2   : > { %v465_v39 = vpop.f32.mrf.mxu0  ;;  %v490_v40 = vpop.f32.mrf.mxu1  ;;  %v1121_v5 = vpack.c.bf16 %v513_v37, %v513_v37  ;;  %v1122_v6 = vpack.c.bf16 %v538_v38, %v538_v38 }
 0x1a9   : > { %v515_v41 = vpop.f32.mrf.mxu2  ;;  %v540_v42 = vpop.f32.mrf.mxu3 }
 0x1aa   : > { %v563_v43 = vpop.f32.mrf.mxu0  ;;  %v588_v44 = vpop.f32.mrf.mxu1 }
 0x1ab   : > { %v1123_v19 = vpack.c.bf16 %v563_v43, %v563_v43  ;;  %v1124_v20 = vpack.c.bf16 %v588_v44, %v588_v44 }
 0x1b1   : > { %v2504_v45 = vpop.f32.mrf.mxu2  ;;  %v2506_v46 = vpop.f32.mrf.mxu3 }
 0x1b2   : > { %v565_v47 = vpop.f32.mrf.mxu0  ;;  %v590_v48 = vpop.f32.mrf.mxu1  ;;  %v1125_v25 = vpack.c.bf16 %v2504_v45, %v2504_v45  ;;  %v1126_v26 = vpack.c.bf16 %v2506_v46, %v2506_v46 }
 0x1b9   : > { %v615_v49 = vpop.f32.mrf.mxu2  ;;  %v640_v50 = vpop.f32.mrf.mxu3 }
 0x1ba   : > { %v699_v51 = vpop.f32.mrf.mxu0  ;;  %v724_v52 = vpop.f32.mrf.mxu1 }
 0x1bb   : > { %v1127_v53 = vpack.c.bf16 %v699_v51, %v699_v51  ;;  %v1128_v54 = vpack.c.bf16 %v724_v52, %v724_v52 }
 0x1bd   : > { %v1140_v55 = vsel %vm1135_vm8, %v1127_v53, 0  ;;  %v1159_v56 = vsel %vm1135_vm8, %v1128_v54, 0 }
 0x1be   : > { %1149 = vmatpush.bf16.xpose.msra.mxu0 %v1140_v55  ;;  %1168 = vmatpush.bf16.xpose.msra.mxu1 %v1159_v56 }
 0x1c1   : > { %v749_v57 = vpop.f32.mrf.mxu2  ;;  %v774_v58 = vpop.f32.mrf.mxu3 }
 0x1c2   : > { %v1129_v59 = vpack.c.bf16 %v749_v57, %v749_v57  ;;  %v1130_v60 = vpack.c.bf16 %v774_v58, %v774_v58  ;;  %v701_v61 = vpop.f32.mrf.mxu0  ;;  %v726_v62 = vpop.f32.mrf.mxu1 }
 0x1c3   : > { %v1112_v61 = vld [vmem:[%s2540_s30 + $0x8] sm:$0xff]  ;;  %v1111_v62 = vld [vmem:[%s2540_s30] sm:$0xff] }
 0x1c4   : > { %v1178_v1 = vsel %vm1135_vm8, %v1129_v59, 0  ;;  %v1197_v2 = vsel %vm1135_vm8, %v1130_v60, 0 }
 0x1c5   : > { %1187 = vmatpush.bf16.xpose.msra.mxu2 %v1178_v1  ;;  %1206 = vmatpush.bf16.xpose.msra.mxu3 %v1197_v2 }
 0x1c6   : > { %2112 = vmatmul.msk.bf16.vlgmr.msra.gmra.mxu0 %vm1135_vm8, %v1119_v63  ;;  %2113 = vmatmul.msk.bf16.vlgmr.msra.gmra.mxu1 %vm1135_vm8, %v1120_v0 }
 0x1c9   : > { %v751_v3 = vpop.f32.mrf.mxu2  ;;  %v776_v4 = vpop.f32.mrf.mxu3 }
 0x1ca   : > { %v799_v7 = vpop.f32.mrf.mxu0  ;;  %v824_v8 = vpop.f32.mrf.mxu1 }
 0x1cb   : > { %v1131_v9 = vpack.c.bf16 %v799_v7, %v799_v7  ;;  %v1132_v10 = vpack.c.bf16 %v824_v8, %v824_v8 }
 0x1cc   : > { %2114 = vmatmul.msk.bf16.vlgmr.msra.gmra.mxu2 %vm1135_vm8, %v1121_v5  ;;  %2115 = vmatmul.msk.bf16.vlgmr.msra.gmra.mxu3 %vm1135_vm8, %v1122_v6 }
 0x1cd   : > { %v1216_v11 = vsel %vm1135_vm8, %v1131_v9, 0  ;;  %v1235_v12 = vsel %vm1135_vm8, %v1132_v10, 0  ;;  %v1113_v9 = vld [vmem:[%s2540_s30 + $0x10] sm:$0xff] }
 0x1ce   : > { %1225 = vmatpush.bf16.xpose.msrb.mxu0 %v1216_v11  ;;  %1244 = vmatpush.bf16.xpose.msrb.mxu1 %v1235_v12 }
 0x1d1   : > { %v849_v13 = vpop.f32.mrf.mxu2  ;;  %v874_v14 = vpop.f32.mrf.mxu3 }
 0x1d2   : > { %v1133_v15 = vpack.c.bf16 %v849_v13, %v849_v13  ;;  %v1134_v16 = vpack.c.bf16 %v874_v14, %v874_v14  ;;  %v801_v17 = vpop.f32.mrf.mxu0  ;;  %v826_v18 = vpop.f32.mrf.mxu1  ;;  %v1115_v14 = vld [vmem:[%s2540_s30 + $0x20] sm:$0xff] }
 0x1d3   : > { %v1114_v18 = vld [vmem:[%s2540_s30 + $0x18] sm:$0xff] }
 0x1d4   : > { %v1254_v21 = vsel %vm1135_vm8, %v1133_v15, 0  ;;  %v1273_v22 = vsel %vm1135_vm8, %v1134_v16, 0 }
 0x1d5   : > { %1263 = vmatpush.bf16.xpose.msrb.mxu2 %v1254_v21  ;;  %1282 = vmatpush.bf16.xpose.msrb.mxu3 %v1273_v22 }
 0x1d6   : > { %2116 = vmatmul.msk.bf16.vlgmr.msrb.gmra.mxu0 %vm1135_vm8, %v1123_v19  ;;  %2117 = vmatmul.msk.bf16.vlgmr.msrb.gmra.mxu1 %vm1135_vm8, %v1124_v20 }
 0x1d9   : > { %v851_v23 = vpop.f32.mrf.mxu2  ;;  %v876_v24 = vpop.f32.mrf.mxu3 }
 0x1da   : > { %v932_v27 = vpop.f32.mrf.mxu0  ;;  %v957_v28 = vpop.f32.mrf.mxu1 }
 0x1db   : > { %v1401_v29 = vpack.c.bf16 %v932_v27, %v932_v27  ;;  %v1402_v30 = vpack.c.bf16 %v957_v28, %v957_v28 }
 0x1dc   : > { %2118 = vmatmul.msk.bf16.vlgmr.msrb.gmra.mxu2 %vm1135_vm8, %v1125_v25  ;;  %2119 = vmatmul.msk.bf16.vlgmr.msrb.gmra.mxu3 %vm1135_vm8, %v1126_v26 }
 0x1dd   : > { %v1414_v31 = vsel %vm1412_vm9, %v1401_v29, 0  ;;  %v1433_v32 = vsel %vm1412_vm9, %v1402_v30, 0  ;;  %v1117_v29 = vld [vmem:[%s2540_s30 + $0x30] sm:$0xff]  ;;  %v1118_v30 = vld [vmem:[%s2540_s30 + $0x38] sm:$0xff] }
 0x1de   : > { %1423 = vmatpush.bf16.msra.mxu0 %v1414_v31  ;;  %1442 = vmatpush.bf16.msra.mxu1 %v1433_v32 }
 0x1e1   : > { %v982_v33 = vpop.f32.mrf.mxu2  ;;  %v1007_v34 = vpop.f32.mrf.mxu3 }
 0x1e2   : > { %v1403_v35 = vpack.c.bf16 %v982_v33, %v982_v33  ;;  %v1404_v36 = vpack.c.bf16 %v1007_v34, %v1007_v34  ;;  %v934_v37 = vpop.f32.mrf.mxu0  ;;  %v959_v38 = vpop.f32.mrf.mxu1 }
 0x1e3   : > { %v1116_v38 = vld [vmem:[%s2540_s30 + $0x28] sm:$0xff] }
 0x1e4   : > { %v1452_v39 = vsel %vm1412_vm9, %v1403_v35, 0  ;;  %v1471_v40 = vsel %vm1412_vm9, %v1404_v36, 0 }
 0x1e5   : > { %1461 = vmatpush.bf16.msra.mxu2 %v1452_v39  ;;  %1480 = vmatpush.bf16.msra.mxu3 %v1471_v40 }
 0x1e9   : > { %v984_v41 = vpop.f32.mrf.mxu2  ;;  %v1009_v42 = vpop.f32.mrf.mxu3 }
 0x1ea   : > { %v1032_v43 = vpop.f32.mrf.mxu0  ;;  %v1057_v44 = vpop.f32.mrf.mxu1 }
 0x1eb   : > { %v1405_v45 = vpack.c.bf16 %v1032_v43, %v1032_v43  ;;  %v1406_v46 = vpack.c.bf16 %v1057_v44, %v1057_v44 }
 0x1ed   : > { %v1490_v47 = vsel %vm1412_vm9, %v1405_v45, 0  ;;  %v1509_v48 = vsel %vm1412_vm9, %v1406_v46, 0 }
 0x1ee   : > { %1499 = vmatpush.bf16.msrb.mxu0 %v1490_v47  ;;  %1518 = vmatpush.bf16.msrb.mxu1 %v1509_v48 }
 0x1f1   : > { %v1082_v49 = vpop.f32.mrf.mxu2  ;;  %v1107_v50 = vpop.f32.mrf.mxu3 }
 0x1f2   : > { %v1407_v51 = vpack.c.bf16 %v1082_v49, %v1082_v49  ;;  %v1408_v52 = vpack.c.bf16 %v1107_v50, %v1107_v50  ;;  %v1034_v53 = vpop.f32.mrf.mxu0  ;;  %v1059_v54 = vpop.f32.mrf.mxu1 }
 0x1f4   : > { %v1528_v55 = vsel %vm1412_vm9, %v1407_v51, 0  ;;  %v1547_v56 = vsel %vm1412_vm9, %v1408_v52, 0 }
 0x1f5   : > { %1537 = vmatpush.bf16.msrb.mxu2 %v1528_v55  ;;  %1556 = vmatpush.bf16.msrb.mxu3 %v1547_v56 }
 0x1f9   : > { %v1084_v57 = vpop.f32.mrf.mxu2  ;;  %v1109_v58 = vpop.f32.mrf.mxu3 }
 0x243   : > { %v1151_v59 = vpop.f32.mrf.mxu0  ;;  %v1170_v60 = vpop.f32.mrf.mxu1 }
 0x244   : > { %v1288_v63 = vmul.f32 0.5, %v1151_v59  ;;  %v1289_v0 = vmul.f32 0.5, %v1170_v60 }
 0x246   : > { %v2544_v1 = vadd.f32 %v1289_v0, %v1112_v61  ;;  %v1296_v2 = vadd.f32 %v1288_v63, %v1111_v62 }
 0x248   : > { %v1308_v3 = vsel %vm1304_vm10, %v2544_v1, -inf  ;;  %v1305_v4 = vsel %vm1304_vm10, %v1296_v2, -inf }
 0x249   : > { %1309 = vmax.xlane.f32.xlu1 %v1308_v3  ;;  %1306 = vmax.xlane.f32.xlu0 %v1305_v4 }
 0x24b   : > { %v1153_v5 = vpop.f32.mrf.mxu0  ;;  %v1172_v6 = vpop.f32.mrf.mxu1 }
 0x24f   : > { %v1189_v7 = vpop.f32.mrf.mxu2  ;;  %v1208_v8 = vpop.f32.mrf.mxu3 }
 0x250   : > { %v1290_v10 = vmul.f32 0.5, %v1189_v7  ;;  %v1291_v15 = vmul.f32 0.5, %v1208_v8 }
 0x252   : > { %v1298_v11 = vadd.f32 %v1290_v10, %v1113_v9  ;;  %v1299_v23 = vadd.f32 %v1291_v15, %v1114_v18 }
 0x253   : > { %v1227_v12 = vpop.f32.mrf.mxu0  ;;  %v1246_v13 = vpop.f32.mrf.mxu1 }
 0x254   : > { %v1292_v16 = vmul.f32 0.5, %v1227_v12  ;;  %v1311_v17 = vsel %vm1304_vm10, %v1298_v11, -inf  ;;  %v1314_v26 = vsel %vm1304_vm10, %v1299_v23, -inf  ;;  %v1293_v35 = vmul.f32 0.5, %v1246_v13 }
 0x255   : > { %1312 = vmax.xlane.f32.xlu2 %v1311_v17 }
 0x256   : > { %v1300_v19 = vadd.f32 %v1292_v16, %v1115_v14  ;;  %v1301_v41 = vadd.f32 %v1293_v35, %v1116_v38 }
 0x257   : > { %v1191_v20 = vpop.f32.mrf.mxu2  ;;  %v1210_v21 = vpop.f32.mrf.mxu3 }
 0x258   : > { %v1317_v22 = vsel %vm1304_vm10, %v1300_v19, -inf  ;;  %v1320_v42 = vsel %vm1304_vm10, %v1301_v41, -inf }
 0x259   : > { %1318 = vmax.xlane.f32.xlu1 %v1317_v22 }
 0x25b   : > { %v1229_v24 = vpop.f32.mrf.mxu0  ;;  %v1248_v25 = vpop.f32.mrf.mxu1 }
 0x25d   : > { %1315 = vmax.xlane.f32.xlu2 %v1314_v26 }
 0x25f   : > { %v1265_v27 = vpop.f32.mrf.mxu2  ;;  %v1284_v28 = vpop.f32.mrf.mxu3 }
 0x260   : > { %v1294_v31 = vmul.f32 0.5, %v1265_v27  ;;  %v1295_v32 = vmul.f32 0.5, %v1284_v28 }
 0x262   : > { %v1302_v33 = vadd.f32 %v1294_v31, %v1117_v29  ;;  %v1303_v34 = vadd.f32 %v1295_v32, %v1118_v30 }
 0x264   : > { %v1323_v36 = vsel %vm1304_vm10, %v1302_v33, -inf  ;;  %v1326_v37 = vsel %vm1304_vm10, %v1303_v34, -inf }
 0x265   : > { %1324 = vmax.xlane.f32.xlu2 %v1323_v36  ;;  %1327 = vmax.xlane.f32.xlu0 %v1326_v37 }
 0x267   : > { %v1267_v39 = vpop.f32.mrf.mxu2  ;;  %v1286_v40 = vpop.f32.mrf.mxu3 }
 0x26d   : > { %1321 = vmax.xlane.f32.xlu2 %v1320_v42 }
 0x2bc   : > { %v1307_v43 = vpop.xlane.xlu0 %1306  ;;  %v1310_v47 = vpop.xlane.xlu1 %1309 }
 0x2bd   : > { %v1329_v44 = vsub.f32 %v1296_v2, %v1307_v43  ;;  %v1330_v51 = vsub.f32 %v2544_v1, %v1310_v47 }
 0x2bf   : > { %v1337_v45 = vmul.f32 1.442695, %v1329_v44  ;;  %v1339_v53 = vmul.f32 1.442695, %v1330_v51  ;;  %v1562_v51 = vld [vmem:[%s2634_s4] sm:$0x3] }
 0x2c1   : > { %2205 = vpow2.f32 %v1337_v45 }
 0x2c7   : > { %v2206_v46 = vpop.eup %2205 }
 0x2c8   : > { %v1313_v48 = vpop.xlane.xlu2 %1312  ;;  %v1353_v50 = vsel %vm1304_vm10, %v2206_v46, 0.0 }
 0x2c9   : > { %v1331_v49 = vsub.f32 %v1298_v11, %v1313_v48  ;;  %1354 = vadd.xlane.f32.xlu2 %v1353_v50 }
 0x2cb   : > { %v1341_v52 = vmul.f32 1.442695, %v1331_v49 }
 0x2cc   : > { %v1319_v54 = vpop.xlane.xlu1 %1318 }
 0x2cd   : > { %2207 = vpow2.f32 %v1341_v52  ;;  %v1333_v58 = vsub.f32 %v1300_v19, %v1319_v54  ;;  %v1584_v52 = vsel %vm1582_vm11, %v1562_v51, 0  ;;  %v2237_v51 = vld [vmem:[%s2309_s10] sm:$0xff] }
 0x2ce   : > { %2209 = vpow2.f32 %v1339_v53  ;;  %v1564_v53 = vld [vmem:[%s2634_s4 + $0x4] sm:$0x3] }
 0x2cf   : > { %v1345_v61 = vmul.f32 1.442695, %v1333_v58  ;;  %v1622_v54 = vsel %vm1582_vm11, %v1564_v53, 0 }
 0x2d0   : > { %v1316_v55 = vpop.xlane.xlu2 %1315 }
 0x2d1   : > { %v1332_v56 = vsub.f32 %v1299_v23, %v1316_v55  ;;  %v1563_v55 = vld [vmem:[%s2634_s4 + $0x2] sm:$0x3] }
 0x2d3   : > { %v2208_v57 = vpop.eup %2207  ;;  %v1343_v59 = vmul.f32 1.442695, %v1332_v56  ;;  %v1603_v56 = vsel %vm1582_vm11, %v1563_v55, 0 }
 0x2d4   : > { %v1359_v60 = vsel %vm1304_vm10, %v2208_v57, 0.0  ;;  %v2210_v0 = vpop.eup %2209 }
 0x2d5   : > { %2211 = vpow2.f32 %v1343_v59  ;;  %1360 = vadd.xlane.f32.xlu0 %v1359_v60  ;;  %v1356_v6 = vsel %vm1304_vm10, %v2210_v0, 0.0  ;;  %v1566_v59 = vld [vmem:[%s2634_s4 + $0x8] sm:$0x3] }
 0x2d6   : > { %2213 = vpow2.f32 %v1345_v61  ;;  %v1660_v60 = vsel %vm1582_vm11, %v1566_v59, 0 }
 0x2d8   : > { %v1325_v62 = vpop.xlane.xlu2 %1324  ;;  %v1328_v63 = vpop.xlane.xlu0 %1327 }
 0x2d9   : > { %v1335_v2 = vsub.f32 %v1302_v33, %v1325_v62  ;;  %v1336_v1 = vsub.f32 %v1303_v34, %v1328_v63  ;;  %v1568_v63 = vld [vmem:[%s2634_s4 + $0xc] sm:$0x3] }
 0x2db   : > { %v2212_v3 = vpop.eup %2211  ;;  %v1349_v4 = vmul.f32 1.442695, %v1335_v2  ;;  %v1351_v5 = vmul.f32 1.442695, %v1336_v1  ;;  %v1567_v2 = vld [vmem:[%s2634_s4 + $0xa] sm:$0x3] }
 0x2dc   : > { %v1362_v7 = vsel %vm1304_vm10, %v2212_v3, 0.0  ;;  %v2214_v9 = vpop.eup %2213  ;;  %v1679_v1 = vsel %vm1582_vm11, %v1567_v2, 0 }
 0x2dd   : > { %2215 = vpow2.f32 %v1349_v4  ;;  %1357 = vadd.xlane.f32.xlu0 %v1356_v6  ;;  %1363 = vadd.xlane.f32.xlu1 %v1362_v7  ;;  %v1365_v15 = vsel %vm1304_vm10, %v2214_v9, 0.0 }
 0x2de   : > { %2217 = vpow2.f32 %v1351_v5 }
 0x2e0   : > { %v1322_v8 = vpop.xlane.xlu2 %1321 }
 0x2e1   : > { %v1334_v10 = vsub.f32 %v1301_v41, %v1322_v8 }
 0x2e3   : > { %v2216_v11 = vpop.eup %2215  ;;  %v1347_v12 = vmul.f32 1.442695, %v1334_v10 }
 0x2e4   : > { %v2218_v13 = vpop.eup %2217  ;;  %v1371_v14 = vsel %vm1304_vm10, %v2216_v11, 0.0 }
 0x2e5   : > { %2219 = vpow2.f32 %v1347_v12  ;;  %v1374_v16 = vsel %vm1304_vm10, %v2218_v13, 0.0  ;;  %1372 = vadd.xlane.f32.xlu1 %v1371_v14  ;;  %1366 = vadd.xlane.f32.xlu0 %v1365_v15 }
 0x2e6   : > { %1375 = vadd.xlane.f32.xlu2 %v1374_v16 }
 0x2eb   : > { %v2220_v17 = vpop.eup %2219 }
 0x2ec   : > { %v1368_v18 = vsel %vm1304_vm10, %v2220_v17, 0.0 }
 0x2ed   : > { %1369 = vadd.xlane.f32.xlu1 %v1368_v18 }
 0x33c   : > { %v1355_v19 = vpop.xlane.xlu2 %1354 }
 0x33d   : > { %2221 = vrcp.f32 %v1355_v19 }
 0x343   : > { %v2222_v20 = vpop.eup %2221 }
 0x344   : > { %v1385_v21 = vmul.f32 %v2222_v20, %v2206_v46 }
 0x346   : > { %v1393_v22 = vpack.c.bf16 %v1385_v21, %v1385_v21 }
 0x348   : > { %v1361_v23 = vpop.xlane.xlu0 %1360  ;;  %2120 = vmatmul.msk.bf16.vlgmr.msra.gmra.mxu0 %vm1304_vm10, %v1393_v22 }
 0x349   : > { %2223 = vrcp.f32 %v1361_v23  ;;  %1593 = vmatpush.bf16.msra.mxu0 %v1584_v52 }
 0x34f   : > { %v2224_v24 = vpop.eup %2223 }
 0x350   : > { %v1387_v25 = vmul.f32 %v2224_v24, %v2208_v57  ;;  %v1358_v26 = vpop.xlane.xlu0 %1357  ;;  %v1364_v27 = vpop.xlane.xlu1 %1363  ;;  %v1565_v57 = vld [vmem:[%s2634_s4 + $0x6] sm:$0x3] }
 0x351   : > { %2225 = vrcp.f32 %v1358_v26  ;;  %v1641_v58 = vsel %vm1582_vm11, %v1565_v57, 0 }
 0x352   : > { %v1395_v28 = vpack.c.bf16 %v1387_v25, %v1387_v25  ;;  %2227 = vrcp.f32 %v1364_v27 }
 0x354   : > { %2122 = vmatmul.msk.bf16.vlgmr.msra.gmra.mxu2 %vm1304_vm10, %v1395_v28 }
 0x355   : > { %1631 = vmatpush.bf16.msra.mxu2 %v1622_v54 }
 0x357   : > { %v2226_v29 = vpop.eup %2225 }
 0x358   : > { %v2228_v30 = vpop.eup %2227  ;;  %v1386_v31 = vmul.f32 %v2226_v29, %v2210_v0  ;;  %v1367_v32 = vpop.xlane.xlu0 %1366  ;;  %v1698_v0 = vsel %vm1582_vm11, %v1568_v63, 0 }
 0x359   : > { %v1373_v33 = vpop.xlane.xlu1 %1372  ;;  %v1388_v34 = vmul.f32 %v2228_v30, %v2212_v3  ;;  %2229 = vrcp.f32 %v1367_v32  ;;  %v1376_v37 = vpop.xlane.xlu2 %1375  ;;  %v1569_v3 = vld [vmem:[%s2634_s4 + $0xe] sm:$0x3] }
 0x35a   : > { %v1394_v35 = vpack.c.bf16 %v1386_v31, %v1386_v31  ;;  %2231 = vrcp.f32 %v1373_v33  ;;  %v1717_v4 = vsel %vm1582_vm11, %v1569_v3, 0 }
 0x35b   : > { %v1396_v36 = vpack.c.bf16 %v1388_v34, %v1388_v34  ;;  %2233 = vrcp.f32 %v1376_v37 }
 0x35c   : > { %2121 = vmatmul.msk.bf16.vlgmr.msra.gmra.mxu1 %vm1304_vm10, %v1394_v35 }
 0x35d   : > { %2123 = vmatmul.msk.bf16.vlgmr.msra.gmra.mxu3 %vm1304_vm10, %v1396_v36  ;;  %1612 = vmatpush.bf16.msra.mxu1 %v1603_v56 }
 0x35e   : > { %1650 = vmatpush.bf16.msra.mxu3 %v1641_v58 }
 0x35f   : > { %v2230_v38 = vpop.eup %2229 }
 0x360   : > { %v1389_v39 = vmul.f32 %v2230_v38, %v2214_v9  ;;  %v2232_v41 = vpop.eup %2231 }
 0x361   : > { %v1370_v40 = vpop.xlane.xlu1 %1369  ;;  %v1391_v43 = vmul.f32 %v2232_v41, %v2216_v11  ;;  %v2234_v44 = vpop.eup %2233 }
 0x362   : > { %2235 = vrcp.f32 %v1370_v40  ;;  %v1397_v42 = vpack.c.bf16 %v1389_v39, %v1389_v39  ;;  %v1392_v47 = vmul.f32 %v2234_v44, %v2218_v13 }
 0x363   : > { %v1399_v45 = vpack.c.bf16 %v1391_v43, %v1391_v43 }
 0x364   : > { %2124 = vmatmul.msk.bf16.vlgmr.msrb.gmra.mxu0 %vm1304_vm10, %v1397_v42  ;;  %v1400_v50 = vpack.c.bf16 %v1392_v47, %v1392_v47 }
 0x365   : > { %2126 = vmatmul.msk.bf16.vlgmr.msrb.gmra.mxu2 %vm1304_vm10, %v1399_v45  ;;  %1669 = vmatpush.bf16.msrb.mxu0 %v1660_v60 }
 0x366   : > { %1707 = vmatpush.bf16.msrb.mxu2 %v1698_v0 }
 0x368   : > { %v2236_v46 = vpop.eup %2235 }
 0x369   : > { %v1390_v48 = vmul.f32 %v2236_v46, %v2220_v17  ;;  %v2198_v46 = vld [vmem:[%s2635_s5] ss:$0 sm:$0xff] }
 0x36b   : > { %v1398_v49 = vpack.c.bf16 %v1390_v48, %v1390_v48 }
 0x36d   : > { %2125 = vmatmul.msk.bf16.vlgmr.msrb.gmra.mxu1 %vm1304_vm10, %v1398_v49  ;;  %2127 = vmatmul.msk.bf16.vlgmr.msrb.gmra.mxu3 %vm1304_vm10, %v1400_v50 }
 0x36e   : > { %1688 = vmatpush.bf16.msrb.mxu1 %v1679_v1  ;;  %1726 = vmatpush.bf16.msrb.mxu3 %v1717_v4 }
 0x3c5   : > { %v1425_v61 = vpop.f32.mrf.mxu0 }
 0x3c6   : > { %v1571_v62 = vpack.c.bf16 %v1425_v61, %v1425_v61 }
 0x3c8   : > { %2128 = vmatmul.msk.bf16.vlgmr.msra.gmra.mxu0 %vm1135_vm8, %v1571_v62 }
 0x3cd   : > { %v1427_v5 = vpop.f32.mrf.mxu0 }
 0x3d7   : > { %v1463_v6 = vpop.f32.mrf.mxu2 }
 0x3d8   : > { %v1573_v7 = vpack.c.bf16 %v1463_v6, %v1463_v6 }
 0x3d9   : > { %v1444_v8 = vpop.f32.mrf.mxu1 }
 0x3da   : > { %v1572_v9 = vpack.c.bf16 %v1444_v8, %v1444_v8  ;;  %2130 = vmatmul.msk.bf16.vlgmr.msra.gmra.mxu2 %vm1135_vm8, %v1573_v7 }
 0x3dc   : > { %2129 = vmatmul.msk.bf16.vlgmr.msra.gmra.mxu1 %vm1135_vm8, %v1572_v9 }
 0x3df   : > { %v1465_v10 = vpop.f32.mrf.mxu2 }
 0x3e0   : > { %v1482_v11 = vpop.f32.mrf.mxu3 }
 0x3e1   : > { %v1574_v12 = vpack.c.bf16 %v1482_v11, %v1482_v11  ;;  %v1446_v13 = vpop.f32.mrf.mxu1  ;;  %v1501_v14 = vpop.f32.mrf.mxu0 }
 0x3e2   : > { %v1575_v15 = vpack.c.bf16 %v1501_v14, %v1501_v14 }
 0x3e3   : > { %2131 = vmatmul.msk.bf16.vlgmr.msra.gmra.mxu3 %vm1135_vm8, %v1574_v12 }
 0x3e4   : > { %2132 = vmatmul.msk.bf16.vlgmr.msrb.gmra.mxu0 %vm1135_vm8, %v1575_v15 }
 0x3e8   : > { %v1484_v16 = vpop.f32.mrf.mxu3  ;;  %v1539_v17 = vpop.f32.mrf.mxu2 }
 0x3e9   : > { %v1503_v18 = vpop.f32.mrf.mxu0  ;;  %v1577_v19 = vpack.c.bf16 %v1539_v17, %v1539_v17 }
 0x3ea   : > { %v1520_v20 = vpop.f32.mrf.mxu1 }
 0x3eb   : > { %v1576_v21 = vpack.c.bf16 %v1520_v20, %v1520_v20  ;;  %2134 = vmatmul.msk.bf16.vlgmr.msrb.gmra.mxu2 %vm1135_vm8, %v1577_v19 }
 0x3ed   : > { %2133 = vmatmul.msk.bf16.vlgmr.msrb.gmra.mxu1 %vm1135_vm8, %v1576_v21 }
 0x3f0   : > { %v1558_v22 = vpop.f32.mrf.mxu3  ;;  %v1541_v23 = vpop.f32.mrf.mxu2 }
 0x3f1   : > { %v1578_v24 = vpack.c.bf16 %v1558_v22, %v1558_v22 }
 0x3f2   : > { %v1522_v25 = vpop.f32.mrf.mxu1 }
 0x3f3   : > { %2135 = vmatmul.msk.bf16.vlgmr.msrb.gmra.mxu3 %vm1135_vm8, %v1578_v24 }
 0x3f8   : > { %v1560_v26 = vpop.f32.mrf.mxu3 }
 0x445   : > { %v1595_v27 = vpop.f32.mrf.mxu0 }
 0x44d   : > { %v1597_v28 = vpop.f32.mrf.mxu0 }
 0x459   : > { %v1614_v29 = vpop.f32.mrf.mxu1 }
 0x45a   : > { %v1732_v35 = vadd.f32 %v1614_v29, %v1595_v27 }
 0x45d   : > { %v1633_v30 = vpop.f32.mrf.mxu2 }
 0x45e   : > { %v1733_v36 = vadd.f32 %v1732_v35, %v1633_v30 }
 0x461   : > { %v1616_v31 = vpop.f32.mrf.mxu1  ;;  %v1671_v32 = vpop.f32.mrf.mxu0 }
 0x465   : > { %v1635_v33 = vpop.f32.mrf.mxu2 }
 0x466   : > { %v1652_v34 = vpop.f32.mrf.mxu3 }
 0x467   : > { %v1734_v39 = vadd.f32 %v1733_v36, %v1652_v34 }
 0x469   : > { %v1673_v37 = vpop.f32.mrf.mxu0  ;;  %v1735_v41 = vadd.f32 %v1734_v39, %v1671_v32 }
 0x46a   : > { %v1690_v38 = vpop.f32.mrf.mxu1 }
 0x46b   : > { %v1736_v44 = vadd.f32 %v1735_v41, %v1690_v38 }
 0x46e   : > { %v1654_v40 = vpop.f32.mrf.mxu3  ;;  %v1709_v42 = vpop.f32.mrf.mxu2 }
 0x46f   : > { %v1737_v45 = vadd.f32 %v1736_v44, %v1709_v42 }
 0x472   : > { %v1692_v43 = vpop.f32.mrf.mxu1 }
 0x476   : > { %v1728_v47 = vpop.f32.mrf.mxu3  ;;  %v1711_v48 = vpop.f32.mrf.mxu2 }
 0x477   : > { %v1738_v49 = vadd.f32 %v1737_v45, %v1728_v47 }
 0x479   : > { %v1742_v50 = vadd.f32 %v2198_v46, %v1738_v49 }
 0x47b   : > { %v1743_v52 = vadd.f32 %v2237_v51, %v1742_v50 }
 0x47d   : > { %1744 = vst.msk [vmem:[%s337_s9] sm:$0xff] %vm343_vm0, %v1743_v52 }
 0x47e   : > { %v1730_v53 = vpop.f32.mrf.mxu3 }
 0x47f PF: > { %s18_s27 = sadd.s32 1, %s2244_s27  }
 0x480   : > { %p15_p4 = scmp.ge.s32.totalorder %s18_s27, 4  }
 0x482   :  { %17 = sbr.rel (!%p15_p4) target bundleno = 1 (0x1), region = 90 }

</bundles_post_ra>
